<compile_context>
chip_gen: v7x
topology: tpu7x:2x2x1
jax: 0.10.0
libtpu: 0.0.40
codegen_flags: <defaults>
</compile_context>

<pallas_src>
import functools

import jax
import jax.numpy as jnp
from jax import lax
from jax.experimental import pallas as pl
from jax.experimental.pallas import tpu as pltpu


# --------------------------------------------------------------------------
# Kernel
# --------------------------------------------------------------------------
def _nrb_kernel(x_ref, a1_ref, a2_ref, b_ref, out_ref, *,
                n_blocks, img_h, wcout, slope):
    # x_ref  : (bn, H, W*Cin)            lane-dense rows, bn images per step
    # a1_ref : (n, 3*W*Cin, 2*W*Cout)    [banded conv1 | lifted 1x1 skip]
    # a2_ref : (n, 3*W*Cout, W*Cout)     banded conv3x3 #2 weights
    # b_ref  : (n, 3, W*Cout)            rows = [b1, b2, bs], tiled across W
    # out_ref: (bn, H, W*Cout)
    bn = x_ref.shape[0]
    M = bn * img_h                       # matmul M dimension (rows)

    def lrelu(v):
        return jnp.where(v > 0, v, slope * v)

    # Row-within-image masks, hoisted: built once per distinct width.
    mask_cache = {}

    def row_masks(width):
        if width not in mask_cache:
            rid = lax.broadcasted_iota(jnp.int32, (M, width), 0)
            if bn > 1:
                rid = rid % img_h        # row index inside its own image
            mask_cache[width] = (rid == 0, rid == img_h - 1)
        return mask_cache[width]

    def shifted_cat(a):
        # a: (M, width).  Returns (M, 3*width) = [row r-1 | row r | row r+1]
        # with zero rows at the top/bottom of every image (conv zero padding).
        width = a.shape[-1]
        top, bot = row_masks(width)
        up = jnp.where(top, 0.0, pltpu.roll(a, shift=1, axis=0))      # a[r-1]
        dn = jnp.where(bot, 0.0, pltpu.roll(a, shift=M - 1, axis=0))  # a[r+1]
        return jnp.concatenate([up, a, dn], axis=1)

    act = x_ref[...].reshape(M, x_ref.shape[-1]).astype(jnp.float32)

    for b in range(n_blocks):            # static unroll (small n)
        bias = b_ref[b]                  # (3, W*Cout)
        # conv1 + 1x1 skip in one widened-N matmul; lane-aligned slices after.
        fused = jnp.dot(shifted_cat(act), a1_ref[b],
                        preferred_element_type=jnp.float32)
        skip = fused[:, wcout:] + bias[2:3, :]
        y = lrelu(fused[:, :wcout] + bias[0:1, :])
        y = lrelu(jnp.dot(shifted_cat(y), a2_ref[b],
                          preferred_element_type=jnp.float32) + bias[1:2, :])
        act = y + skip

    out_ref[...] = act.reshape(out_ref.shape).astype(out_ref.dtype)


# --------------------------------------------------------------------------
# One-time weight repacking (layout plumbing, hoisted out of the call path)
# --------------------------------------------------------------------------
def _pack_conv3x3(w, width_w):
    """HWIO (3, 3, Cin, Cout) -> block-banded (3*W*Cin, W*Cout).

    Row block ky holds weights applied to the row-(r+ky-1) shifted input;
    within a block, A[wi*Cin+ci, j*Cout+co] = w[ky, wi - j + 1, ci, co]
    (zero where the tap reads outside [0, W), i.e. the W zero padding).
    """
    kh, kw, ci, co = w.shape
    mats = []
    for ky in range(kh):
        a = jnp.zeros((width_w, ci, width_w, co), w.dtype)
        for kx in range(kw):
            eye = jnp.eye(width_w, k=1 - kx, dtype=w.dtype)
            a = a + jnp.einsum("pq,io->piqo", eye, w[ky, kx])
        mats.append(a.reshape(width_w * ci, width_w * co))
    return jnp.concatenate(mats, axis=0)


def _pack_conv1x1(ws, width_w):
    """(Cin, Cout) -> block-diagonal (W*Cin, W*Cout)."""
    ci, co = ws.shape
    eye = jnp.eye(width_w, dtype=ws.dtype)
    return jnp.einsum("pq,io->piqo", eye, ws).reshape(width_w * ci,
                                                      width_w * co)


def pack_nrb_params(block_params, width_w):
    """Pack all blocks' weights once.  Returns (A1fused, A2, B)."""
    a1f, a2, bias = [], [], []
    for p in block_params:
        conv1 = _pack_conv3x3(p["w1"], width_w)          # (3*W*Cin, W*Cout)
        skip = _pack_conv1x1(p["ws"], width_w)           # (W*Cin,   W*Cout)
        wcin, wcout = skip.shape
        lifted = jnp.zeros((3 * wcin, wcout), conv1.dtype)
        lifted = lifted.at[wcin:2 * wcin].set(skip)      # middle K block only
        a1f.append(jnp.concatenate([conv1, lifted], axis=1))
        a2.append(_pack_conv3x3(p["w2"], width_w))
        bias.append(jnp.stack([jnp.tile(p["b1"].reshape(-1), width_w),
                               jnp.tile(p["b2"].reshape(-1), width_w),
                               jnp.tile(p["bs"].reshape(-1), width_w)]))
    return jnp.stack(a1f), jnp.stack(a2), jnp.stack(bias)


# --------------------------------------------------------------------------
# NRB forward
# --------------------------------------------------------------------------
def _choose_batch_block(n_batch, img_h, *, target_m=256, min_grid=2):
    """Largest divisor bn of n_batch with bn*img_h <= target_m, preferring to
    keep >= min_grid grid steps (v7x has 2 TensorCores)."""
    divisors = [d for d in range(1, n_batch + 1) if n_batch % d == 0]
    ok = [d for d in divisors if d * img_h <= target_m]
    if not ok:
        return 1
    pref = [d for d in ok if n_batch // d >= min_grid]
    return max(pref) if pref else max(ok)


def nrb_forward(x, packed, relu_slope, *, batch_block=None):
    """NRB forward. x: (N, H, W, Cin) NHWC -> (N, H, W, Cout)."""
    N, H, W, Cin = x.shape
    a1f, a2, bias = packed
    n = a1f.shape[0]
    WCin = W * Cin
    WCout = a2.shape[-1]
    Cout = WCout // W
    assert a1f.shape == (n, 3 * WCin, 2 * WCout)

    bn = batch_block if batch_block is not None else _choose_batch_block(N, H)
    assert N % bn == 0, "batch must be divisible by batch_block"

    x2 = x.reshape(N, H, WCin)           # lane-dense rows (free reshape)

    kernel = functools.partial(_nrb_kernel, n_blocks=n, img_h=H,
                               wcout=WCout, slope=float(relu_slope))

    def weight_spec(shape):
        # Constant index_map + single buffering: fetched once, no wasted VMEM.
        return pl.BlockSpec(shape, lambda i: (0, 0, 0),
                            pipeline_mode=pl.Buffered(1))

    out = pl.pallas_call(
        kernel,
        out_shape=jax.ShapeDtypeStruct((N, H, WCout), jnp.float32),
        grid_spec=pltpu.PrefetchScalarGridSpec(
            num_scalar_prefetch=0,
            grid=(N // bn,),
            in_specs=[
                # x/out keep the default double-buffering: per-step HBM
                # traffic is tiny and already hidden.
                pl.BlockSpec((bn, H, WCin), lambda i: (i, 0, 0)),
                weight_spec((n, 3 * WCin, 2 * WCout)),
                weight_spec((n, 3 * WCout, WCout)),
                weight_spec((n, 3, WCout)),
            ],
            out_specs=pl.BlockSpec((bn, H, WCout), lambda i: (i, 0, 0)),
        ),
        compiler_params=pltpu.CompilerParams(
            # Independent batch steps -> shard across the 2 TCs on v7x;
            # harmless on v5e/v6e.  Working set (~2 MiB) fits every VMEM.
            dimension_semantics=("parallel",)),
    )(x2, a1f, a2, bias)

    return out.reshape(N, H, W, Cout)


# ------------------------- parameter init (deterministic) ----------------
def init_rb_params(key, in_size, out_size):
    ks = jax.random.split(key, 6)

    def u(k, shape, fan_in):
        bound = 1.0 / jnp.sqrt(fan_in)
        return jax.random.uniform(k, shape, jnp.float32, -bound, bound)

    return {
        "w1": u(ks[0], (3, 3, in_size, out_size), 9 * in_size),
        "b1": u(ks[1], (1, out_size), 9 * in_size),
        "w2": u(ks[2], (3, 3, out_size, out_size), 9 * out_size),
        "b2": u(ks[3], (1, out_size), 9 * out_size),
        "ws": u(ks[4], (in_size, out_size), in_size),
        "bs": u(ks[5], (1, out_size), in_size),
    }


# ------------------------- pure-JAX reference -----------------------------
def _ref_rb(x, p, slope):
    def conv(inp, w, b, pad):
        y = lax.conv_general_dilated(
            inp, w, (1, 1), [(pad, pad), (pad, pad)],
            dimension_numbers=("NHWC", "HWIO", "NHWC"))
        return y + b.reshape(1, 1, 1, -1)

    def lrelu(y):
        return jnp.where(y > 0, y, slope * y)

    c0 = conv(x, p["ws"].reshape(1, 1, *p["ws"].shape), p["bs"], 0)
    y = lrelu(conv(x, p["w1"], p["b1"], 1))
    y = lrelu(conv(y, p["w2"], p["b2"], 1))
    return y + c0


def _ref_nrb(x, block_params, slope):
    for p in block_params:
        x = _ref_rb(x, p, slope)
    return x


if __name__ == "__main__":
    # NRB(n=2, in_size=8, out_size=8, relu_slope=0.2); NHWC input.
    # N=16 so batch_block auto-picks 8 -> M = 8*16 = 128 rows per matmul and
    # grid = 2 (both v7x TensorCores busy).
    n_blocks, C, H, W, N = 2, 8, 16, 16, 16
    relu_slope = 0.2

    key = jax.random.PRNGKey(0)
    k_x, k_p = jax.random.split(key)
    x = jax.random.normal(k_x, (N, H, W, C), jnp.float32)   # NHWC

    block_keys = jax.random.split(k_p, n_blocks)
    block_params = [init_rb_params(block_keys[i], C, C)
                    for i in range(n_blocks)]

    packed = pack_nrb_params(block_params, W)   # one-time layout plumbing
    out = nrb_forward(x, packed, relu_slope)
    out = jax.block_until_ready(out)

    ref = _ref_nrb(x, block_params, relu_slope)
    assert out.shape == (N, H, W, C)
    assert jnp.allclose(out, ref, atol=2e-4, rtol=2e-4), "mismatch vs reference"

    print("KERNEL_OK")
</pallas_src>

<mosaic_0001>
module attributes {stable_mosaic.version = 11 : i64} {
  func.func @_nrb_kernel(%arg0: i32, %arg1: memref<8x16x128xf32, #tpu.memory_space<vmem>>, %arg2: memref<2x384x256xf32, #tpu.memory_space<vmem>>, %arg3: memref<2x384x128xf32, #tpu.memory_space<vmem>>, %arg4: memref<2x3x128xf32, #tpu.memory_space<vmem>>, %arg5: memref<8x16x128xf32, #tpu.memory_space<vmem>>) attributes {dimension_semantics = [#tpu.dimension_semantics<parallel>], iteration_bounds = array<i64: 2>, scalar_prefetch = 0 : i64, scratch_operands = 0 : i64, tpu.core_type = #tpu.core_type<tc>, window_params = [{transform_indices = @transform_0, window_bounds = array<i64: 8, 16, 128>}, {pipeline_mode = #tpu.pipeline_mode<synchronous>, transform_indices = @transform_1, window_bounds = array<i64: 2, 384, 256>}, {pipeline_mode = #tpu.pipeline_mode<synchronous>, transform_indices = @transform_2, window_bounds = array<i64: 2, 384, 128>}, {pipeline_mode = #tpu.pipeline_mode<synchronous>, transform_indices = @transform_3, window_bounds = array<i64: 2, 3, 128>}, {transform_indices = @transform_4, window_bounds = array<i64: 8, 16, 128>}]} {
    %c0 = arith.constant 0 : index
    %c0_0 = arith.constant 0 : index
    %c0_1 = arith.constant 0 : index
    %0 = vector.load %arg1[%c0, %c0_0, %c0_1] : memref<8x16x128xf32, #tpu.memory_space<vmem>>, vector<8x16x128xf32>
    %1 = vector.shape_cast %0 : vector<8x16x128xf32> to vector<128x128xf32>
    %c0_2 = arith.constant 0 : index
    %c0_3 = arith.constant 0 : index
    %c0_4 = arith.constant 0 : index
    %2 = vector.load %arg4[%c0_2, %c0_3, %c0_4] : memref<2x3x128xf32, #tpu.memory_space<vmem>>, vector<1x3x128xf32>
    %3 = vector.shape_cast %2 : vector<1x3x128xf32> to vector<3x128xf32>
    %4 = tpu.iota {dimensions = array<i32: 0>} : vector<128x128xi32>
    %c16_i32 = arith.constant 16 : i32
    %c0_i32 = arith.constant 0 : i32
    %5 = arith.cmpi eq, %c16_i32, %c0_i32 : i32
    %c1_i32 = arith.constant 1 : i32
    %6 = arith.select %5, %c1_i32, %c16_i32 : i32
    %7 = vector.broadcast %6 : i32 to vector<128x128xi32>
    %8 = arith.remsi %4, %7 : vector<128x128xi32>
    %c0_i32_5 = arith.constant 0 : i32
    %9 = vector.broadcast %c0_i32_5 : i32 to vector<128x128xi32>
    %10 = arith.cmpi ne, %8, %9 : vector<128x128xi32>
    %c0_i32_6 = arith.constant 0 : i32
    %11 = vector.broadcast %c0_i32_6 : i32 to vector<128x128xi32>
    %12 = arith.cmpi slt, %8, %11 : vector<128x128xi32>
    %c0_i32_7 = arith.constant 0 : i32
    %13 = arith.cmpi slt, %6, %c0_i32_7 : i32
    %14 = vector.broadcast %13 : i1 to vector<128x128xi1>
    %15 = vector.broadcast %14 : vector<128x128xi1> to vector<128x128xi1>
    %16 = arith.xori %12, %15 : vector<128x128xi1>
    %17 = arith.andi %16, %10 : vector<128x128xi1>
    %18 = vector.broadcast %6 : i32 to vector<128x128xi32>
    %19 = arith.addi %8, %18 : vector<128x128xi32>
    %20 = arith.select %17, %19, %8 : vector<128x128xi1>, vector<128x128xi32>
    %c0_i32_8 = arith.constant 0 : i32
    %21 = vector.broadcast %c0_i32_8 : i32 to vector<128x128xi32>
    %22 = arith.cmpi eq, %20, %21 : vector<128x128xi32>
    %c15_i32 = arith.constant 15 : i32
    %23 = vector.broadcast %c15_i32 : i32 to vector<128x128xi32>
    %24 = arith.cmpi eq, %20, %23 : vector<128x128xi32>
    %c1_i32_9 = arith.constant 1 : i32
    %25 = tpu.dynamic_rotate %1 by %c1_i32_9 dim 0 : vector<128x128xf32>, i32 -> vector<128x128xf32>
    %cst = arith.constant 0.000000e+00 : f32
    %26 = vector.broadcast %cst : f32 to vector<128x128xf32>
    %27 = arith.select %22, %26, %25 : vector<128x128xi1>, vector<128x128xf32>
    %c127_i32 = arith.constant 127 : i32
    %28 = tpu.dynamic_rotate %1 by %c127_i32 dim 0 : vector<128x128xf32>, i32 -> vector<128x128xf32>
    %cst_10 = arith.constant 0.000000e+00 : f32
    %29 = vector.broadcast %cst_10 : f32 to vector<128x128xf32>
    %30 = arith.select %24, %29, %28 : vector<128x128xi1>, vector<128x128xf32>
    %31 = tpu.concatenate %27, %1, %30 in 1 : vector<128x128xf32>, vector<128x128xf32>, vector<128x128xf32> -> vector<128x384xf32>
    %c0_11 = arith.constant 0 : index
    %c0_12 = arith.constant 0 : index
    %c0_13 = arith.constant 0 : index
    %32 = vector.load %arg2[%c0_11, %c0_12, %c0_13] : memref<2x384x256xf32, #tpu.memory_space<vmem>>, vector<1x384x256xf32>
    %33 = vector.shape_cast %32 : vector<1x384x256xf32> to vector<384x256xf32>
    %cst_14 = arith.constant dense<0.000000e+00> : vector<128x256xf32>
    %34 = tpu.matmul %31, %33, %cst_14 {dimension_numbers = #tpu.dot_dimension_numbers<[1], [0], [0], [1], [0, 0, 1, 1], [], []>} : vector<128x384xf32>, vector<384x256xf32>, vector<128x256xf32> -> vector<128x256xf32>
    %35 = vector.extract_strided_slice %34 {offsets = [0, 128], sizes = [128, 128], strides = [1, 1]} : vector<128x256xf32> to vector<128x128xf32>
    %36 = vector.extract_strided_slice %3 {offsets = [2, 0], sizes = [1, 128], strides = [1, 1]} : vector<3x128xf32> to vector<1x128xf32>
    %37 = vector.broadcast %36 : vector<1x128xf32> to vector<128x128xf32>
    %38 = arith.addf %35, %37 : vector<128x128xf32>
    %39 = vector.extract_strided_slice %34 {offsets = [0, 0], sizes = [128, 128], strides = [1, 1]} : vector<128x256xf32> to vector<128x128xf32>
    %40 = vector.extract_strided_slice %3 {offsets = [0, 0], sizes = [1, 128], strides = [1, 1]} : vector<3x128xf32> to vector<1x128xf32>
    %41 = vector.broadcast %40 : vector<1x128xf32> to vector<128x128xf32>
    %42 = arith.addf %39, %41 : vector<128x128xf32>
    %cst_15 = arith.constant 0.000000e+00 : f32
    %43 = vector.broadcast %cst_15 : f32 to vector<128x128xf32>
    %44 = arith.cmpf ogt, %42, %43 : vector<128x128xf32>
    %cst_16 = arith.constant 2.000000e-01 : f32
    %45 = vector.broadcast %cst_16 : f32 to vector<128x128xf32>
    %46 = arith.mulf %45, %42 : vector<128x128xf32>
    %47 = arith.select %44, %42, %46 : vector<128x128xi1>, vector<128x128xf32>
    %c1_i32_17 = arith.constant 1 : i32
    %48 = tpu.dynamic_rotate %47 by %c1_i32_17 dim 0 : vector<128x128xf32>, i32 -> vector<128x128xf32>
    %cst_18 = arith.constant 0.000000e+00 : f32
    %49 = vector.broadcast %cst_18 : f32 to vector<128x128xf32>
    %50 = arith.select %22, %49, %48 : vector<128x128xi1>, vector<128x128xf32>
    %c127_i32_19 = arith.constant 127 : i32
    %51 = tpu.dynamic_rotate %47 by %c127_i32_19 dim 0 : vector<128x128xf32>, i32 -> vector<128x128xf32>
    %cst_20 = arith.constant 0.000000e+00 : f32
    %52 = vector.broadcast %cst_20 : f32 to vector<128x128xf32>
    %53 = arith.select %24, %52, %51 : vector<128x128xi1>, vector<128x128xf32>
    %54 = tpu.concatenate %50, %47, %53 in 1 : vector<128x128xf32>, vector<128x128xf32>, vector<128x128xf32> -> vector<128x384xf32>
    %c0_21 = arith.constant 0 : index
    %c0_22 = arith.constant 0 : index
    %c0_23 = arith.constant 0 : index
    %55 = vector.load %arg3[%c0_21, %c0_22, %c0_23] : memref<2x384x128xf32, #tpu.memory_space<vmem>>, vector<1x384x128xf32>
    %56 = vector.shape_cast %55 : vector<1x384x128xf32> to vector<384x128xf32>
    %cst_24 = arith.constant dense<0.000000e+00> : vector<128x128xf32>
    %57 = tpu.matmul %54, %56, %cst_24 {dimension_numbers = #tpu.dot_dimension_numbers<[1], [0], [0], [1], [0, 0, 1, 1], [], []>} : vector<128x384xf32>, vector<384x128xf32>, vector<128x128xf32> -> vector<128x128xf32>
    %58 = vector.extract_strided_slice %3 {offsets = [1, 0], sizes = [1, 128], strides = [1, 1]} : vector<3x128xf32> to vector<1x128xf32>
    %59 = vector.broadcast %58 : vector<1x128xf32> to vector<128x128xf32>
    %60 = arith.addf %57, %59 : vector<128x128xf32>
    %cst_25 = arith.constant 0.000000e+00 : f32
    %61 = vector.broadcast %cst_25 : f32 to vector<128x128xf32>
    %62 = arith.cmpf ogt, %60, %61 : vector<128x128xf32>
    %cst_26 = arith.constant 2.000000e-01 : f32
    %63 = vector.broadcast %cst_26 : f32 to vector<128x128xf32>
    %64 = arith.mulf %63, %60 : vector<128x128xf32>
    %65 = arith.select %62, %60, %64 : vector<128x128xi1>, vector<128x128xf32>
    %66 = arith.addf %65, %38 : vector<128x128xf32>
    %c1 = arith.constant 1 : index
    %c0_27 = arith.constant 0 : index
    %c0_28 = arith.constant 0 : index
    %67 = vector.load %arg4[%c1, %c0_27, %c0_28] : memref<2x3x128xf32, #tpu.memory_space<vmem>>, vector<1x3x128xf32>
    %68 = vector.shape_cast %67 : vector<1x3x128xf32> to vector<3x128xf32>
    %c1_i32_29 = arith.constant 1 : i32
    %69 = tpu.dynamic_rotate %66 by %c1_i32_29 dim 0 : vector<128x128xf32>, i32 -> vector<128x128xf32>
    %cst_30 = arith.constant 0.000000e+00 : f32
    %70 = vector.broadcast %cst_30 : f32 to vector<128x128xf32>
    %71 = arith.select %22, %70, %69 : vector<128x128xi1>, vector<128x128xf32>
    %c127_i32_31 = arith.constant 127 : i32
    %72 = tpu.dynamic_rotate %66 by %c127_i32_31 dim 0 : vector<128x128xf32>, i32 -> vector<128x128xf32>
    %cst_32 = arith.constant 0.000000e+00 : f32
    %73 = vector.broadcast %cst_32 : f32 to vector<128x128xf32>
    %74 = arith.select %24, %73, %72 : vector<128x128xi1>, vector<128x128xf32>
    %75 = tpu.concatenate %71, %66, %74 in 1 : vector<128x128xf32>, vector<128x128xf32>, vector<128x128xf32> -> vector<128x384xf32>
    %c1_33 = arith.constant 1 : index
    %c0_34 = arith.constant 0 : index
    %c0_35 = arith.constant 0 : index
    %76 = vector.load %arg2[%c1_33, %c0_34, %c0_35] : memref<2x384x256xf32, #tpu.memory_space<vmem>>, vector<1x384x256xf32>
    %77 = vector.shape_cast %76 : vector<1x384x256xf32> to vector<384x256xf32>
    %cst_36 = arith.constant dense<0.000000e+00> : vector<128x256xf32>
    %78 = tpu.matmul %75, %77, %cst_36 {dimension_numbers = #tpu.dot_dimension_numbers<[1], [0], [0], [1], [0, 0, 1, 1], [], []>} : vector<128x384xf32>, vector<384x256xf32>, vector<128x256xf32> -> vector<128x256xf32>
    %79 = vector.extract_strided_slice %78 {offsets = [0, 128], sizes = [128, 128], strides = [1, 1]} : vector<128x256xf32> to vector<128x128xf32>
    %80 = vector.extract_strided_slice %68 {offsets = [2, 0], sizes = [1, 128], strides = [1, 1]} : vector<3x128xf32> to vector<1x128xf32>
    %81 = vector.broadcast %80 : vector<1x128xf32> to vector<128x128xf32>
    %82 = arith.addf %79, %81 : vector<128x128xf32>
    %83 = vector.extract_strided_slice %78 {offsets = [0, 0], sizes = [128, 128], strides = [1, 1]} : vector<128x256xf32> to vector<128x128xf32>
    %84 = vector.extract_strided_slice %68 {offsets = [0, 0], sizes = [1, 128], strides = [1, 1]} : vector<3x128xf32> to vector<1x128xf32>
    %85 = vector.broadcast %84 : vector<1x128xf32> to vector<128x128xf32>
    %86 = arith.addf %83, %85 : vector<128x128xf32>
    %cst_37 = arith.constant 0.000000e+00 : f32
    %87 = vector.broadcast %cst_37 : f32 to vector<128x128xf32>
    %88 = arith.cmpf ogt, %86, %87 : vector<128x128xf32>
    %cst_38 = arith.constant 2.000000e-01 : f32
    %89 = vector.broadcast %cst_38 : f32 to vector<128x128xf32>
    %90 = arith.mulf %89, %86 : vector<128x128xf32>
    %91 = arith.select %88, %86, %90 : vector<128x128xi1>, vector<128x128xf32>
    %c1_i32_39 = arith.constant 1 : i32
    %92 = tpu.dynamic_rotate %91 by %c1_i32_39 dim 0 : vector<128x128xf32>, i32 -> vector<128x128xf32>
    %cst_40 = arith.constant 0.000000e+00 : f32
    %93 = vector.broadcast %cst_40 : f32 to vector<128x128xf32>
    %94 = arith.select %22, %93, %92 : vector<128x128xi1>, vector<128x128xf32>
    %c127_i32_41 = arith.constant 127 : i32
    %95 = tpu.dynamic_rotate %91 by %c127_i32_41 dim 0 : vector<128x128xf32>, i32 -> vector<128x128xf32>
    %cst_42 = arith.constant 0.000000e+00 : f32
    %96 = vector.broadcast %cst_42 : f32 to vector<128x128xf32>
    %97 = arith.select %24, %96, %95 : vector<128x128xi1>, vector<128x128xf32>
    %98 = tpu.concatenate %94, %91, %97 in 1 : vector<128x128xf32>, vector<128x128xf32>, vector<128x128xf32> -> vector<128x384xf32>
    %c1_43 = arith.constant 1 : index
    %c0_44 = arith.constant 0 : index
    %c0_45 = arith.constant 0 : index
    %99 = vector.load %arg3[%c1_43, %c0_44, %c0_45] : memref<2x384x128xf32, #tpu.memory_space<vmem>>, vector<1x384x128xf32>
    %100 = vector.shape_cast %99 : vector<1x384x128xf32> to vector<384x128xf32>
    %cst_46 = arith.constant dense<0.000000e+00> : vector<128x128xf32>
    %101 = tpu.matmul %98, %100, %cst_46 {dimension_numbers = #tpu.dot_dimension_numbers<[1], [0], [0], [1], [0, 0, 1, 1], [], []>} : vector<128x384xf32>, vector<384x128xf32>, vector<128x128xf32> -> vector<128x128xf32>
    %102 = vector.extract_strided_slice %68 {offsets = [1, 0], sizes = [1, 128], strides = [1, 1]} : vector<3x128xf32> to vector<1x128xf32>
    %103 = vector.broadcast %102 : vector<1x128xf32> to vector<128x128xf32>
    %104 = arith.addf %101, %103 : vector<128x128xf32>
    %cst_47 = arith.constant 0.000000e+00 : f32
    %105 = vector.broadcast %cst_47 : f32 to vector<128x128xf32>
    %106 = arith.cmpf ogt, %104, %105 : vector<128x128xf32>
    %cst_48 = arith.constant 2.000000e-01 : f32
    %107 = vector.broadcast %cst_48 : f32 to vector<128x128xf32>
    %108 = arith.mulf %107, %104 : vector<128x128xf32>
    %109 = arith.select %106, %104, %108 : vector<128x128xi1>, vector<128x128xf32>
    %110 = arith.addf %109, %82 : vector<128x128xf32>
    %111 = vector.shape_cast %110 : vector<128x128xf32> to vector<8x16x128xf32>
    %c0_49 = arith.constant 0 : index
    %c0_50 = arith.constant 0 : index
    %c0_51 = arith.constant 0 : index
    %112 = vector.load %arg5[%c0_49, %c0_50, %c0_51] : memref<8x16x128xf32, #tpu.memory_space<vmem>>, vector<8x16x128xf32>
    tpu.vector_store %arg5[%c0_49, %c0_50, %c0_51], %111 {strides = array<i32>} : memref<8x16x128xf32, #tpu.memory_space<vmem>>, vector<8x16x128xf32>,
    return
  }
  func.func @transform_0(%arg0: i32) -> (i32, i32, i32) {
    %c0_i32 = arith.constant 0 : i32
    %c0_i32_0 = arith.constant 0 : i32
    %c0_i32_1 = arith.constant 0 : i32
    return %arg0, %c0_i32, %c0_i32_0 : i32, i32, i32
  }
  func.func @transform_1(%arg0: i32) -> (i32, i32, i32) {
    %c0_i32 = arith.constant 0 : i32
    %c0_i32_0 = arith.constant 0 : i32
    %c0_i32_1 = arith.constant 0 : i32
    %c0_i32_2 = arith.constant 0 : i32
    return %c0_i32, %c0_i32_0, %c0_i32_1 : i32, i32, i32
  }
  func.func @transform_2(%arg0: i32) -> (i32, i32, i32) {
    %c0_i32 = arith.constant 0 : i32
    %c0_i32_0 = arith.constant 0 : i32
    %c0_i32_1 = arith.constant 0 : i32
    %c0_i32_2 = arith.constant 0 : i32
    return %c0_i32, %c0_i32_0, %c0_i32_1 : i32, i32, i32
  }
  func.func @transform_3(%arg0: i32) -> (i32, i32, i32) {
    %c0_i32 = arith.constant 0 : i32
    %c0_i32_0 = arith.constant 0 : i32
    %c0_i32_1 = arith.constant 0 : i32
    %c0_i32_2 = arith.constant 0 : i32
    return %c0_i32, %c0_i32_0, %c0_i32_1 : i32, i32, i32
  }
  func.func @transform_4(%arg0: i32) -> (i32, i32, i32) {
    %c0_i32 = arith.constant 0 : i32
    %c0_i32_0 = arith.constant 0 : i32
    %c0_i32_1 = arith.constant 0 : i32
    return %arg0, %c0_i32, %c0_i32_0 : i32, i32, i32
  }
}

</mosaic_0001>

<bundles_post_ra>
// kernel: tpu_custom_call.1
= control target key start
LH: loop header
LB: loop body
LE: loop exit
PB: predicated region body
PF: predicated region fallthrough
CT: control target
= control target key end

     0   :  { %9 = vsyncpa [#allocation3], 0  ;;  %s5769_s0 = inlined_call_operand.hbm [shape: f32[16,16,128], index: 0, kind: input, shape index: {}]   ;;  %s5770_s1 = inlined_call_operand.hbm [shape: f32[2,384,256], index: 1, kind: input, shape index: {}]   ;;  %s5771_s2 = inlined_call_operand.hbm [shape: f32[2,384,128], index: 2, kind: input, shape index: {}]   ;;  %s5772_s3 = inlined_call_operand.vmem [shape: f32[2,3,128], index: 3, kind: input, shape index: {}]   ;;  %s5773_s4 = inlined_call_operand.hbm [shape: f32[16,16,128], index: 4, kind: output, shape index: {}]  }
   0x1   :  { %11 = vsyncpa [#allocation3 + $0x1], 0 }
   0x2   :  { %12 = vsyncpa [#allocation6], 0 }
   0x3   :  { %13 = vsyncpa [#allocation4], 0 }
   0x4   :  { %15 = vsyncpa [#allocation4 + $0x1], 0  ;;  %s4000_s15 = smov 0   ;;  %s4002_s16 = smov 0  }
   0x5   :  { %s4004_s17 = smov 0   ;;  %s4006_s18 = smov 0  }
   0x6 LB: > { %s4021_s19 = sadd.s32 4294967295, %s3962_s18   ;;  %s2843_s20 = sadd.s32 4294967294, %s3962_s18   ;;  %s3962_s18 = sphi %s4006_s18, %s6068_s18   ;;  %s3958_s17 = sphi %s4004_s17, %s6067_s17   ;;  %s3954_s16 = sphi %s4002_s16, %s6066_s16   ;;  %s3950_s15 = sphi %s4000_s15, %s6065_s15  }
   0x7   : > { %p41_p0 = scmp.ne.s32.totalorder %s3954_s16, %s3950_s15  ;;  %p5774_p1 = scmp.eq.s32.totalorder %s4021_s19, 0 }
   0x8   : > { %p134_p3 = scmp.eq.s32.totalorder %s2843_s20, 1  ;;  %p2844_p5 = scmp.ge.s32.totalorder %s3962_s18, 1 }
   0x9   : > { %p4030_p4 = por %p5774_p1, %p41_p0  ;;  %p141_p7 = scmp.lt.s32.totalorder %s3962_s18, 3 }
   0xa   : > { %p4035_p6 = por %p134_p3, %p41_p0  ;;  %s3964_s24 = smov [#allocation5]  }
   0xb   : > { %s5821_s21 = scalar_select %p4030_p4, 1, 0 }
   0xc   : > { %s5822_s22 = scalar_select %p4035_p6, 1, 0 }
   0xd   : > { %p4040_p8 = pnand %p2844_p5, %p141_p7  ;;  %s153_s25 = sshll.u32 %s3964_s24, 4  ;;  %s4044_s25 = int_to_ptr.vmem [resolvable:$true] %s153_s25 }
   0xe   : > { %s3965_s27 = smov [#allocation7]   ;;  %s3806_s5 = scalar_lea.hbm %s5770_s1, 24576 }
   0xf   : > { %p3744_p9 = pneg %p4040_p8  ;;  %s166_s28 = sshll.u32 %s3965_s27, 4  ;;  %s4055_s28 = int_to_ptr.vmem [resolvable:$true] %s166_s28 }
  0x10   : > { %p3807_p12 = scmp.ne.s32.totalorder %s5770_s1, %s3806_s5  ;;  %p3813_p5 = scmp.lt.u32.totalorder %s3806_s5, %s5770_s1 }
  0x11   : > { %p4051_p11 = pnand %p3744_p9, %p5774_p1 }
  0x13   : > { %p3808_p13 = pneg %p4051_p11 }
  0x15   : > { %p3809_p0 = pnand %p3808_p13, %p3807_p12 }
  0x17   : > { %p3810_p3 = pneg %p3809_p0 }
  0x19   : > { %p3815_p7 = pnand %p3813_p5, %p3810_p3 }
  0x1b   : > { %3818 = shalt.err (!%p3815_p7)
}
  0x1c   : > { %s3819_s10 = scalar_lea.vmem %s4044_s25, 24576  ;;  %p3827_p2 = scmp.lt.s32.totalorder %s4044_s25, %s4044_s25 }
  0x1d   : > { %p3820_p9 = scmp.ne.s32.totalorder %s4044_s25, %s3819_s10  ;;  %p3828_p12 = scmp.lt.s32.totalorder %s3819_s10, %s3819_s10 }
  0x1f   : > { %p3822_p10 = pnand %p3820_p9, %p3808_p13  ;;  %p3829_p0 = por %p3828_p12, %p3827_p2 }
  0x21   : > { %p3823_p1 = pneg %p3822_p10 }
  0x23   : > { %p3830_p6 = pnand %p3829_p0, %p3823_p1 }
  0x25   : > { %3833 = shalt.err (!%p3830_p6)
}
  0x26   : > { %s3966_s11 = smov 256   ;;  %s3967_s12 = smov 16  }
  0x27   : > { %3747 = dma.hbm_to_vmem [thread:$0]  (!%p4051_p11), %s5770_s1, 24576, %s4044_s25, [#allocation6], %s3966_s11, %s3966_s11, %s3967_s12  }
  0x28   : > { %s3834_s27 = scalar_lea.hbm %s5771_s2, 12288 }
  0x29   : > { %p3835_p2 = scmp.ne.s32.totalorder %s5771_s2, %s3834_s27  ;;  %p3841_p10 = scmp.lt.u32.totalorder %s3834_s27, %s5771_s2 }
  0x2b   : > { %p3837_p1 = pnand %p3835_p2, %p3808_p13 }
  0x2d   : > { %p3838_p6 = pneg %p3837_p1 }
  0x2f   : > { %p3843_p3 = pnand %p3841_p10, %p3838_p6 }
  0x31   : > { %3846 = shalt.err (!%p3843_p3)
}
  0x32   : > { %s3847_s25 = scalar_lea.vmem %s4055_s28, 12288  ;;  %p3855_p12 = scmp.lt.s32.totalorder %s4055_s28, %s4055_s28 }
  0x33   : > { %p3848_p5 = scmp.ne.s32.totalorder %s4055_s28, %s3847_s25  ;;  %p3856_p0 = scmp.lt.s32.totalorder %s3847_s25, %s3847_s25 }
  0x35   : > { %p3850_p7 = pnand %p3848_p5, %p3808_p13  ;;  %p3857_p2 = por %p3856_p0, %p3855_p12 }
  0x37   : > { %p3851_p9 = pneg %p3850_p7 }
  0x39   : > { %p3858_p1 = pnand %p3857_p2, %p3851_p9 }
  0x3b   : > { %3861 = shalt.err (!%p3858_p1)
}
  0x3c   : > { %s3968_s7 = smov 128   ;;  %s3969_s8 = smov 8  }
  0x3d   : > { %3750 = dma.hbm_to_vmem [thread:$0]  (!%p4051_p11), %s5771_s2, 12288, %s4055_s28, [#allocation6], %s3968_s7, %s3968_s7, %s3969_s8  }
  0x3e   : > { %s4113_s11 = sadd.s32 1, %s3962_s18   ;;  %s28_s13 = sadd.s32 1, %s3958_s17 }
  0x3f   : > { %s25_s12 = ssub.s32 %s3962_s18, %s4113_s11  ;;  %p35_p6 = scmp.ne.s32.totalorder %s3958_s17, %s3954_s16 }
  0x40   : > { %p26_p13 = scmp.eq.s32.totalorder %s25_s12, 0  ;;  %p36_p10 = scmp.eq.s32.totalorder %s3962_s18, 0 }
  0x41   : > { %p5825_p5 = scmp.eq.s32.totalorder %s4021_s19, 1  ;;  %p3761_p9 = scmp.lt.s32.totalorder %s3962_s18, 2 }
  0x42   : > { %s4122_s14 = scalar_select %p26_p13, %s3958_s17, %s28_s13  }
  0x43   : > { %p37_p3 = por %p36_p10, %p35_p6  ;;  %p4126_p7 = por %p5825_p5, %p35_p6 }
  0x44   : > { %s183_s20 = sand.u32 1, %s3958_s17   ;;  %s2993_s28 = sshll.u32 %s3962_s18, 11 }
  0x45   : > { %s5826_s26 = scalar_select %p4126_p7, 1, 0 }
  0x46   : > { %s2848_s24 = sshll.u32 %s183_s20, 7  ;;  %s4136_s30 = scalar_lea.hbm %s5769_s0, %s2993_s28 }
  0x47   : > { %s187_s5 = scalar_lea.vmem [#allocation2], %s2848_s24  ;;  %p4140_p11 = pnand %p3761_p9, %p37_p3 }
  0x48   : > { %s195_s6 = sshll.u32 %s187_s5, 4  ;;  %s4144_s9 = scalar_lea.sflag [#allocation3], %s183_s20  ;;  %s4138_s6 = int_to_ptr.vmem [resolvable:$true] %s195_s6 }
  0x49   : > { %s3862_s10 = scalar_lea.hbm %s4136_s30, 2048  ;;  %p3864_p0 = pneg %p4140_p11 }
  0x4a   : > { %p3863_p12 = scmp.ne.s32.totalorder %s4136_s30, %s3862_s10  ;;  %s3867_s24 = scalar_lea.hbm %s5769_s0, 4096 }
  0x4b   : > { %p3868_p13 = scmp.lt.u32.totalorder %s4136_s30, %s5769_s0  ;;  %p3869_p6 = scmp.lt.u32.totalorder %s3867_s24, %s3862_s10 }
  0x4c   : > { %p3865_p2 = pnand %p3864_p0, %p3863_p12  ;;  %p3871_p3 = scmp.lt.u32.totalorder %s3862_s10, %s4136_s30 }
  0x4d   : > { %p3870_p10 = por %p3869_p6, %p3868_p13 }
  0x4e   : > { %p3866_p1 = pneg %p3865_p2 }
  0x4f   : > { %p3872_p5 = por %p3871_p3, %p3870_p10 }
  0x51   : > { %p3873_p9 = pnand %p3872_p5, %p3866_p1 }
  0x53   : > { %3876 = shalt.err (!%p3873_p9)
}
  0x54   : > { %s3877_s20 = scalar_lea.vmem %s4138_s6, 2048  ;;  %s3970_s29 = smov [#allocation2]  }
  0x55   : > { %p3878_p12 = scmp.ne.s32.totalorder %s4138_s6, %s3877_s20  ;;  %s3882_s5 = sshll.u32 %s3970_s29, 4  ;;  %s3883_s5 = int_to_ptr.vmem [resolvable:$false] %s3882_s5 }
  0x56   : > { %s3884_s12 = scalar_lea.vmem %s3883_s5, 4096  ;;  %p3885_p4 = scmp.lt.s32.totalorder %s4138_s6, %s3883_s5 }
  0x57   : > { %p3880_p2 = pnand %p3878_p12, %p3864_p0  ;;  %p3886_p13 = scmp.lt.s32.totalorder %s3884_s12, %s3877_s20 }
  0x59   : > { %p3881_p7 = pneg %p3880_p2  ;;  %p3887_p6 = por %p3886_p13, %p3885_p4 }
  0x5b   : > { %p3888_p10 = pnand %p3887_p6, %p3881_p7 }
  0x5d   : > { %3891 = shalt.err (!%p3888_p10)
}
  0x5e   : > { %3754 = dma.hbm_to_vmem [thread:$0]  (!%p4140_p11), %s4136_s30, 2048, %s4138_s6, %s4144_s9, %s3968_s7, %s3968_s7, %s3969_s8  }
  0x5f   : > { %207 = sbr.rel (%p4040_p8) target bundleno = 1508 (0x5e4), region = 36 }
  0x66   : > { %s4178_s10 = sand.u32 1, %s3954_s16   ;;  %p5828_p4 = scmp.ne.s32.totalorder %s5821_s21, 0 }
  0x67   : > { %s2853_s13 = sshll.u32 %s4178_s10, 7  ;;  %s210_s24 = scalar_lea.sflag [#allocation3], %s4178_s10 }
  0x68   : > { %s4184_s25 = scalar_lea.vmem [#allocation2], %s2853_s13 }
  0x69   : > { %3937 = dma.done.wait (%p5828_p4), %s210_s24, 2048  }
  0x6a   : > { %3939 = vsyncadd (%p5828_p4), %s210_s24, 4294965248  ;;  %p5829_p7 = scmp.eq.s32.totalorder %s4021_s19, 0 }
  0x6c   : > { %3941 = dma.done.wait (%p5829_p7), [#allocation6], 36864   ;;  %p5830_p8 = pmov %p5829_p7 }
  0x6d   : > { %v605_v0 = vld [vmem:[#allocation5 + $0x8] sm:$0xff]  ;;  %v607_v1 = vld [vmem:[#allocation5 + $0x18] sm:$0xff]  ;;  %v604_v2 = vld [vmem:[#allocation5] sm:$0xff]  ;;  %s5652_s30 = scalar_lea.vmem [#allocation8], %s2853_s13  ;;  %s2995_s6 = sshll.u32 %s4021_s19, 11 }
  0x6e   : > { %3943 = vsyncadd (%p5830_p8), [#allocation6], 4294930432  ;;  %v3348_v3 = vpack.c.bf16 %v607_v1, %v605_v0  ;;  %v606_v4 = vld [vmem:[#allocation5 + $0x10] sm:$0xff]  ;;  %v609_v5 = vld [vmem:[#allocation5 + $0x28] sm:$0xff]  ;;  %s2751_s9 = sshll.u32 %s5652_s30, 4  ;;  %s5721_s19 = scalar_lea.hbm %s5773_s4, %s2995_s6  ;;  %s5723_s9 = int_to_ptr.vmem [resolvable:$true] %s2751_s9 }
  0x6f   : > { %v611_v6 = vld [vmem:[#allocation5 + $0x38] sm:$0xff]  ;;  %v3350_v7 = vpack.c.bf16 %v606_v4, %v604_v2  ;;  %v608_v9 = vld [vmem:[#allocation5 + $0x20] sm:$0xff]  ;;  %v610_v10 = vld [vmem:[#allocation5 + $0x30] sm:$0xff]  ;;  %s2737_s20 = scalar_lea.sflag [#allocation4], %s4178_s10  ;;  %s3892_s29 = scalar_lea.vmem %s5723_s9, 2048 }
  0x70   : > { %v3352_v8 = vpack.c.bf16 %v611_v6, %v609_v5  ;;  %v613_v11 = vld [vmem:[#allocation5 + $0x48] sm:$0xff]  ;;  %3349 = vmatprep.subr.bf16.mxu0 %v3348_v3  ;;  %v615_v12 = vld [vmem:[#allocation5 + $0x58] sm:$0xff]  ;;  %v3354_v13 = vpack.c.bf16 %v610_v10, %v608_v9  ;;  %v612_v15 = vld [vmem:[#allocation5 + $0x40] sm:$0xff]  ;;  %p3893_p11 = scmp.ne.s32.totalorder %s5723_s9, %s3892_s29  ;;  %p6062_p0 = scmp.ne.s32.totalorder %s5826_s26, 0 }
  0x71   : > { %3351 = vmatpush1.bf16.msra.mxu0 %v3350_v7  ;;  %v3356_v14 = vpack.c.bf16 %v615_v12, %v613_v11  ;;  %v614_v16 = vld [vmem:[#allocation5 + $0x50] sm:$0xff]  ;;  %v617_v17 = vld [vmem:[#allocation5 + $0x68] sm:$0xff]  ;;  %v619_v18 = vld [vmem:[#allocation5 + $0x78] sm:$0xff]  ;;  %s3972_s5 = smov [#allocation8]  }
  0x72   : > { %3353 = vmatprep.subr.bf16.mxu0 %v3352_v8  ;;  %v3358_v19 = vpack.c.bf16 %v614_v16, %v612_v15  ;;  %v3360_v20 = vpack.c.bf16 %v619_v18, %v617_v17  ;;  %v616_v21 = vld [vmem:[#allocation5 + $0x60] sm:$0xff]  ;;  %v618_v22 = vld [vmem:[#allocation5 + $0x70] sm:$0xff]  ;;  %v621_v23 = vld [vmem:[#allocation5 + $0x88] sm:$0xff]  ;;  %p3894_p1 = pnand %p3893_p11, %p6062_p0  ;;  %s3896_s12 = sshll.u32 %s3972_s5, 4  ;;  %s3897_s12 = int_to_ptr.vmem [resolvable:$false] %s3896_s12 }
  0x73   : > { %v623_v24 = vld [vmem:[#allocation5 + $0x98] sm:$0xff]  ;;  %v3362_v25 = vpack.c.bf16 %v618_v22, %v616_v21  ;;  %v620_v27 = vld [vmem:[#allocation5 + $0x80] sm:$0xff]  ;;  %v622_v28 = vld [vmem:[#allocation5 + $0x90] sm:$0xff]  ;;  %s3898_s13 = scalar_lea.vmem %s3897_s12, 4096  ;;  %p3899_p5 = scmp.lt.s32.totalorder %s5723_s9, %s3897_s12 }
  0x74   : > { %v3364_v26 = vpack.c.bf16 %v623_v24, %v621_v23  ;;  %v625_v29 = vld [vmem:[#allocation5 + $0xa8] sm:$0xff]  ;;  %v627_v30 = vld [vmem:[#allocation5 + $0xb8] sm:$0xff]  ;;  %v3366_v31 = vpack.c.bf16 %v622_v28, %v620_v27  ;;  %v624_v33 = vld [vmem:[#allocation5 + $0xa0] sm:$0xff]  ;;  %v265_v23 = vlaneseq  ;;  %p3895_p3 = pneg %p3894_p1  ;;  %p3900_p9 = scmp.lt.s32.totalorder %s3898_s13, %s3892_s29 }
  0x75   : > { %3355 = vmatpush1.bf16.msra.mxu0 %v3354_v13  ;;  %v3368_v32 = vpack.c.bf16 %v627_v30, %v625_v29  ;;  %v626_v34 = vld [vmem:[#allocation5 + $0xb0] sm:$0xff]  ;;  %v629_v35 = vld [vmem:[#allocation5 + $0xc8] sm:$0xff]  ;;  %v631_v36 = vld [vmem:[#allocation5 + $0xd8] sm:$0xff] }
  0x76   : > { %3357 = vmatprep.subr.bf16.mxu0 %v3356_v14  ;;  %v3370_v37 = vpack.c.bf16 %v626_v34, %v624_v33  ;;  %v3372_v38 = vpack.c.bf16 %v631_v36, %v629_v35  ;;  %v628_v39 = vld [vmem:[#allocation5 + $0xc0] sm:$0xff]  ;;  %v630_v40 = vld [vmem:[#allocation5 + $0xd0] sm:$0xff]  ;;  %v633_v42 = vld [vmem:[#allocation5 + $0xe8] sm:$0xff]  ;;  %v4198_v30 = vshrl.u32 %v265_v23, 7  ;;  %p3901_p12 = por %p3900_p9, %p3899_p5 }
  0x77   : > { %v4195_v41 = vld [vmem:[%s4184_s25] sm:$0xff]  ;;  %v635_v43 = vld [vmem:[#allocation5 + $0xf8] sm:$0xff]  ;;  %v3374_v44 = vpack.c.bf16 %v630_v40, %v628_v39  ;;  %v634_v47 = vld [vmem:[#allocation5 + $0xf0] sm:$0xff] }
  0x78   : > { %764 = vmatprep.mubr.f32.mxu0 %v4195_v41  ;;  %v3376_v45 = vpack.c.bf16 %v635_v43, %v633_v42  ;;  %v632_v46 = vld [vmem:[#allocation5 + $0xe0] sm:$0xff]  ;;  %v637_v48 = vld [vmem:[#allocation5 + $0x108] sm:$0xff]  ;;  %v639_v49 = vld [vmem:[#allocation5 + $0x118] sm:$0xff]  ;;  %v286_v39 = vand.u32 15, %v4198_v30  ;;  %vm5777_vm0 = vcmp.lt.s32.totalorder %v4198_v30, 1  ;;  %vm5780_vm9 = vcmp.lt.s32.totalorder %v4198_v30, 7  ;;  %p3902_p2 = pnand %p3901_p12, %p3895_p3 }
  0x79   : > { %3359 = vmatpush1.bf16.msra.mxu0 %v3358_v19  ;;  %v3378_v50 = vpack.c.bf16 %v634_v47, %v632_v46  ;;  %v3380_v51 = vpack.c.bf16 %v639_v49, %v637_v48  ;;  %v636_v52 = vld [vmem:[#allocation5 + $0x100] sm:$0xff]  ;;  %v638_v53 = vld [vmem:[#allocation5 + $0x110] sm:$0xff]  ;;  %v641_v54 = vld [vmem:[#allocation5 + $0x128] sm:$0xff]  ;;  %v268_v48 = vadd.s32 16, %v4198_v30 }
  0x7a   : > { %3361 = vmatprep.subr.bf16.mxu0 %v3360_v20  ;;  %v643_v55 = vld [vmem:[#allocation5 + $0x138] sm:$0xff]  ;;  %v3382_v56 = vpack.c.bf16 %v638_v53, %v636_v52  ;;  %v640_v58 = vld [vmem:[#allocation5 + $0x120] sm:$0xff]  ;;  %v642_v59 = vld [vmem:[#allocation5 + $0x130] sm:$0xff]  ;;  %vm4215_vm1 = vcmp.ne.s32.totalorder %v286_v39, 0 }
  0x7b   : > { %v3384_v57 = vpack.c.bf16 %v643_v55, %v641_v54  ;;  %v645_v60 = vld [vmem:[#allocation5 + $0x148] sm:$0xff]  ;;  %v647_v61 = vld [vmem:[#allocation5 + $0x158] sm:$0xff]  ;;  %v3386_v62 = vpack.c.bf16 %v642_v59, %v640_v58  ;;  %v644_v0 = vld [vmem:[#allocation5 + $0x140] sm:$0xff] }
  0x7c   : > { %v3388_v63 = vpack.c.bf16 %v647_v61, %v645_v60  ;;  %v646_v1 = vld [vmem:[#allocation5 + $0x150] sm:$0xff]  ;;  %v649_v2 = vld [vmem:[#allocation5 + $0x168] sm:$0xff]  ;;  %v651_v3 = vld [vmem:[#allocation5 + $0x178] sm:$0xff]  ;;  %v300_v61 = vand.u32 15, %v268_v48 }
  0x7d   : > { %3363 = vmatpush1.bf16.msra.mxu0 %v3362_v25  ;;  %v3390_v4 = vpack.c.bf16 %v646_v1, %v644_v0  ;;  %v3392_v5 = vpack.c.bf16 %v651_v3, %v649_v2  ;;  %v648_v6 = vld [vmem:[#allocation5 + $0x160] sm:$0xff]  ;;  %v650_v7 = vld [vmem:[#allocation5 + $0x170] sm:$0xff]  ;;  %v653_v8 = vld [vmem:[#allocation5 + $0x188] sm:$0xff] }
  0x7e   : > { %3365 = vmatprep.subr.bf16.mxu0 %v3364_v26  ;;  %v655_v9 = vld [vmem:[#allocation5 + $0x198] sm:$0xff]  ;;  %v3394_v10 = vpack.c.bf16 %v650_v7, %v648_v6  ;;  %v652_v12 = vld [vmem:[#allocation5 + $0x180] sm:$0xff]  ;;  %v654_v13 = vld [vmem:[#allocation5 + $0x190] sm:$0xff]  ;;  %vm4236_vm2 = vcmp.ne.s32.totalorder %v300_v61, 0 }
  0x7f   : > { %v3396_v11 = vpack.c.bf16 %v655_v9, %v653_v8  ;;  %v657_v14 = vld [vmem:[#allocation5 + $0x1a8] sm:$0xff]  ;;  %v659_v15 = vld [vmem:[#allocation5 + $0x1b8] sm:$0xff]  ;;  %v3398_v16 = vpack.c.bf16 %v654_v13, %v652_v12  ;;  %v656_v18 = vld [vmem:[#allocation5 + $0x1a0] sm:$0xff] }
  0x80   : > { %v3400_v17 = vpack.c.bf16 %v659_v15, %v657_v14  ;;  %v658_v19 = vld [vmem:[#allocation5 + $0x1b0] sm:$0xff]  ;;  %v661_v20 = vld [vmem:[#allocation5 + $0x1c8] sm:$0xff]  ;;  %v663_v21 = vld [vmem:[#allocation5 + $0x1d8] sm:$0xff] }
  0x81   : > { %3367 = vmatpush1.bf16.msra.mxu0 %v3366_v31  ;;  %v3402_v22 = vpack.c.bf16 %v658_v19, %v656_v18  ;;  %v3404_v24 = vpack.c.bf16 %v663_v21, %v661_v20  ;;  %v660_v25 = vld [vmem:[#allocation5 + $0x1c0] sm:$0xff]  ;;  %v662_v26 = vld [vmem:[#allocation5 + $0x1d0] sm:$0xff]  ;;  %v665_v27 = vld [vmem:[#allocation5 + $0x1e8] sm:$0xff] }
  0x82   : > { %3369 = vmatprep.subr.bf16.mxu0 %v3368_v32  ;;  %v667_v28 = vld [vmem:[#allocation5 + $0x1f8] sm:$0xff]  ;;  %v3406_v29 = vpack.c.bf16 %v662_v26, %v660_v25  ;;  %v664_v32 = vld [vmem:[#allocation5 + $0x1e0] sm:$0xff]  ;;  %v666_v33 = vld [vmem:[#allocation5 + $0x1f0] sm:$0xff]  ;;  %v272_v26 = vadd.s32 48, %v4198_v30 }
  0x83   : > { %v3408_v31 = vpack.c.bf16 %v667_v28, %v665_v27  ;;  %v4201_v34 = vld [vmem:[%s4184_s25 + $0x78] sm:$0xff]  ;;  %v669_v35 = vld [vmem:[#allocation5 + $0x208] sm:$0xff]  ;;  %v668_v43 = vld [vmem:[#allocation5 + $0x200] sm:$0xff] }
  0x84   : > { %v671_v36 = vld [vmem:[#allocation5 + $0x218] sm:$0xff]  ;;  %v521_v40 = vrot.slane %v4201_v34, 7  ;;  %v673_v46 = vld [vmem:[#allocation5 + $0x228] sm:$0xff]  ;;  %v4221_v53 = vld [vmem:[%s4184_s25 + $0x10] sm:$0xff] }
  0x85   : > { %3371 = vmatpush1.bf16.msra.mxu0 %v3370_v37  ;;  %v3410_v37 = vpack.c.bf16 %v666_v33, %v664_v32  ;;  %v3412_v42 = vpack.c.bf16 %v671_v36, %v669_v35  ;;  %v675_v47 = vld [vmem:[#allocation5 + $0x238] sm:$0xff]  ;;  %v672_v55 = vld [vmem:[#allocation5 + $0x220] sm:$0xff]  ;;  %v508_v60 = vrot.slane %v4221_v53, 7  ;;  %v678_v2 = vld [vmem:[#allocation5 + $0x250] sm:$0xff] }
  0x86   : > { %3373 = vmatprep.subr.bf16.mxu0 %v3372_v38  ;;  %v506_v38 = vrot.slane %v4195_v41, 7  ;;  %v3416_v54 = vpack.c.bf16 %v675_v47, %v673_v46  ;;  %v679_v58 = vld [vmem:[#allocation5 + $0x258] sm:$0xff]  ;;  %v676_v1 = vld [vmem:[#allocation5 + $0x240] sm:$0xff]  ;;  %v681_v3 = vld [vmem:[#allocation5 + $0x268] sm:$0xff] }
  0x87   : > { %v3422_v9 = vpack.c.bf16 %v678_v2, %v676_v1  ;;  %v680_v12 = vld [vmem:[#allocation5 + $0x260] sm:$0xff]  ;;  %v682_v13 = vld [vmem:[#allocation5 + $0x270] sm:$0xff]  ;;  %v685_v14 = vld [vmem:[#allocation5 + $0x288] sm:$0xff] }
  0x88   : > { %v538_v49 = vsel %vm5777_vm0, %v521_v40, %v506_v38  ;;  %v687_v15 = vld [vmem:[#allocation5 + $0x298] sm:$0xff]  ;;  %v3426_v19 = vpack.c.bf16 %v682_v13, %v680_v12  ;;  %v4251_v20 = vld [vmem:[%s4184_s25 + $0x28] sm:$0xff]  ;;  %v686_v23 = vld [vmem:[#allocation5 + $0x290] sm:$0xff] }
  0x89   : > { %3375 = vmatpush1.bf16.msra.mxu0 %v3374_v44  ;;  %v670_v44 = vld [vmem:[#allocation5 + $0x210] sm:$0xff]  ;;  %v3428_v21 = vpack.c.bf16 %v687_v15, %v685_v14  ;;  %v691_v25 = vld [vmem:[#allocation5 + $0x2b8] sm:$0xff]  ;;  %v688_v35 = vld [vmem:[#allocation5 + $0x2a0] sm:$0xff] }
  0x8a   : > { %3377 = vmatprep.subr.bf16.mxu0 %v3376_v45  ;;  %v4208_v45 = vld [vmem:[%s4184_s25 + $0x8] sm:$0xff]  ;;  %v4263_v32 = vld [vmem:[%s4184_s25 + $0x30] sm:$0xff]  ;;  %v4272_v46 = vld [vmem:[%s4184_s25 + $0x38] sm:$0xff] }
  0x8b   : > { %v507_v52 = vrot.slane %v4208_v45, 7  ;;  %v690_v36 = vld [vmem:[#allocation5 + $0x2b0] sm:$0xff]  ;;  %v692_v48 = vld [vmem:[#allocation5 + $0x2c0] sm:$0xff]  ;;  %v4314_v15 = vld [vmem:[%s4184_s25 + $0x58] sm:$0xff] }
  0x8c   : > { %v696_v61 = vld [vmem:[#allocation5 + $0x2e0] sm:$0xff] }
  0x8d   : > { %3379 = vmatpush1.bf16.msra.mxu0 %v3378_v50  ;;  %v537_v59 = vsel %vm5777_vm0, %v506_v38, %v507_v52  ;;  %v536_v6 = vsel %vm5777_vm0, %v507_v52, %v508_v60  ;;  %v695_v38 = vld [vmem:[#allocation5 + $0x2d8] sm:$0xff] }
  0x8e   : > { %3381 = vmatprep.subr.bf16.mxu0 %v3380_v51  ;;  %v3414_v51 = vpack.c.bf16 %v670_v44, %v668_v43  ;;  %v328_v43 = vand.u32 15, %v272_v26  ;;  %v3434_v44 = vpack.c.bf16 %v690_v36, %v688_v35  ;;  %v699_v52 = vld [vmem:[#allocation5 + $0x2f8] sm:$0xff] }
  0x90   : > { %vm4278_vm4 = vcmp.ne.s32.totalorder %v328_v43, 0  ;;  %v556_v43 = vrot.slane %v4208_v45, 1 }
  0x91   : > { %3383 = vmatpush1.bf16.msra.mxu0 %v3382_v56  ;;  %v674_v56 = vld [vmem:[#allocation5 + $0x230] sm:$0xff] }
  0x92   : > { %3385 = vmatprep.subr.bf16.mxu0 %v3384_v57  ;;  %v677_v57 = vld [vmem:[#allocation5 + $0x248] sm:$0xff] }
  0x93   : > { %v3420_v0 = vpack.c.bf16 %v679_v58, %v677_v57  ;;  %v513_v57 = vrot.slane %v4272_v46, 7 }
  0x95   : > { %3387 = vmatpush1.bf16.msra.mxu0 %v3386_v62  ;;  %v3418_v62 = vpack.c.bf16 %v674_v56, %v672_v55 }
  0x96   : > { %3389 = vmatprep.subr.bf16.mxu0 %v3388_v63  ;;  %v4230_v63 = vld [vmem:[%s4184_s25 + $0x18] sm:$0xff] }
  0x97   : > { %v509_v8 = vrot.slane %v4230_v63, 7 }
  0x99   : > { %3391 = vmatpush1.bf16.msra.mxu0 %v3390_v4  ;;  %v683_v4 = vld [vmem:[#allocation5 + $0x278] sm:$0xff] }
  0x9a   : > { %3393 = vmatprep.subr.bf16.mxu0 %v3392_v5  ;;  %v270_v5 = vadd.s32 32, %v4198_v30 }
  0x9c   : > { %v314_v18 = vand.u32 15, %v270_v5 }
  0x9d   : > { %3395 = vmatpush1.bf16.msra.mxu0 %v3394_v10  ;;  %v4242_v10 = vld [vmem:[%s4184_s25 + $0x20] sm:$0xff] }
  0x9e   : > { %3397 = vmatprep.subr.bf16.mxu0 %v3396_v11  ;;  %v3424_v11 = vpack.c.bf16 %v683_v4, %v681_v3  ;;  %vm4257_vm3 = vcmp.ne.s32.totalorder %v314_v18, 0  ;;  %v4293_v4 = vld [vmem:[%s4184_s25 + $0x48] sm:$0xff]  ;;  %v517_v18 = vrot.slane %v4314_v15, 7 }
  0xa1   : > { %3399 = vmatpush1.bf16.msra.mxu0 %v3398_v16  ;;  %v535_v16 = vsel %vm5777_vm0, %v508_v60, %v509_v8 }
  0xa2   : > { %3401 = vmatprep.subr.bf16.mxu0 %v3400_v17  ;;  %v510_v17 = vrot.slane %v4242_v10, 7 }
  0xa4   : > { %v534_v27 = vsel %vm5777_vm0, %v509_v8, %v510_v17  ;;  %v515_v8 = vrot.slane %v4293_v4, 7 }
  0xa5   : > { %3403 = vmatpush1.bf16.msra.mxu0 %v3402_v22  ;;  %v684_v22 = vld [vmem:[#allocation5 + $0x280] sm:$0xff] }
  0xa6   : > { %3405 = vmatprep.subr.bf16.mxu0 %v3404_v24  ;;  %v689_v24 = vld [vmem:[#allocation5 + $0x2a8] sm:$0xff] }
  0xa7   : > { %v3432_v33 = vpack.c.bf16 %v691_v25, %v689_v24  ;;  %v4335_v25 = vld [vmem:[%s4184_s25 + $0x68] sm:$0xff] }
  0xa9   : > { %3407 = vmatpush1.bf16.msra.mxu0 %v3406_v29  ;;  %v511_v29 = vrot.slane %v4251_v20, 7 }
  0xaa   : > { %3409 = vmatprep.subr.bf16.mxu0 %v3408_v31  ;;  %v3430_v31 = vpack.c.bf16 %v686_v23, %v684_v22 }
  0xab   : > { %v533_v39 = vsel %vm5777_vm0, %v510_v17, %v511_v29 }
  0xad   : > { %3411 = vmatpush1.bf16.msra.mxu0 %v3410_v37  ;;  %v693_v37 = vld [vmem:[#allocation5 + $0x2c8] sm:$0xff] }
  0xae   : > { %3413 = vmatprep.subr.bf16.mxu0 %v3412_v42  ;;  %v512_v42 = vrot.slane %v4263_v32, 7  ;;  %v3436_v47 = vpack.c.bf16 %v695_v38, %v693_v37 }
  0xb0   : > { %2858 = vmatmul.mubr.msk.f32.vlgmr.msra.gmra.mrb[0].mxu0 %vm4215_vm1, %v538_v49  ;;  %v694_v49 = vld [vmem:[#allocation5 + $0x2d0] sm:$0xff]  ;;  %v532_v55 = vsel %vm5777_vm0, %v511_v29, %v512_v42  ;;  %v519_v29 = vrot.slane %v4335_v25, 7 }
  0xb1   : > { %3415 = vmatpush1.bf16.msra.mxu0 %v3414_v51  ;;  %770 = vmatprep.mubr.f32.mxu0 %v4208_v45  ;;  %v697_v51 = vld [vmem:[#allocation5 + $0x2e8] sm:$0xff]  ;;  %v3438_v58 = vpack.c.bf16 %v694_v49, %v692_v48  ;;  %v557_v48 = vrot.slane %v4221_v53, 1  ;;  %v5788_v49 = vmov 0.0  }
  0xb2   : > { %3417 = vmatprep.subr.bf16.mxu0 %v3416_v54  ;;  %v274_v54 = vadd.s32 64, %v4198_v30  ;;  %v3440_v60 = vpack.c.bf16 %v699_v52, %v697_v51  ;;  %v558_v52 = vrot.slane %v4230_v63, 1 }
  0xb4   : > { %771 = vmatmul.mubr.f32.gmra.mrb[2].mxu0 %v537_v59  ;;  %v4284_v59 = vld [vmem:[%s4184_s25 + $0x40] sm:$0xff]  ;;  %v342_v2 = vand.u32 15, %v274_v54 }
  0xb5   : > { %776 = vmatprep.mubr.f32.mxu0 %v4221_v53  ;;  %3419 = vmatpush1.bf16.msra.mxu0 %v3418_v62  ;;  %v698_v62 = vld [vmem:[#allocation5 + $0x2f0] sm:$0xff]  ;;  %v514_v1 = vrot.slane %v4284_v59, 7  ;;  %v269_v53 = vadd.s32 24, %v4198_v30 }
  0xb6   : > { %3421 = vmatprep.subr.bf16.mxu0 %v3420_v0  ;;  %v531_v0 = vsel %vm5777_vm0, %v512_v42, %v513_v57  ;;  %v3442_v3 = vpack.c.bf16 %v698_v62, %v696_v61  ;;  %vm4298_vm5 = vcmp.ne.s32.totalorder %v342_v2, 0  ;;  %v555_v42 = vrot.slane %v4195_v41, 1  ;;  %v1225_v41 = vld [vmem:[#allocation7 + $0x98] sm:$0xff] }
  0xb7   : > { %v530_v5 = vsel %vm5777_vm0, %v513_v57, %v514_v1  ;;  %v529_v12 = vsel %vm5777_vm0, %v514_v1, %v515_v8  ;;  %v307_v57 = vand.u32 15, %v269_v53  ;;  %v5849_v61 = vmov 0  ;;  %v1207_v53 = vld [vmem:[#allocation7 + $0x8] sm:$0xff] }
  0xb8   : > { %2860 = vmatmul.mubr.msk.f32.gmra.mrb[4].mxu0 %vm4236_vm2, %v536_v6  ;;  %v586_v45 = vsel %vm5780_vm9, %v555_v42, %v556_v43  ;;  %v561_v62 = vrot.slane %v4263_v32, 1  ;;  %v562_v1 = vrot.slane %v4272_v46, 1 }
  0xb9   : > { %782 = vmatprep.mubr.f32.mxu0 %v4230_v63  ;;  %3423 = vmatpush1.bf16.msra.mxu0 %v3422_v9  ;;  %v276_v9 = vadd.s32 80, %v4198_v30  ;;  %v584_v63 = vsel %vm5780_vm9, %v557_v48, %v558_v52  ;;  %vm4398_vm11 = vcmp.ne.s32.totalorder %v307_v57, 15 }
  0xba   : > { %3425 = vmatprep.subr.bf16.mxu0 %v3424_v11  ;;  %v4305_v11 = vld [vmem:[%s4184_s25 + $0x50] sm:$0xff]  ;;  %v5850_v61 = vsel %vm4398_vm11, 4294967295, %v5849_v61 }
  0xbb   : > { %v516_v13 = vrot.slane %v4305_v11, 7  ;;  %v356_v14 = vand.u32 15, %v276_v9  ;;  %5851 = vst [vmem:[#allocation12_spill] sm:$0xff] %v5850_v61  ;;  %v564_v9 = vrot.slane %v4293_v4, 1 }
  0xbc   : > { %783 = vmatmul.mubr.f32.gmra.mrb[6].mxu0 %v535_v16 }
  0xbd   : > { %788 = vmatprep.mubr.f32.mxu0 %v4242_v10  ;;  %3427 = vmatpush1.bf16.msra.mxu0 %v3426_v19  ;;  %v528_v16 = vsel %vm5777_vm0, %v515_v8, %v516_v13  ;;  %vm4319_vm6 = vcmp.ne.s32.totalorder %v356_v14, 0  ;;  %v278_v19 = vadd.s32 96, %v4198_v30  ;;  %v527_v22 = vsel %vm5777_vm0, %v516_v13, %v517_v18 }
  0xbe   : > { %3429 = vmatprep.subr.bf16.mxu0 %v3428_v21  ;;  %v4326_v21 = vld [vmem:[%s4184_s25 + $0x60] sm:$0xff]  ;;  %v5855_v13 = vmov 0  ;;  %v565_v14 = vrot.slane %v4305_v11, 1 }
  0xbf   : > { %v518_v23 = vrot.slane %v4326_v21, 7  ;;  %v370_v24 = vand.u32 15, %v278_v19 }
  0xc0   : > { %2862 = vmatmul.mubr.msk.f32.gmra.mrb[8].mxu0 %vm4257_vm3, %v534_v27  ;;  %v577_v19 = vsel %vm5780_vm9, %v564_v9, %v565_v14 }
  0xc1   : > { %794 = vmatprep.mubr.f32.mxu0 %v4251_v20  ;;  %3431 = vmatpush1.bf16.msra.mxu0 %v3430_v31  ;;  %v526_v26 = vsel %vm5777_vm0, %v517_v18, %v518_v23  ;;  %vm4340_vm7 = vcmp.ne.s32.totalorder %v370_v24, 0  ;;  %v280_v31 = vadd.s32 112, %v4198_v30  ;;  %v525_v35 = vsel %vm5777_vm0, %v518_v23, %v519_v29 }
  0xc2   : > { %3433 = vmatprep.subr.bf16.mxu0 %v3432_v33  ;;  %v4347_v33 = vld [vmem:[%s4184_s25 + $0x70] sm:$0xff]  ;;  %v566_v18 = vrot.slane %v4314_v15, 1  ;;  %v567_v23 = vrot.slane %v4326_v21, 1 }
  0xc3   : > { %v520_v36 = vrot.slane %v4347_v33, 7  ;;  %v384_v37 = vand.u32 15, %v280_v31  ;;  %v5861_v31 = vmov 0 }
  0xc4   : > { %795 = vmatmul.mubr.f32.gmra.mrb[10].mxu0 %v533_v39 }
  0xc5   : > { %800 = vmatprep.mubr.f32.mxu0 %v4263_v32  ;;  %3435 = vmatpush1.bf16.msra.mxu0 %v3434_v44  ;;  %v524_v38 = vsel %vm5777_vm0, %v519_v29, %v520_v36  ;;  %vm4358_vm8 = vcmp.ne.s32.totalorder %v384_v37, 0  ;;  %v523_v44 = vsel %vm5777_vm0, %v520_v36, %v521_v40  ;;  %v585_v40 = vsel %vm5780_vm9, %v556_v43, %v557_v48 }
  0xc6   : > { %3437 = vmatprep.subr.bf16.mxu0 %v3436_v47  ;;  %v267_v47 = vadd.s32 8, %v4198_v30  ;;  %v273_v32 = vadd.s32 56, %v4198_v30  ;;  %v575_v29 = vsel %vm5780_vm9, %v566_v18, %v567_v23  ;;  %v570_v43 = vrot.slane %v4201_v34, 1 }
  0xc8   : > { %2864 = vmatmul.mubr.msk.f32.gmra.mrb[12].mxu0 %vm4278_vm4, %v532_v55  ;;  %v293_v51 = vand.u32 15, %v267_v47  ;;  %v559_v55 = vrot.slane %v4242_v10, 1  ;;  %v271_v10 = vadd.s32 40, %v4198_v30  ;;  %v335_v8 = vand.u32 15, %v273_v32  ;;  %v1228_v32 = vld [vmem:[#allocation7 + $0xb0] sm:$0xff] }
  0xc9   : > { %806 = vmatprep.mubr.f32.mxu0 %v4272_v46  ;;  %3439 = vmatpush1.bf16.msra.mxu0 %v3438_v58  ;;  %v560_v58 = vrot.slane %v4251_v20, 1  ;;  %v580_v46 = vsel %vm5780_vm9, %v561_v62, %v562_v1  ;;  %v587_v48 = vsel %vm5780_vm9, %v570_v43, %v555_v42  ;;  %v1209_v42 = vld [vmem:[#allocation7 + $0x18] sm:$0xff] }
  0xca   : > { %3441 = vmatprep.subr.bf16.mxu0 %v3440_v60  ;;  %vm4383_vm10 = vcmp.ne.s32.totalorder %v293_v51, 15  ;;  %v583_v60 = vsel %vm5780_vm9, %v558_v52, %v559_v55  ;;  %vm4428_vm13 = vcmp.ne.s32.totalorder %v335_v8, 15  ;;  %v1223_v51 = vld [vmem:[#allocation7 + $0x88] sm:$0xff]  ;;  %v1212_v8 = vld [vmem:[#allocation7 + $0x30] sm:$0xff] }
  0xcb   : > { %v582_v20 = vsel %vm5780_vm9, %v559_v55, %v560_v58  ;;  %v581_v2 = vsel %vm5780_vm9, %v560_v58, %v561_v62  ;;  %v5856_v13 = vsel %vm4428_vm13, 4294967295, %v5855_v13  ;;  %v1208_v58 = vld [vmem:[#allocation7 + $0x10] sm:$0xff]  ;;  %v1227_v62 = vld [vmem:[#allocation7 + $0xa8] sm:$0xff] }
  0xcc   : > { %807 = vmatmul.mubr.f32.gmra.mrb[14].mxu0 %v531_v0  ;;  %v321_v0 = vand.u32 15, %v271_v10  ;;  %5857 = vst [vmem:[#allocation14_spill] sm:$0xff] %v5856_v13  ;;  %v1226_v10 = vld [vmem:[#allocation7 + $0xa0] sm:$0xff] }
  0xcd   : > { %812 = vmatprep.mubr.f32.mxu0 %v4284_v59  ;;  %3443 = vmatpush1.bf16.msra.mxu0 %v3442_v3  ;;  %v5852_v3 = vmov 0 }
  0xce   : > { %vm4413_vm12 = vcmp.ne.s32.totalorder %v321_v0, 15  ;;  %v1210_v0 = vld [vmem:[#allocation7 + $0x20] sm:$0xff] }
  0xcf   : > { %v5853_v3 = vsel %vm4413_vm12, 4294967295, %v5852_v3 }
  0xd0   : > { %2866 = vmatmul.mubr.msk.f32.gmra.mrb[16].mxu0 %vm4298_vm5, %v530_v5  ;;  %5854 = vst [vmem:[#allocation13_spill] sm:$0xff] %v5853_v3  ;;  %v563_v5 = vrot.slane %v4284_v59, 1  ;;  %v275_v59 = vadd.s32 72, %v4198_v30  ;;  %v1243_v3 = vld [vmem:[#allocation7 + $0x128] sm:$0xff] }
  0xd1   : > { %818 = vmatprep.mubr.f32.mxu0 %v4293_v4 }
  0xd2   : > { %v578_v4 = vsel %vm5780_vm9, %v563_v5, %v564_v9  ;;  %v1213_v9 = vld [vmem:[#allocation7 + $0x38] sm:$0xff] }
  0xd4   : > { %819 = vmatmul.mubr.f32.gmra.mrb[18].mxu0 %v529_v12  ;;  %v579_v12 = vsel %vm5780_vm9, %v562_v1, %v563_v5  ;;  %v1211_v1 = vld [vmem:[#allocation7 + $0x28] sm:$0xff]  ;;  %v1229_v5 = vld [vmem:[#allocation7 + $0xb8] sm:$0xff] }
  0xd5   : > { %824 = vmatprep.mubr.f32.mxu0 %v4305_v11  ;;  %v277_v11 = vadd.s32 88, %v4198_v30 }
  0xd7   : > { %v363_v24 = vand.u32 15, %v277_v11  ;;  %v1232_v11 = vld [vmem:[#allocation7 + $0xd0] sm:$0xff] }
  0xd8   : > { %2868 = vmatmul.mubr.msk.f32.gmra.mrb[20].mxu0 %vm4319_vm6, %v528_v16  ;;  %v349_v16 = vand.u32 15, %v275_v59  ;;  %v1230_v59 = vld [vmem:[#allocation7 + $0xc0] sm:$0xff] }
  0xd9   : > { %830 = vmatprep.mubr.f32.mxu0 %v4314_v15  ;;  %v576_v15 = vsel %vm5780_vm9, %v565_v14, %v566_v18  ;;  %vm4458_vm15 = vcmp.ne.s32.totalorder %v363_v24, 15  ;;  %v1231_v14 = vld [vmem:[#allocation7 + $0xc8] sm:$0xff]  ;;  %v1216_v24 = vld [vmem:[#allocation7 + $0x50] sm:$0xff] }
  0xda   : > { %vm4443_vm14 = vcmp.ne.s32.totalorder %v349_v16, 15  ;;  %v5862_v31 = vsel %vm4458_vm15, 4294967295, %v5861_v31  ;;  %v1214_v16 = vld [vmem:[#allocation7 + $0x40] sm:$0xff]  ;;  %v1215_v18 = vld [vmem:[#allocation7 + $0x48] sm:$0xff] }
  0xdb   : > { %5863 = vst [vmem:[#allocation16_spill] sm:$0xff] %v5862_v31 }
  0xdc   : > { %831 = vmatmul.mubr.f32.gmra.mrb[22].mxu0 %v527_v22  ;;  %v5858_v22 = vmov 0 }
  0xdd   : > { %836 = vmatprep.mubr.f32.mxu0 %v4326_v21  ;;  %v5859_v22 = vsel %vm4443_vm14, 4294967295, %v5858_v22  ;;  %v279_v21 = vadd.s32 104, %v4198_v30 }
  0xde   : > { %5860 = vst [vmem:[#allocation15_spill] sm:$0xff] %v5859_v22 }
  0xdf   : > { %v377_v36 = vand.u32 15, %v279_v21  ;;  %v1234_v21 = vld [vmem:[#allocation7 + $0xe0] sm:$0xff] }
  0xe0   : > { %2870 = vmatmul.mubr.msk.f32.gmra.mrb[24].mxu0 %vm4340_vm7, %v526_v26  ;;  %v568_v26 = vrot.slane %v4335_v25, 1 }
  0xe1   : > { %842 = vmatprep.mubr.f32.mxu0 %v4335_v25  ;;  %vm4472_vm0 = vcmp.ne.s32.totalorder %v377_v36, 15  ;;  %v1218_v36 = vld [vmem:[#allocation7 + $0x60] sm:$0xff] }
  0xe2   : > { %v574_v25 = vsel %vm5780_vm9, %v567_v23, %v568_v26  ;;  %v1233_v23 = vld [vmem:[#allocation7 + $0xd8] sm:$0xff] }
  0xe4   : > { %843 = vmatmul.mubr.f32.gmra.mrb[26].mxu0 %v525_v35  ;;  %v569_v35 = vrot.slane %v4347_v33, 1 }
  0xe5   : > { %848 = vmatprep.mubr.f32.mxu0 %v4347_v33  ;;  %v281_v33 = vadd.s32 120, %v4198_v30  ;;  %v6032_v54 = vld [vmem:[#allocation15_spill] sm:$0xff] }
  0xe6   : > { %v573_v37 = vsel %vm5780_vm9, %v568_v26, %v569_v35  ;;  %v1217_v26 = vld [vmem:[#allocation7 + $0x58] sm:$0xff] }
  0xe7   : > { %v391_v47 = vand.u32 15, %v281_v33  ;;  %v1236_v33 = vld [vmem:[#allocation7 + $0xf0] sm:$0xff] }
  0xe8   : > { %2872 = vmatmul.mubr.msk.f32.gmra.mrb[28].mxu0 %vm4358_vm8, %v524_v38  ;;  %v5864_v38 = vmov 0 }
  0xe9   : > { %854 = vmatprep.mubr.f32.mxu0 %v4201_v34  ;;  %v5865_v38 = vsel %vm4472_vm0, 4294967295, %v5864_v38  ;;  %v5867_v34 = vmov 0 }
  0xea   : > { %5866 = vst [vmem:[#allocation17_spill] sm:$0xff] %v5865_v38 }
  0xec   : > { %855 = vmatmul.mubr.f32.gmra.mrb[30].mxu0 %v523_v44  ;;  %v572_v44 = vsel %vm5780_vm9, %v569_v35, %v570_v43  ;;  %v1235_v35 = vld [vmem:[#allocation7 + $0xe8] sm:$0xff] }
  0xed   : > { %925 = vmatprep.mubr.f32.mxu0 %v5788_v49 }
  0xf0   : > { %926 = vmatmul.mubr.f32.vlgmr.msra.gmra.mrb[0].mxu0 %v586_v45  ;;  %v1222_v45 = vld [vmem:[#allocation7 + $0x80] sm:$0xff] }
  0xf1   : > { %931 = vmatprep.mubr.f32.mxu0 %v5788_v49  ;;  %v3444_v52 = vpack.c.bf16 %v1223_v51, %v1222_v45  ;;  %v1221_v45 = vld [vmem:[#allocation7 + $0x78] sm:$0xff] }
  0xf3   : > { %3445 = vmatprep.subr.bf16.mxu1 %v3444_v52  ;;  %v1238_v52 = vld [vmem:[#allocation7 + $0x100] sm:$0xff] }
  0xf4   : > { %2874 = vmatmul.mubr.msk.f32.gmra.mrb[2].mxu0 %vm4383_vm10, %v585_v40  ;;  %v1206_v40 = vld [vmem:[#allocation7] sm:$0xff] }
  0xf5   : > { %937 = vmatprep.mubr.f32.mxu0 %v5788_v49  ;;  %v3446_v55 = vpack.c.bf16 %v1207_v53, %v1206_v40  ;;  %v1239_v40 = vld [vmem:[#allocation7 + $0x108] sm:$0xff] }
  0xf6   : > { %v4494_v53 = vpack.c.bf16 %v1239_v40, %v1238_v52 }
  0xf7   : > { %3447 = vmatpush3.bf16.msra.mxu1 %v3446_v55  ;;  %v5787_v55 = vsub.s32 0, %v4198_v30 }
  0xf8   : > { %938 = vmatmul.mubr.f32.gmra.mrb[4].mxu0 %v584_v63  ;;  %v1224_v63 = vld [vmem:[#allocation7 + $0x90] sm:$0xff] }
  0xf9   : > { %943 = vmatprep.mubr.f32.mxu0 %v5788_v49  ;;  %v3448_v57 = vpack.c.bf16 %v1225_v41, %v1224_v63  ;;  %v4501_v63 = vld [vmem:[%s5772_s3] sm:$0x7] }
  0xfa   : > { %5870 = vst [vmem:[#allocation19_spill] sm:$0xff] %v4501_v63  ;;  %v4506_v41 = vrot.slane %v4501_v63, %v5787_v55 }
  0xfb   : > { %3449 = vmatprep.subr.bf16.mxu1 %v3448_v57 }
  0xfc   : > { %2876 = vmatmul.mubr.msk.f32.gmra.mrb[6].mxu0 %vm4398_vm11, %v583_v60  ;;  %v3450_v60 = vpack.c.bf16 %v1209_v42, %v1208_v58 }
  0xfd   : > { %949 = vmatprep.mubr.f32.mxu0 %v5788_v49 }
  0xfe   : > { %3451 = vmatpush3.bf16.msra.mxu1 %v3450_v60 }
 0x100   : > { %950 = vmatmul.mubr.f32.gmra.mrb[8].mxu0 %v582_v20  ;;  %v3452_v20 = vpack.c.bf16 %v1227_v62, %v1226_v10 }
 0x101   : > { %955 = vmatprep.mubr.f32.mxu0 %v5788_v49 }
 0x102   : > { %3453 = vmatprep.subr.bf16.mxu1 %v3452_v20 }
 0x104   : > { %2878 = vmatmul.mubr.msk.f32.gmra.mrb[10].mxu0 %vm4413_vm12, %v581_v2  ;;  %v3454_v2 = vpack.c.bf16 %v1211_v1, %v1210_v0 }
 0x105   : > { %961 = vmatprep.mubr.f32.mxu0 %v5788_v49 }
 0x106   : > { %3455 = vmatpush3.bf16.msra.mxu1 %v3454_v2 }
 0x108   : > { %962 = vmatmul.mubr.f32.gmra.mrb[12].mxu0 %v580_v46  ;;  %v3456_v46 = vpack.c.bf16 %v1229_v5, %v1228_v32 }
 0x109   : > { %967 = vmatprep.mubr.f32.mxu0 %v5788_v49 }
 0x10a   : > { %3457 = vmatprep.subr.bf16.mxu1 %v3456_v46 }
 0x10c   : > { %2880 = vmatmul.mubr.msk.f32.gmra.mrb[14].mxu0 %vm4428_vm13, %v579_v12  ;;  %v3458_v12 = vpack.c.bf16 %v1213_v9, %v1212_v8 }
 0x10d   : > { %973 = vmatprep.mubr.f32.mxu0 %v5788_v49 }
 0x10e   : > { %3459 = vmatpush3.bf16.msra.mxu1 %v3458_v12 }
 0x110   : > { %974 = vmatmul.mubr.f32.gmra.mrb[16].mxu0 %v578_v4  ;;  %v3460_v4 = vpack.c.bf16 %v1231_v14, %v1230_v59 }
 0x111   : > { %979 = vmatprep.mubr.f32.mxu0 %v5788_v49 }
 0x112   : > { %3461 = vmatprep.subr.bf16.mxu1 %v3460_v4 }
 0x114   : > { %2882 = vmatmul.mubr.msk.f32.gmra.mrb[18].mxu0 %vm4443_vm14, %v577_v19  ;;  %v3462_v19 = vpack.c.bf16 %v1215_v18, %v1214_v16 }
 0x115   : > { %985 = vmatprep.mubr.f32.mxu0 %v5788_v49 }
 0x116   : > { %3463 = vmatpush3.bf16.msra.mxu1 %v3462_v19 }
 0x118   : > { %986 = vmatmul.mubr.f32.gmra.mrb[20].mxu0 %v576_v15  ;;  %v3464_v15 = vpack.c.bf16 %v1233_v23, %v1232_v11 }
 0x119   : > { %991 = vmatprep.mubr.f32.mxu0 %v5788_v49 }
 0x11a   : > { %3465 = vmatprep.subr.bf16.mxu1 %v3464_v15 }
 0x11c   : > { %2884 = vmatmul.mubr.msk.f32.gmra.mrb[22].mxu0 %vm4458_vm15, %v575_v29  ;;  %vm4488_vm15 = vcmp.ne.s32.totalorder %v391_v47, 15  ;;  %v3466_v29 = vpack.c.bf16 %v1217_v26, %v1216_v24 }
 0x11d   : > { %997 = vmatprep.mubr.f32.mxu0 %v5788_v49  ;;  %v5868_v34 = vsel %vm4488_vm15, 4294967295, %v5867_v34 }
 0x11e   : > { %5869 = vst [vmem:[#allocation18_spill] sm:$0xff] %v5868_v34  ;;  %3467 = vmatpush3.bf16.msra.mxu1 %v3466_v29 }
 0x120   : > { %998 = vmatmul.mubr.f32.gmra.mrb[24].mxu0 %v574_v25  ;;  %v3468_v25 = vpack.c.bf16 %v1235_v35, %v1234_v21 }
 0x121   : > { %1003 = vmatprep.mubr.f32.mxu0 %v5788_v49 }
 0x122   : > { %3469 = vmatprep.subr.bf16.mxu1 %v3468_v25 }
 0x124   : > { %2886 = vmatmul.mubr.msk.f32.gmra.mrb[26].mxu0 %vm4472_vm0, %v573_v37  ;;  %v1219_v37 = vld [vmem:[#allocation7 + $0x68] sm:$0xff]  ;;  %vm5874_vm0 = vcmp.lt.s32.totalorder %v4198_v30, 1 }
 0x125   : > { %1009 = vmatprep.mubr.f32.mxu0 %v5788_v49  ;;  %v3470_v43 = vpack.c.bf16 %v1219_v37, %v1218_v36 }
 0x127   : > { %3471 = vmatpush3.bf16.msra.mxu1 %v3470_v43 }
 0x128   : > { %1010 = vmatmul.mubr.f32.gmra.mrb[28].mxu0 %v572_v44  ;;  %v1237_v44 = vld [vmem:[#allocation7 + $0xf8] sm:$0xff] }
 0x129   : > { %1015 = vmatprep.mubr.f32.mxu0 %v5788_v49  ;;  %v3472_v47 = vpack.c.bf16 %v1237_v44, %v1236_v33 }
 0x12b   : > { %3473 = vmatprep.subr.bf16.mxu1 %v3472_v47 }
 0x12c   : > { %2888 = vmatmul.mubr.msk.f32.gmra.mrb[30].mxu0 %vm4488_vm15, %v587_v48  ;;  %v1220_v48 = vld [vmem:[#allocation7 + $0x70] sm:$0xff] }
 0x12d   : > { %v3474_v51 = vpack.c.bf16 %v1221_v45, %v1220_v48 }
 0x12f   : > { %3475 = vmatpush3.bf16.msra.mxu1 %v3474_v51 }
 0x130   : > { %3477 = vmatprep.subr.bf16.mxu1 %v4494_v53 }
 0x1c3   : > { %v927_v57 = vpop.f32.mrb[0].mxu0 }
 0x1c4   : > { %v1046_v58 = vadd.f32 %v4506_v41, %v927_v57  ;;  %v4509_v42 = vpop.f32.mrb[1].mxu0 }
 0x1c5   : > { %5871 = vst [vmem:[#allocation20_spill] sm:$0xff] %v4509_v42 }
 0x1c6   : > { %v1078_v60 = vmul.f32 0.2, %v1046_v58  ;;  %vm1062_vm9 = vcmp.gt.f32.partialorder %v1046_v58, 0.0 }
 0x1c7   : > { %v933_v10 = vpop.f32.mrb[2].mxu0 }
 0x1c8   : > { %v1047_v62 = vadd.f32 %v4506_v41, %v933_v10  ;;  %v4512_v20 = vpop.f32.mrb[3].mxu0  ;;  %v4514_v0 = vsel %vm1062_vm9, %v1046_v58, %v1078_v60 }
 0x1c9   : > { %5872 = vst [vmem:[#allocation21_spill] sm:$0xff] %v4512_v20  ;;  %1322 = vmatprep.mubr.f32.mxu1 %v4514_v0  ;;  %v5791_v8 = vrot.slane %v4514_v0, 7  ;;  %v5790_v9 = vrot.slane %v4514_v0, 1 }
 0x1ca   : > { %v1079_v1 = vmul.f32 0.2, %v1047_v62  ;;  %vm1063_vm15 = vcmp.gt.f32.partialorder %v1047_v62, 0.0 }
 0x1cb   : > { %v939_v2 = vpop.f32.mrb[4].mxu0 }
 0x1cc   : > { %v1048_v32 = vadd.f32 %v4506_v41, %v939_v2  ;;  %v4518_v5 = vpop.f32.mrb[5].mxu0  ;;  %v4520_v46 = vsel %vm1063_vm15, %v1047_v62, %v1079_v1  ;;  %vm5875_vm15 = vcmp.lt.s32.totalorder %v4198_v30, 7 }
 0x1cd   : > { %5873 = vst [vmem:[#allocation22_spill] sm:$0xff] %v4518_v5  ;;  %v1111_v12 = vrot.slane %v4520_v46, 7  ;;  %v1159_v59 = vrot.slane %v4520_v46, 1 }
 0x1ce   : > { %v1080_v14 = vmul.f32 0.2, %v1048_v32  ;;  %vm1064_vm9 = vcmp.gt.f32.partialorder %v1048_v32, 0.0 }
 0x1cf   : > { %v945_v4 = vpop.f32.mrb[6].mxu0  ;;  %v4530_v16 = vsel %vm5874_vm0, %v5791_v8, %v1111_v12  ;;  %v4536_v18 = vsel %vm5875_vm15, %v5790_v9, %v1159_v59 }
 0x1d0   : > { %v1049_v19 = vadd.f32 %v4506_v41, %v945_v4  ;;  %v4539_v11 = vpop.f32.mrb[7].mxu0  ;;  %v4541_v23 = vsel %vm1064_vm9, %v1048_v32, %v1080_v14 }
 0x1d1   : > { %5876 = vst [vmem:[#allocation23_spill] sm:$0xff] %v4539_v11  ;;  %v1112_v15 = vrot.slane %v4541_v23, 7  ;;  %v1160_v24 = vrot.slane %v4541_v23, 1 }
 0x1d2   : > { %v1081_v26 = vmul.f32 0.2, %v1049_v19  ;;  %vm1065_vm14 = vcmp.gt.f32.partialorder %v1049_v19, 0.0 }
 0x1d3   : > { %v951_v29 = vpop.f32.mrb[8].mxu0  ;;  %v4547_v21 = vsel %vm5874_vm0, %v1111_v12, %v1112_v15  ;;  %v4551_v35 = vsel %vm5875_vm15, %v1159_v59, %v1160_v24 }
 0x1d4   : > { %v1050_v25 = vadd.f32 %v4506_v41, %v951_v29  ;;  %v4554_v36 = vpop.f32.mrb[9].mxu0  ;;  %v4556_v37 = vsel %vm1065_vm14, %v1049_v19, %v1081_v26 }
 0x1d5   : > { %5877 = vst [vmem:[#allocation24_spill] sm:$0xff] %v4554_v36  ;;  %v1113_v43 = vrot.slane %v4556_v37, 7  ;;  %v1161_v33 = vrot.slane %v4556_v37, 1 }
 0x1d6   : > { %v1082_v44 = vmul.f32 0.2, %v1050_v25  ;;  %vm1066_vm9 = vcmp.gt.f32.partialorder %v1050_v25, 0.0 }
 0x1d7   : > { %v957_v47 = vpop.f32.mrb[10].mxu0  ;;  %v4562_v48 = vsel %vm5874_vm0, %v1112_v15, %v1113_v43  ;;  %v4566_v45 = vsel %vm5875_vm15, %v1160_v24, %v1161_v33 }
 0x1d8   : > { %v1051_v51 = vadd.f32 %v4506_v41, %v957_v47  ;;  %v4569_v52 = vpop.f32.mrb[11].mxu0  ;;  %v4571_v40 = vsel %vm1066_vm9, %v1050_v25, %v1082_v44  ;;  %v5792_v47 = vsub.s32 2, %v4198_v30 }
 0x1d9   : > { %5878 = vst [vmem:[#allocation25_spill] sm:$0xff] %v4569_v52  ;;  %v1114_v57 = vrot.slane %v4571_v40, 7  ;;  %v1162_v58 = vrot.slane %v4571_v40, 1 }
 0x1da   : > { %v1083_v60 = vmul.f32 0.2, %v1051_v51  ;;  %vm1067_vm14 = vcmp.gt.f32.partialorder %v1051_v51, 0.0 }
 0x1db   : > { %v963_v10 = vpop.f32.mrb[12].mxu0  ;;  %v4577_v62 = vsel %vm5874_vm0, %v1113_v43, %v1114_v57  ;;  %v4581_v1 = vsel %vm5875_vm15, %v1161_v33, %v1162_v58 }
 0x1dc   : > { %v1052_v2 = vadd.f32 %v4506_v41, %v963_v10  ;;  %v4584_v32 = vpop.f32.mrb[13].mxu0  ;;  %v4586_v12 = vsel %vm1067_vm14, %v1051_v51, %v1083_v60 }
 0x1dd   : > { %5879 = vst [vmem:[#allocation26_spill] sm:$0xff] %v4584_v32  ;;  %v1115_v59 = vrot.slane %v4586_v12, 7  ;;  %v1163_v14 = vrot.slane %v4586_v12, 1 }
 0x1de   : > { %v1084_v4 = vmul.f32 0.2, %v1052_v2  ;;  %vm1068_vm9 = vcmp.gt.f32.partialorder %v1052_v2, 0.0 }
 0x1df   : > { %v969_v19 = vpop.f32.mrb[14].mxu0  ;;  %v4592_v15 = vsel %vm5874_vm0, %v1114_v57, %v1115_v59  ;;  %v4596_v24 = vsel %vm5875_vm15, %v1162_v58, %v1163_v14 }
 0x1e0   : > { %v1053_v26 = vadd.f32 %v4506_v41, %v969_v19  ;;  %v4599_v29 = vpop.f32.mrb[15].mxu0  ;;  %v4601_v25 = vsel %vm1068_vm9, %v1052_v2, %v1084_v4 }
 0x1e1   : > { %5880 = vst [vmem:[#allocation27_spill] sm:$0xff] %v4599_v29  ;;  %v1116_v43 = vrot.slane %v4601_v25, 7  ;;  %v1164_v33 = vrot.slane %v4601_v25, 1 }
 0x1e2   : > { %v1085_v44 = vmul.f32 0.2, %v1053_v26  ;;  %vm1069_vm14 = vcmp.gt.f32.partialorder %v1053_v26, 0.0 }
 0x1e3   : > { %v975_v51 = vpop.f32.mrb[16].mxu0  ;;  %v4608_v57 = vsel %vm5874_vm0, %v1115_v59, %v1116_v43  ;;  %v4612_v58 = vsel %vm5875_vm15, %v1163_v14, %v1164_v33  ;;  %v4624_v59 = vrot.slane %v4501_v63, %v5792_v47 }
 0x1e4   : > { %v1054_v60 = vadd.f32 %v4506_v41, %v975_v51  ;;  %v4615_v10 = vpop.f32.mrb[17].mxu0  ;;  %v4617_v2 = vsel %vm1069_vm14, %v1053_v26, %v1085_v44 }
 0x1e5   : > { %5881 = vst [vmem:[#allocation28_spill] sm:$0xff] %v4615_v10  ;;  %v1117_v4 = vrot.slane %v4617_v2, 7  ;;  %v1165_v19 = vrot.slane %v4617_v2, 1  ;;  %5882 = vst [vmem:[#allocation29_spill] sm:$0xff] %v4624_v59 }
 0x1e6   : > { %v1086_v55 = vmul.f32 0.2, %v1054_v60  ;;  %vm1070_vm9 = vcmp.gt.f32.partialorder %v1054_v60, 0.0 }
 0x1e7   : > { %v981_v49 = vpop.f32.mrb[18].mxu0  ;;  %v4628_v14 = vsel %vm5874_vm0, %v1116_v43, %v1117_v4  ;;  %v4632_v26 = vsel %vm5875_vm15, %v1164_v33, %v1165_v19 }
 0x1e8   : > { %5883 = vst [vmem:[#allocation30_spill] sm:$0xff] %v4632_v26  ;;  %v1055_v44 = vadd.f32 %v4506_v41, %v981_v49  ;;  %v983_v51 = vpop.f32.mrb[19].mxu0  ;;  %v4635_v9 = vsel %vm1070_vm9, %v1054_v60, %v1086_v55  ;;  %v1242_v26 = vld [vmem:[#allocation7 + $0x120] sm:$0xff] }
 0x1e9   : > { %v4638_v8 = vadd.f32 %v4624_v59, %v983_v51  ;;  %v1118_v47 = vrot.slane %v4635_v9, 7  ;;  %v1166_v10 = vrot.slane %v4635_v9, 1 }
 0x1ea   : > { %v1087_v29 = vmul.f32 0.2, %v1055_v44  ;;  %vm1071_vm14 = vcmp.gt.f32.partialorder %v1055_v44, 0.0 }
 0x1eb   : > { %5884 = vst [vmem:[#allocation31_spill] sm:$0xff] %v4638_v8  ;;  %v987_v43 = vpop.f32.mrb[20].mxu0  ;;  %v4644_v32 = vsel %vm5874_vm0, %v1117_v4, %v1118_v47  ;;  %v4648_v49 = vsel %vm5875_vm15, %v1165_v19, %v1166_v10 }
 0x1ec   : > { %5885 = vst [vmem:[#allocation32_spill] sm:$0xff] %v4648_v49  ;;  %v1056_v55 = vadd.f32 %v4506_v41, %v987_v43  ;;  %v989_v33 = vpop.f32.mrb[21].mxu0  ;;  %v4651_v60 = vsel %vm1071_vm14, %v1055_v44, %v1087_v29  ;;  %v1241_v49 = vld [vmem:[#allocation7 + $0x118] sm:$0xff] }
 0x1ed   : > { %v4654_v51 = vadd.f32 %v4624_v59, %v989_v33  ;;  %v1119_v8 = vrot.slane %v4651_v60, 7  ;;  %v1167_v52 = vrot.slane %v4651_v60, 1 }
 0x1ee   : > { %v1088_v36 = vmul.f32 0.2, %v1056_v55  ;;  %vm1072_vm9 = vcmp.gt.f32.partialorder %v1056_v55, 0.0 }
 0x1ef   : > { %5886 = vst [vmem:[#allocation33_spill] sm:$0xff] %v4654_v51  ;;  %v993_v4 = vpop.f32.mrb[22].mxu0  ;;  %v4660_v11 = vsel %vm5874_vm0, %v1118_v47, %v1119_v8  ;;  %v4664_v19 = vsel %vm5875_vm15, %v1166_v10, %v1167_v52 }
 0x1f0   : > { %5887 = vst [vmem:[#allocation34_spill] sm:$0xff] %v4664_v19  ;;  %v1057_v29 = vadd.f32 %v4506_v41, %v993_v4  ;;  %v995_v44 = vpop.f32.mrb[23].mxu0  ;;  %v4667_v43 = vsel %vm1072_vm9, %v1056_v55, %v1088_v36 }
 0x1f1   : > { %v4670_v33 = vadd.f32 %v4624_v59, %v995_v44  ;;  %v1120_v51 = vrot.slane %v4667_v43, 7  ;;  %v1168_v5 = vrot.slane %v4667_v43, 1 }
 0x1f2   : > { %v1089_v20 = vmul.f32 0.2, %v1057_v29  ;;  %vm1073_vm14 = vcmp.gt.f32.partialorder %v1057_v29, 0.0 }
 0x1f3   : > { %5888 = vst [vmem:[#allocation35_spill] sm:$0xff] %v4670_v33  ;;  %v999_v47 = vpop.f32.mrb[24].mxu0  ;;  %v4676_v42 = vsel %vm5874_vm0, %v1119_v8, %v1120_v51  ;;  %v4680_v10 = vsel %vm5875_vm15, %v1167_v52, %v1168_v5 }
 0x1f4   : > { %5889 = vst [vmem:[#allocation36_spill] sm:$0xff] %v4680_v10  ;;  %v1058_v36 = vadd.f32 %v4506_v41, %v999_v47  ;;  %v1001_v55 = vpop.f32.mrb[25].mxu0  ;;  %v4683_v4 = vsel %vm1073_vm14, %v1057_v29, %v1089_v20 }
 0x1f5   : > { %v4686_v44 = vadd.f32 %v4624_v59, %v1001_v55  ;;  %v1121_v33 = vrot.slane %v4683_v4, 7  ;;  %v1169_v63 = vrot.slane %v4683_v4, 1 }
 0x1f6   : > { %v1090_v34 = vmul.f32 0.2, %v1058_v36  ;;  %vm1074_vm9 = vcmp.gt.f32.partialorder %v1058_v36, 0.0 }
 0x1f7   : > { %5890 = vst [vmem:[#allocation37_spill] sm:$0xff] %v4686_v44  ;;  %v1005_v8 = vpop.f32.mrb[26].mxu0  ;;  %v4692_v38 = vsel %vm5874_vm0, %v1120_v51, %v1121_v33  ;;  %v4696_v52 = vsel %vm5875_vm15, %v1168_v5, %v1169_v63 }
 0x1f8   : > { %5891 = vst [vmem:[#allocation38_spill] sm:$0xff] %v4696_v52  ;;  %v1059_v20 = vadd.f32 %v4506_v41, %v1005_v8  ;;  %v1007_v29 = vpop.f32.mrb[27].mxu0  ;;  %v4699_v47 = vsel %vm1074_vm9, %v1058_v36, %v1090_v34 }
 0x1f9   : > { %v4702_v55 = vadd.f32 %v4624_v59, %v1007_v29  ;;  %v1122_v44 = vrot.slane %v4699_v47, 7  ;;  %v1170_v31 = vrot.slane %v4699_v47, 1 }
 0x1fa   : > { %v1091_v22 = vmul.f32 0.2, %v1059_v20  ;;  %vm1075_vm14 = vcmp.gt.f32.partialorder %v1059_v20, 0.0 }
 0x1fb   : > { %5892 = vst [vmem:[#allocation39_spill] sm:$0xff] %v4702_v55  ;;  %v1011_v51 = vpop.f32.mrb[28].mxu0  ;;  %v4708_v10 = vsel %vm5874_vm0, %v1121_v33, %v1122_v44  ;;  %v4712_v5 = vsel %vm5875_vm15, %v1169_v63, %v1170_v31 }
 0x1fc   : > { %5893 = vst [vmem:[#allocation40_spill] sm:$0xff] %v4712_v5  ;;  %v1060_v34 = vadd.f32 %v4506_v41, %v1011_v51  ;;  %v1013_v36 = vpop.f32.mrb[29].mxu0  ;;  %v4715_v8 = vsel %vm1075_vm14, %v1059_v20, %v1091_v22  ;;  %v1240_v5 = vld [vmem:[#allocation7 + $0x110] sm:$0xff] }
 0x1fd   : > { %v4718_v29 = vadd.f32 %v4624_v59, %v1013_v36  ;;  %v1123_v55 = vrot.slane %v4715_v8, 7  ;;  %v1171_v52 = vrot.slane %v4715_v8, 1 }
 0x1fe   : > { %v1092_v19 = vmul.f32 0.2, %v1060_v34  ;;  %vm1076_vm9 = vcmp.gt.f32.partialorder %v1060_v34, 0.0 }
 0x1ff   : > { %5894 = vst [vmem:[#allocation41_spill] sm:$0xff] %v4718_v29  ;;  %v1017_v33 = vpop.f32.mrb[30].mxu0  ;;  %v4724_v13 = vsel %vm5874_vm0, %v1122_v44, %v1123_v55  ;;  %v4728_v63 = vsel %vm5875_vm15, %v1170_v31, %v1171_v52 }
 0x200   : > { %5895 = vst [vmem:[#allocation42_spill] sm:$0xff] %v4728_v63  ;;  %v1061_v22 = vadd.f32 %v4506_v41, %v1017_v33  ;;  %v4731_v20 = vpop.f32.mrb[31].mxu0  ;;  %v4733_v51 = vsel %vm1076_vm9, %v1060_v34, %v1092_v19  ;;  %v3480_v33 = vpack.c.bf16 %v1241_v49, %v1240_v5  ;;  %vm5898_vm9 = vmmov %vm5874_vm0  ;;  %v3484_v5 = vpack.c.bf16 %v1243_v3, %v1242_v26  ;;  %v1251_v26 = vld [vmem:[#allocation7 + $0x168] sm:$0xff] }
 0x201   : > { %5896 = vst [vmem:[#allocation43_spill] sm:$0xff] %v4731_v20  ;;  %v1124_v36 = vrot.slane %v4733_v51, 7  ;;  %v1172_v29 = vrot.slane %v4733_v51, 1  ;;  %v5897_v20 = vrot.slane %v4514_v0, 7 }
 0x202   : > { %vm1077_vm14 = vcmp.gt.f32.partialorder %v1061_v22, 0.0  ;;  %v1093_v59 = vmul.f32 0.2, %v1061_v22 }
 0x203   : > { %v4739_v44 = vsel %vm5874_vm0, %v1123_v55, %v1124_v36  ;;  %v4743_v31 = vsel %vm5875_vm15, %v1171_v52, %v1172_v29  ;;  %v5899_v52 = vrot.slane %v4514_v0, 1 }
 0x204   : > { %v4745_v41 = vsel %vm1077_vm14, %v1061_v22, %v1093_v59  ;;  %vm5900_vm14 = vmmov %vm5875_vm15  ;;  %v1244_v22 = vld [vmem:[#allocation7 + $0x130] sm:$0xff] }
 0x205   : > { %v1125_v19 = vrot.slane %v4745_v41, 7  ;;  %v1173_v34 = vrot.slane %v4745_v41, 1 }
 0x207   : > { %v1141_v63 = vsel %vm5898_vm9, %v1125_v19, %v5897_v20  ;;  %v4755_v55 = vsel %vm5874_vm0, %v1124_v36, %v1125_v19  ;;  %v4759_v59 = vsel %vm5875_vm15, %v1172_v29, %v1173_v34  ;;  %v4765_v49 = vsel %vm5900_vm14, %v1173_v34, %v5899_v52  ;;  %v1245_v20 = vld [vmem:[#allocation7 + $0x138] sm:$0xff]  ;;  %v1246_v29 = vld [vmem:[#allocation7 + $0x140] sm:$0xff]  ;;  %v1247_v36 = vld [vmem:[#allocation7 + $0x148] sm:$0xff] }
 0x208   : > { %2890 = vmatmul.mubr.msk.f32.vlgmr.msra.gmra.mrb[0].mxu1 %vm4215_vm1, %v1141_v63  ;;  %v3488_v0 = vpack.c.bf16 %v1245_v20, %v1244_v22  ;;  %v3492_v3 = vpack.c.bf16 %v1247_v36, %v1246_v29  ;;  %v1253_v63 = vld [vmem:[#allocation7 + $0x178] sm:$0xff]  ;;  %v1724_v34 = vld [vmem:[#allocation5 + $0x368] sm:$0xff]  ;;  %v1725_v52 = vld [vmem:[#allocation5 + $0x370] sm:$0xff] }
 0x209   : > { %1327 = vmatprep.mubr.f32.mxu1 %v4520_v46  ;;  %3479 = vmatpush3.bf16.msra.mxu1 %v4494_v53  ;;  %v1248_v53 = vld [vmem:[#allocation7 + $0x150] sm:$0xff]  ;;  %v1249_v46 = vld [vmem:[#allocation7 + $0x158] sm:$0xff] }
 0x20a   : > { %3481 = vmatprep.subr.bf16.mxu1 %v3480_v33  ;;  %v1730_v22 = vld [vmem:[#allocation5 + $0x398] sm:$0xff]  ;;  %v1729_v29 = vld [vmem:[#allocation5 + $0x390] sm:$0xff] }
 0x20c   : > { %1328 = vmatmul.mubr.f32.gmra.mrb[2].mxu1 %v4530_v16  ;;  %v3496_v16 = vpack.c.bf16 %v1249_v46, %v1248_v53  ;;  %v1734_v53 = vld [vmem:[#allocation5 + $0x3b8] sm:$0xff] }
 0x20d   : > { %1332 = vmatprep.mubr.f32.mxu1 %v4541_v23  ;;  %3483 = vmatpush3.bf16.msra.mxu1 %v3480_v33  ;;  %v1250_v23 = vld [vmem:[#allocation7 + $0x160] sm:$0xff]  ;;  %v1726_v33 = vld [vmem:[#allocation5 + $0x378] sm:$0xff] }
 0x20e   : > { %3485 = vmatprep.subr.bf16.mxu1 %v3484_v5 }
 0x210   : > { %2892 = vmatmul.mubr.msk.f32.gmra.mrb[4].mxu1 %vm4236_vm2, %v4547_v21  ;;  %v3500_v21 = vpack.c.bf16 %v1251_v26, %v1250_v23  ;;  %v1733_v23 = vld [vmem:[#allocation5 + $0x3b0] sm:$0xff] }
 0x211   : > { %1337 = vmatprep.mubr.f32.mxu1 %v4556_v37  ;;  %3487 = vmatpush3.bf16.msra.mxu1 %v3484_v5  ;;  %v1252_v37 = vld [vmem:[#allocation7 + $0x170] sm:$0xff]  ;;  %v1728_v5 = vld [vmem:[#allocation5 + $0x388] sm:$0xff] }
 0x212   : > { %3489 = vmatprep.subr.bf16.mxu1 %v3488_v0  ;;  %v3524_v20 = vpack.c.bf16 %v1730_v22, %v1728_v5  ;;  %v1760_v22 = vld [vmem:[#allocation5 + $0x488] sm:$0xff] }
 0x214   : > { %1338 = vmatmul.mubr.f32.gmra.mrb[6].mxu1 %v4562_v48  ;;  %v3504_v48 = vpack.c.bf16 %v1253_v63, %v1252_v37  ;;  %v1738_v37 = vld [vmem:[#allocation5 + $0x3d8] sm:$0xff] }
 0x215   : > { %1342 = vmatprep.mubr.f32.mxu1 %v4571_v40  ;;  %3491 = vmatpush3.bf16.msra.mxu1 %v3488_v0  ;;  %v5910_v40 = vld [vmem:[#allocation40_spill] sm:$0xff] }
 0x216   : > { %3493 = vmatprep.subr.bf16.mxu1 %v3492_v3  ;;  %v1727_v0 = vld [vmem:[#allocation5 + $0x380] sm:$0xff] }
 0x217   : > { %v3526_v36 = vpack.c.bf16 %v1729_v29, %v1727_v0  ;;  %v1759_v29 = vld [vmem:[#allocation5 + $0x480] sm:$0xff] }
 0x218   : > { %2894 = vmatmul.mubr.msk.f32.gmra.mrb[8].mxu1 %vm4257_vm3, %v4577_v62  ;;  %v5911_v62 = vld [vmem:[#allocation16_spill] sm:$0xff] }
 0x219   : > { %1347 = vmatprep.mubr.f32.mxu1 %v4586_v12  ;;  %3495 = vmatpush3.bf16.msra.mxu1 %v3492_v3  ;;  %vm5912_vm0 = vnez %v5911_v62  ;;  %v5916_v12 = vld [vmem:[#allocation18_spill] sm:$0xff]  ;;  %v1732_v3 = vld [vmem:[#allocation5 + $0x3a8] sm:$0xff] }
 0x21a   : > { %3497 = vmatprep.subr.bf16.mxu1 %v3496_v16  ;;  %vm5917_vm14 = vnez %v5916_v12  ;;  %v3528_v46 = vpack.c.bf16 %v1734_v53, %v1732_v3  ;;  %v1764_v53 = vld [vmem:[#allocation5 + $0x4a8] sm:$0xff] }
 0x21c   : > { %1348 = vmatmul.mubr.f32.gmra.mrb[10].mxu1 %v4592_v15  ;;  %v1712_v15 = vld [vmem:[#allocation5 + $0x308] sm:$0xff] }
 0x21d   : > { %1352 = vmatprep.mubr.f32.mxu1 %v4601_v25  ;;  %3499 = vmatpush3.bf16.msra.mxu1 %v3496_v16  ;;  %v1731_v16 = vld [vmem:[#allocation5 + $0x3a0] sm:$0xff] }
 0x21e   : > { %3501 = vmatprep.subr.bf16.mxu1 %v3500_v21  ;;  %v3530_v26 = vpack.c.bf16 %v1733_v23, %v1731_v16  ;;  %v1763_v23 = vld [vmem:[#allocation5 + $0x4a0] sm:$0xff] }
 0x220   : > { %2896 = vmatmul.mubr.msk.f32.gmra.mrb[12].mxu1 %vm4278_vm4, %v4608_v57  ;;  %v1711_v57 = vld [vmem:[#allocation5 + $0x300] sm:$0xff] }
 0x221   : > { %1357 = vmatprep.mubr.f32.mxu1 %v4617_v2  ;;  %3503 = vmatpush3.bf16.msra.mxu1 %v3500_v21  ;;  %v1736_v21 = vld [vmem:[#allocation5 + $0x3c8] sm:$0xff] }
 0x222   : > { %3505 = vmatprep.subr.bf16.mxu1 %v3504_v48  ;;  %v3532_v63 = vpack.c.bf16 %v1738_v37, %v1736_v21  ;;  %v1768_v37 = vld [vmem:[#allocation5 + $0x4c8] sm:$0xff] }
 0x224   : > { %1358 = vmatmul.mubr.f32.gmra.mrb[14].mxu1 %v4628_v14  ;;  %v1716_v14 = vld [vmem:[#allocation5 + $0x328] sm:$0xff] }
 0x225   : > { %1362 = vmatprep.mubr.f32.mxu1 %v4635_v9  ;;  %3507 = vmatpush3.bf16.msra.mxu1 %v3504_v48  ;;  %v1735_v48 = vld [vmem:[#allocation5 + $0x3c0] sm:$0xff] }
 0x228   : > { %2898 = vmatmul.mubr.msk.f32.gmra.mrb[16].mxu1 %vm4298_vm5, %v4644_v32  ;;  %v5914_v32 = vld [vmem:[#allocation17_spill] sm:$0xff] }
 0x229   : > { %1367 = vmatprep.mubr.f32.mxu1 %v4651_v60  ;;  %vm5915_vm15 = vnez %v5914_v32  ;;  %v1718_v60 = vld [vmem:[#allocation5 + $0x338] sm:$0xff] }
 0x22a   : > { %v5941_v32 = vld [vmem:[#allocation35_spill] sm:$0xff] }
 0x22c   : > { %1368 = vmatmul.mubr.f32.gmra.mrb[18].mxu1 %v4660_v11  ;;  %v5906_v11 = vld [vmem:[#allocation36_spill] sm:$0xff] }
 0x22d   : > { %1372 = vmatprep.mubr.f32.mxu1 %v4667_v43  ;;  %v3512_v43 = vpack.c.bf16 %v1718_v60, %v1716_v14  ;;  %v1748_v60 = vld [vmem:[#allocation5 + $0x428] sm:$0xff] }
 0x230   : > { %2900 = vmatmul.mubr.msk.f32.gmra.mrb[20].mxu1 %vm4319_vm6, %v4676_v42  ;;  %v5903_v42 = vld [vmem:[#allocation32_spill] sm:$0xff] }
 0x231   : > { %1377 = vmatprep.mubr.f32.mxu1 %v4683_v4  ;;  %v1717_v4 = vld [vmem:[#allocation5 + $0x330] sm:$0xff] }
 0x234   : > { %1378 = vmatmul.mubr.f32.gmra.mrb[22].mxu1 %v4692_v38  ;;  %v5902_v38 = vld [vmem:[#allocation30_spill] sm:$0xff] }
 0x235   : > { %1382 = vmatprep.mubr.f32.mxu1 %v4699_v47 }
 0x238   : > { %2902 = vmatmul.mubr.msk.f32.gmra.mrb[24].mxu1 %vm4340_vm7, %v4708_v10  ;;  %v1715_v10 = vld [vmem:[#allocation5 + $0x320] sm:$0xff] }
 0x239   : > { %1387 = vmatprep.mubr.f32.mxu1 %v4715_v8  ;;  %v3514_v47 = vpack.c.bf16 %v1717_v4, %v1715_v10  ;;  %v1720_v8 = vld [vmem:[#allocation5 + $0x348] sm:$0xff]  ;;  %v1747_v4 = vld [vmem:[#allocation5 + $0x420] sm:$0xff] }
 0x23c   : > { %1388 = vmatmul.mubr.f32.gmra.mrb[26].mxu1 %v4724_v13 }
 0x23d   : > { %1392 = vmatprep.mubr.f32.mxu1 %v4733_v51  ;;  %v1722_v51 = vld [vmem:[#allocation5 + $0x358] sm:$0xff] }
 0x240   : > { %2904 = vmatmul.mubr.msk.f32.gmra.mrb[28].mxu1 %vm4358_vm8, %v4739_v44  ;;  %v3516_v44 = vpack.c.bf16 %v1722_v51, %v1720_v8  ;;  %v1752_v51 = vld [vmem:[#allocation5 + $0x448] sm:$0xff] }
 0x241   : > { %1397 = vmatprep.mubr.f32.mxu1 %v4745_v41  ;;  %v1721_v41 = vld [vmem:[#allocation5 + $0x350] sm:$0xff] }
 0x244   : > { %1398 = vmatmul.mubr.f32.gmra.mrb[30].mxu1 %v4755_v55  ;;  %v3520_v55 = vpack.c.bf16 %v1726_v33, %v1724_v34  ;;  %v1756_v33 = vld [vmem:[#allocation5 + $0x468] sm:$0xff] }
 0x245   : > { %3268 = vmatprep.mubr.f32.mxu1 %v4536_v18  ;;  %v5905_v18 = vld [vmem:[#allocation34_spill] sm:$0xff] }
 0x248   : > { %3269 = vmatmul.mubr.msk.f32.vlgmr.msra.gmra.mrb[32].mxu1 %vm4383_vm10, %v4551_v35  ;;  %v5907_v35 = vld [vmem:[#allocation15_spill] sm:$0xff] }
 0x249   : > { %3271 = vmatprep.mubr.f32.mxu1 %v4566_v45  ;;  %vm5908_vm9 = vnez %v5907_v35  ;;  %v5909_v45 = vld [vmem:[#allocation38_spill] sm:$0xff] }
 0x24c   : > { %3272 = vmatmul.mubr.msk.f32.gmra.mrb[34].mxu1 %vm4398_vm11, %v4581_v1  ;;  %v5913_v1 = vld [vmem:[#allocation42_spill] sm:$0xff] }
 0x24d   : > { %3274 = vmatprep.mubr.f32.mxu1 %v4596_v24  ;;  %v1714_v24 = vld [vmem:[#allocation5 + $0x318] sm:$0xff] }
 0x24e   : > { %v3508_v25 = vpack.c.bf16 %v1714_v24, %v1712_v15  ;;  %v1744_v24 = vld [vmem:[#allocation5 + $0x408] sm:$0xff] }
 0x250   : > { %3275 = vmatmul.mubr.msk.f32.gmra.mrb[36].mxu1 %vm4413_vm12, %v4612_v58  ;;  %v1713_v58 = vld [vmem:[#allocation5 + $0x310] sm:$0xff]  ;;  %3509 = vmatprep.subr.bf16.mxu1 %v3508_v25  ;;  %v1746_v25 = vld [vmem:[#allocation5 + $0x418] sm:$0xff] }
 0x251   : > { %3277 = vmatprep.mubr.f32.mxu1 %v5902_v38  ;;  %v3510_v2 = vpack.c.bf16 %v1713_v58, %v1711_v57  ;;  %v1737_v38 = vld [vmem:[#allocation5 + $0x3d0] sm:$0xff]  ;;  %v3540_v57 = vpack.c.bf16 %v1746_v25, %v1744_v24  ;;  %v1743_v58 = vld [vmem:[#allocation5 + $0x400] sm:$0xff]  ;;  %v1776_v25 = vld [vmem:[#allocation5 + $0x508] sm:$0xff] }
 0x253   : > { %3511 = vmatpush1.bf16.msra.mxu1 %v3510_v2  ;;  %v1745_v2 = vld [vmem:[#allocation5 + $0x410] sm:$0xff] }
 0x254   : > { %3278 = vmatmul.mubr.msk.f32.gmra.mrb[38].mxu1 %vm4428_vm13, %v5903_v42  ;;  %3513 = vmatprep.subr.bf16.mxu1 %v3512_v43  ;;  %v3534_v42 = vpack.c.bf16 %v1737_v38, %v1735_v48  ;;  %v3542_v14 = vpack.c.bf16 %v1745_v2, %v1743_v58  ;;  %v1750_v43 = vld [vmem:[#allocation5 + $0x438] sm:$0xff]  ;;  %v1767_v38 = vld [vmem:[#allocation5 + $0x4c0] sm:$0xff] }
 0x255   : > { %3280 = vmatprep.mubr.f32.mxu1 %v5905_v18  ;;  %v1740_v18 = vld [vmem:[#allocation5 + $0x3e8] sm:$0xff]  ;;  %v3544_v10 = vpack.c.bf16 %v1750_v43, %v1748_v60 }
 0x257   : > { %3515 = vmatpush1.bf16.msra.mxu1 %v3514_v47  ;;  %v1749_v47 = vld [vmem:[#allocation5 + $0x430] sm:$0xff] }
 0x258   : > { %3281 = vmatmul.mubr.msk.f32.gmra.mrb[40].mxu1 %vm5908_vm9, %v5906_v11  ;;  %3517 = vmatprep.subr.bf16.mxu1 %v3516_v44  ;;  %v1742_v11 = vld [vmem:[#allocation5 + $0x3f8] sm:$0xff]  ;;  %v3546_v8 = vpack.c.bf16 %v1749_v47, %v1747_v4 }
 0x259   : > { %3283 = vmatprep.mubr.f32.mxu1 %v5909_v45  ;;  %v3536_v45 = vpack.c.bf16 %v1742_v11, %v1740_v18  ;;  %v1754_v44 = vld [vmem:[#allocation5 + $0x458] sm:$0xff]  ;;  %v1772_v11 = vld [vmem:[#allocation5 + $0x4e8] sm:$0xff] }
 0x25c   : > { %3284 = vmatmul.mubr.msk.f32.gmra.mrb[42].mxu1 %vm5912_vm0, %v5910_v40  ;;  %v1739_v40 = vld [vmem:[#allocation5 + $0x3e0] sm:$0xff] }
 0x25d   : > { %3286 = vmatprep.mubr.f32.mxu1 %v5913_v1  ;;  %v1741_v1 = vld [vmem:[#allocation5 + $0x3f0] sm:$0xff] }
 0x25e   : > { %v3538_v15 = vpack.c.bf16 %v1741_v1, %v1739_v40  ;;  %v1771_v1 = vld [vmem:[#allocation5 + $0x4e0] sm:$0xff] }
 0x260   : > { %3287 = vmatmul.mubr.msk.f32.gmra.mrb[44].mxu1 %vm5915_vm15, %v4743_v31  ;;  %v1719_v31 = vld [vmem:[#allocation5 + $0x340] sm:$0xff] }
 0x261   : > { %3289 = vmatprep.mubr.f32.mxu1 %v4759_v59  ;;  %v3518_v19 = vpack.c.bf16 %v1721_v41, %v1719_v31  ;;  %v1723_v59 = vld [vmem:[#allocation5 + $0x360] sm:$0xff]  ;;  %v3548_v31 = vpack.c.bf16 %v1754_v44, %v1752_v51 }
 0x262   : > { %v1751_v41 = vld [vmem:[#allocation5 + $0x440] sm:$0xff] }
 0x263   : > { %3519 = vmatpush1.bf16.msra.mxu1 %v3518_v19  ;;  %v1753_v19 = vld [vmem:[#allocation5 + $0x450] sm:$0xff] }
 0x264   : > { %3290 = vmatmul.mubr.msk.f32.gmra.mrb[46].mxu1 %vm5917_vm14, %v4765_v49  ;;  %v3522_v49 = vpack.c.bf16 %v1725_v52, %v1723_v59  ;;  %3521 = vmatprep.subr.bf16.mxu1 %v3520_v55  ;;  %v3550_v34 = vpack.c.bf16 %v1753_v19, %v1751_v41  ;;  %v1758_v55 = vld [vmem:[#allocation5 + $0x478] sm:$0xff]  ;;  %v1755_v52 = vld [vmem:[#allocation5 + $0x460] sm:$0xff] }
 0x265   : > { %v3552_v59 = vpack.c.bf16 %v1758_v55, %v1756_v33 }
 0x267   : > { %3523 = vmatpush1.bf16.msra.mxu1 %v3522_v49  ;;  %v1757_v49 = vld [vmem:[#allocation5 + $0x470] sm:$0xff] }
 0x268   : > { %3525 = vmatprep.subr.bf16.mxu1 %v3524_v20  ;;  %v3554_v5 = vpack.c.bf16 %v1757_v49, %v1755_v52  ;;  %v1762_v20 = vld [vmem:[#allocation5 + $0x498] sm:$0xff] }
 0x269   : > { %v3556_v0 = vpack.c.bf16 %v1762_v20, %v1760_v22 }
 0x26b   : > { %3527 = vmatpush1.bf16.msra.mxu1 %v3526_v36  ;;  %v1761_v36 = vld [vmem:[#allocation5 + $0x490] sm:$0xff] }
 0x26c   : > { %3529 = vmatprep.subr.bf16.mxu1 %v3528_v46  ;;  %v3558_v3 = vpack.c.bf16 %v1761_v36, %v1759_v29  ;;  %v1766_v46 = vld [vmem:[#allocation5 + $0x4b8] sm:$0xff] }
 0x26d   : > { %v3560_v16 = vpack.c.bf16 %v1766_v46, %v1764_v53  ;;  %v5808_v46 = vsub.s32 1, %v4198_v30 }
 0x26f   : > { %3531 = vmatpush1.bf16.msra.mxu1 %v3530_v26  ;;  %v1765_v26 = vld [vmem:[#allocation5 + $0x4b0] sm:$0xff] }
 0x270   : > { %3533 = vmatprep.subr.bf16.mxu1 %v3532_v63  ;;  %v3562_v21 = vpack.c.bf16 %v1765_v26, %v1763_v23  ;;  %v1770_v63 = vld [vmem:[#allocation5 + $0x4d8] sm:$0xff] }
 0x271   : > { %v3564_v48 = vpack.c.bf16 %v1770_v63, %v1768_v37 }
 0x273   : > { %3535 = vmatpush1.bf16.msra.mxu1 %v3534_v42  ;;  %v1769_v42 = vld [vmem:[#allocation5 + $0x4d0] sm:$0xff] }
 0x274   : > { %3537 = vmatprep.subr.bf16.mxu1 %v3536_v45  ;;  %v3566_v18 = vpack.c.bf16 %v1769_v42, %v1767_v38  ;;  %v1774_v45 = vld [vmem:[#allocation5 + $0x4f8] sm:$0xff] }
 0x275   : > { %v3568_v40 = vpack.c.bf16 %v1774_v45, %v1772_v11 }
 0x277   : > { %3539 = vmatpush1.bf16.msra.mxu1 %v3538_v15  ;;  %v1773_v15 = vld [vmem:[#allocation5 + $0x4f0] sm:$0xff] }
 0x278   : > { %3541 = vmatprep.subr.bf16.mxu1 %v3540_v57  ;;  %v3570_v24 = vpack.c.bf16 %v1773_v15, %v1771_v1  ;;  %v1778_v57 = vld [vmem:[#allocation5 + $0x518] sm:$0xff] }
 0x279   : > { %v3572_v58 = vpack.c.bf16 %v1778_v57, %v1776_v25 }
 0x27b   : > { %3543 = vmatpush1.bf16.msra.mxu1 %v3542_v14 }
 0x27c   : > { %3545 = vmatprep.subr.bf16.mxu1 %v3544_v10 }
 0x27f   : > { %3547 = vmatpush1.bf16.msra.mxu1 %v3546_v8 }
 0x280   : > { %3549 = vmatprep.subr.bf16.mxu1 %v3548_v31 }
 0x283   : > { %3551 = vmatpush1.bf16.msra.mxu1 %v3550_v34 }
 0x284   : > { %3553 = vmatprep.subr.bf16.mxu1 %v3552_v59 }
 0x287   : > { %3555 = vmatpush1.bf16.msra.mxu1 %v3554_v5 }
 0x288   : > { %3557 = vmatprep.subr.bf16.mxu1 %v3556_v0 }
 0x28b   : > { %3559 = vmatpush1.bf16.msra.mxu1 %v3558_v3 }
 0x28c   : > { %3561 = vmatprep.subr.bf16.mxu1 %v3560_v16 }
 0x28f   : > { %3563 = vmatpush1.bf16.msra.mxu1 %v3562_v21  ;;  %v5918_v21 = vld [vmem:[#allocation19_spill] sm:$0xff] }
 0x290   : > { %3565 = vmatprep.subr.bf16.mxu1 %v3564_v48  ;;  %v4866_v37 = vrot.slane %v5918_v21, %v5808_v46 }
 0x293   : > { %3567 = vmatpush1.bf16.msra.mxu1 %v3566_v18 }
 0x294   : > { %3569 = vmatprep.subr.bf16.mxu1 %v3568_v40 }
 0x297   : > { %3571 = vmatpush1.bf16.msra.mxu1 %v3570_v24 }
 0x298   : > { %3573 = vmatprep.subr.bf16.mxu1 %v3572_v58 }
 0x2db   : > { %v3044_v2 = vpop.f32.mrb[0].mxu1 }
 0x2dc   : > { %v3045_v14 = vpop.f32.mrb[1].mxu1 }
 0x2dd   : > { %v4846_v60 = vadd.f32 %v3045_v14, %v3044_v2 }
 0x2df   : > { %v3047_v43 = vpop.f32.mrb[2].mxu1 }
 0x2e0   : > { %v3048_v10 = vpop.f32.mrb[3].mxu1 }
 0x2e1   : > { %v3049_v4 = vadd.f32 %v3048_v10, %v3047_v43 }
 0x2e3   : > { %v3050_v47 = vpop.f32.mrb[4].mxu1 }
 0x2e4   : > { %v3051_v8 = vpop.f32.mrb[5].mxu1 }
 0x2e5   : > { %v4848_v51 = vadd.f32 %v3051_v8, %v3050_v47 }
 0x2e7   : > { %v3053_v44 = vpop.f32.mrb[6].mxu1 }
 0x2e8   : > { %v3054_v31 = vpop.f32.mrb[7].mxu1 }
 0x2e9   : > { %v4850_v41 = vadd.f32 %v3054_v31, %v3053_v44 }
 0x2eb   : > { %v3056_v19 = vpop.f32.mrb[8].mxu1 }
 0x2ec   : > { %v3057_v34 = vpop.f32.mrb[9].mxu1 }
 0x2ed   : > { %v4852_v33 = vadd.f32 %v3057_v34, %v3056_v19 }
 0x2ef   : > { %v3059_v55 = vpop.f32.mrb[10].mxu1 }
 0x2f0   : > { %v3060_v59 = vpop.f32.mrb[11].mxu1 }
 0x2f1   : > { %v4854_v52 = vadd.f32 %v3060_v59, %v3059_v55  ;;  %v5919_v55 = vld [vmem:[#allocation20_spill] sm:$0xff]  ;;  %v5920_v59 = vld [vmem:[#allocation29_spill] sm:$0xff] }
 0x2f3   : > { %v3062_v49 = vpop.f32.mrb[12].mxu1 }
 0x2f4   : > { %v3063_v5 = vpop.f32.mrb[13].mxu1 }
 0x2f5   : > { %v4856_v22 = vadd.f32 %v3063_v5, %v3062_v49  ;;  %v1026_v49 = vadd.f32 %v5920_v59, %v5919_v55  ;;  %v5921_v5 = vld [vmem:[#allocation21_spill] sm:$0xff] }
 0x2f7   : > { %v3065_v20 = vpop.f32.mrb[14].mxu1 }
 0x2f8   : > { %v3066_v0 = vpop.f32.mrb[15].mxu1 }
 0x2f9   : > { %v4858_v29 = vadd.f32 %v3066_v0, %v3065_v20  ;;  %v1027_v20 = vadd.f32 %v5920_v59, %v5921_v5  ;;  %v1330_v0 = vadd.f32 %v3049_v4, %v4866_v37  ;;  %v4907_v4 = vld [vmem:[#allocation5 + $0x538] sm:$0xff] }
 0x2fb   : > { %v3068_v36 = vpop.f32.mrb[16].mxu1 }
 0x2fc   : > { %v3069_v3 = vpop.f32.mrb[17].mxu1 }
 0x2fd   : > { %v4860_v53 = vadd.f32 %v3069_v3, %v3068_v36  ;;  %v4891_v36 = vld [vmem:[#allocation5 + $0x500] sm:$0xff]  ;;  %v4893_v3 = vld [vmem:[#allocation5 + $0x510] sm:$0xff] }
 0x2ff   : > { %v3071_v16 = vpop.f32.mrb[18].mxu1 }
 0x300   : > { %v3072_v23 = vpop.f32.mrb[19].mxu1 }
 0x301   : > { %v3073_v26 = vadd.f32 %v3072_v23, %v3071_v16  ;;  %v5922_v16 = vld [vmem:[#allocation22_spill] sm:$0xff] }
 0x302   : > { %v1028_v23 = vadd.f32 %v5920_v59, %v5922_v16  ;;  %v1340_v16 = vadd.f32 %v4850_v41, %v4866_v37  ;;  %v1355_v41 = vadd.f32 %v4856_v22, %v4866_v37 }
 0x303   : > { %v3074_v63 = vpop.f32.mrb[20].mxu1  ;;  %v4869_v48 = vadd.f32 %v3073_v26, %v4866_v37  ;;  %v5923_v26 = vld [vmem:[#allocation23_spill] sm:$0xff] }
 0x304   : > { %v3075_v38 = vpop.f32.mrb[21].mxu1  ;;  %v1029_v21 = vadd.f32 %v5920_v59, %v5923_v26 }
 0x305   : > { %v3076_v42 = vadd.f32 %v3075_v38, %v3074_v63  ;;  %v5924_v63 = vld [vmem:[#allocation24_spill] sm:$0xff] }
 0x306   : > { %v4901_v38 = vadd.f32 %v5920_v59, %v5924_v63 }
 0x307   : > { %v3077_v18 = vpop.f32.mrb[22].mxu1  ;;  %v4872_v11 = vadd.f32 %v3076_v42, %v4866_v37 }
 0x308   : > { %v3078_v45 = vpop.f32.mrb[23].mxu1 }
 0x309   : > { %v3079_v40 = vadd.f32 %v3078_v45, %v3077_v18  ;;  %v1325_v18 = vadd.f32 %v4846_v60, %v4866_v37  ;;  %v4905_v45 = vld [vmem:[#allocation5 + $0x528] sm:$0xff] }
 0x30b   : > { %v3080_v1 = vpop.f32.mrb[24].mxu1  ;;  %v4875_v15 = vadd.f32 %v3079_v40, %v4866_v37  ;;  %v5925_v40 = vld [vmem:[#allocation25_spill] sm:$0xff] }
 0x30c   : > { %v3081_v24 = vpop.f32.mrb[25].mxu1 }
 0x30d   : > { %v3082_v25 = vadd.f32 %v3081_v24, %v3080_v1  ;;  %v4911_v1 = vadd.f32 %v5920_v59, %v5925_v40  ;;  %v5926_v24 = vld [vmem:[#allocation26_spill] sm:$0xff] }
 0x30f   : > { %v3083_v57 = vpop.f32.mrb[26].mxu1  ;;  %v4878_v58 = vadd.f32 %v3082_v25, %v4866_v37  ;;  %v4915_v25 = vadd.f32 %v5920_v59, %v5926_v24  ;;  %v1350_v24 = vadd.f32 %v4854_v52, %v4866_v37 }
 0x310   : > { %v3084_v2 = vpop.f32.mrb[27].mxu1 }
 0x311   : > { %v3085_v14 = vadd.f32 %v3084_v2, %v3083_v57  ;;  %v5927_v57 = vld [vmem:[#allocation27_spill] sm:$0xff] }
 0x312   : > { %v4919_v2 = vadd.f32 %v5920_v59, %v5927_v57 }
 0x313   : > { %v3086_v43 = vpop.f32.mrb[28].mxu1  ;;  %v4881_v10 = vadd.f32 %v3085_v14, %v4866_v37 }
 0x314   : > { %v3087_v47 = vpop.f32.mrb[29].mxu1 }
 0x315   : > { %v3088_v8 = vadd.f32 %v3087_v47, %v3086_v43  ;;  %v5928_v47 = vld [vmem:[#allocation28_spill] sm:$0xff] }
 0x316   : > { %v4923_v60 = vadd.f32 %v5920_v59, %v5928_v47 }
 0x317   : > { %v3089_v44 = vpop.f32.mrb[30].mxu1  ;;  %v4884_v31 = vadd.f32 %v3088_v8, %v4866_v37  ;;  %v5929_v8 = vld [vmem:[#allocation43_spill] sm:$0xff] }
 0x318   : > { %v3090_v19 = vpop.f32.mrb[31].mxu1 }
 0x319   : > { %v3091_v34 = vadd.f32 %v3090_v19, %v3089_v44  ;;  %v4927_v44 = vadd.f32 %v5920_v59, %v5929_v8  ;;  %v1345_v59 = vadd.f32 %v4852_v33, %v4866_v37  ;;  %v1360_v8 = vadd.f32 %v4858_v29, %v4866_v37 }
 0x31a   : > { %v1365_v33 = vadd.f32 %v4860_v53, %v4866_v37 }
 0x31b   : > { %v3270_v42 = vpop.f32.mrb[32].mxu1 }
 0x31c   : > { %v1475_v14 = vadd.f32 %v3270_v42, %v1330_v0  ;;  %v1469_v43 = vpop.f32.mrb[33].mxu1  ;;  %v1335_v42 = vadd.f32 %v4848_v51, %v4866_v37 }
 0x31d   : > { %v1470_v19 = vadd.f32 %v1469_v43, %v1325_v18 }
 0x31e   : > { %vm1549_vm14 = vcmp.gt.f32.partialorder %v1475_v14, 0.0  ;;  %v1565_v5 = vmul.f32 0.2, %v1475_v14 }
 0x31f   : > { %vm1548_vm15 = vcmp.gt.f32.partialorder %v1470_v19, 0.0  ;;  %v1564_v26 = vmul.f32 0.2, %v1470_v19  ;;  %v3273_v63 = vpop.f32.mrb[34].mxu1 }
 0x320   : > { %v1485_v18 = vadd.f32 %v3273_v63, %v1340_v16  ;;  %v1479_v40 = vpop.f32.mrb[35].mxu1  ;;  %v1581_v57 = vsel %vm1549_vm14, %v1475_v14, %v1565_v5  ;;  %v4957_v63 = vadd.f32 %v3091_v34, %v4866_v37  ;;  %vm5930_vm14 = vcmp.lt.s32.totalorder %v4198_v30, 1 }
 0x321   : > { %v1480_v43 = vadd.f32 %v1479_v40, %v1335_v42  ;;  %v1580_v47 = vsel %vm1548_vm15, %v1470_v19, %v1564_v26  ;;  %v4945_v46 = vadd.f32 %v1581_v57, %v1027_v20 }
 0x322   : > { %vm1551_vm0 = vcmp.gt.f32.partialorder %v1485_v18, 0.0  ;;  %v1567_v51 = vmul.f32 0.2, %v1485_v18  ;;  %v4947_v0 = vadd.f32 %v1580_v47, %v1026_v49 }
 0x323   : > { %vm1550_vm9 = vcmp.gt.f32.partialorder %v1480_v43, 0.0  ;;  %v1566_v52 = vmul.f32 0.2, %v1480_v43  ;;  %v3276_v16 = vpop.f32.mrb[36].mxu1  ;;  %v1663_v22 = vrot.slane %v4945_v46, 1  ;;  %v1615_v14 = vrot.slane %v4945_v46, 7 }
 0x324   : > { %v1495_v19 = vadd.f32 %v3276_v16, %v1350_v24  ;;  %v1489_v5 = vpop.f32.mrb[37].mxu1  ;;  %v5812_v29 = vrot.slane %v4947_v0, 7  ;;  %v5811_v20 = vrot.slane %v4947_v0, 1  ;;  %1871 = vmatprep.mubr.f32.mxu1 %v4947_v0  ;;  %v1583_v49 = vsel %vm1551_vm0, %v1485_v18, %v1567_v51 }
 0x325   : > { %v1490_v26 = vadd.f32 %v1489_v5, %v1345_v59  ;;  %v1582_v53 = vsel %vm1550_vm9, %v1480_v43, %v1566_v52  ;;  %v4959_v42 = vadd.f32 %v1583_v49, %v1029_v21  ;;  %vm5931_vm9 = vcmp.lt.s32.totalorder %v4198_v30, 7 }
 0x326   : > { %vm1553_vm15 = vcmp.gt.f32.partialorder %v1495_v19, 0.0  ;;  %v1569_v40 = vmul.f32 0.2, %v1495_v19  ;;  %v4965_v24 = vsel %vm5930_vm14, %v5812_v29, %v1615_v14  ;;  %v4967_v57 = vadd.f32 %v1582_v53, %v1028_v23 }
 0x327   : > { %vm1552_vm13 = vcmp.gt.f32.partialorder %v1490_v26, 0.0  ;;  %v1568_v47 = vmul.f32 0.2, %v1490_v26  ;;  %v3279_v18 = vpop.f32.mrb[38].mxu1  ;;  %v1617_v59 = vrot.slane %v4959_v42, 7  ;;  %v4974_v37 = vsel %vm5931_vm9, %v5811_v20, %v1663_v22  ;;  %vm5932_vm9 = vmmov %vm5930_vm14 }
 0x328   : > { %v1505_v34 = vadd.f32 %v3279_v18, %v1360_v8  ;;  %v1499_v21 = vpop.f32.mrb[39].mxu1  ;;  %v1616_v43 = vrot.slane %v4967_v57, 7  ;;  %v1585_v51 = vsel %vm1553_vm15, %v1495_v19, %v1569_v40  ;;  %v1664_v52 = vrot.slane %v4967_v57, 1 }
 0x329   : > { %v1500_v23 = vadd.f32 %v1499_v21, %v1355_v41  ;;  %v1584_v16 = vsel %vm1552_vm13, %v1490_v26, %v1568_v47  ;;  %v4979_v5 = vadd.f32 %v1585_v51, %v4911_v1  ;;  %v1665_v49 = vrot.slane %v4959_v42, 1 }
 0x32a   : > { %vm1555_vm0 = vcmp.gt.f32.partialorder %v1505_v34, 0.0  ;;  %v1571_v53 = vmul.f32 0.2, %v1505_v34  ;;  %v4984_v20 = vsel %vm5930_vm14, %v1615_v14, %v1616_v43  ;;  %v4988_v8 = vsel %vm5932_vm9, %v1616_v43, %v1617_v59 }
 0x32b   : > { %vm1554_vm15 = vcmp.gt.f32.partialorder %v1500_v23, 0.0  ;;  %v1570_v19 = vmul.f32 0.2, %v1500_v23  ;;  %v3282_v40 = vpop.f32.mrb[40].mxu1  ;;  %v4991_v41 = vadd.f32 %v1584_v16, %v4901_v38  ;;  %v1619_v1 = vrot.slane %v4979_v5, 7 }
 0x32c   : > { %v1515_v26 = vadd.f32 %v3282_v40, %v4869_v48  ;;  %v1509_v47 = vpop.f32.mrb[41].mxu1  ;;  %v1587_v18 = vsel %vm1555_vm0, %v1505_v34, %v1571_v53  ;;  %vm5933_vm13 = vcmp.lt.s32.totalorder %v4198_v30, 7 }
 0x32d   : > { %v4997_v14 = vsel %vm5933_vm13, %v1663_v22, %v1664_v52  ;;  %vm5934_vm14 = vmmov %vm5933_vm13  ;;  %v1510_v43 = vadd.f32 %v1509_v47, %v1365_v33  ;;  %v1618_v51 = vrot.slane %v4991_v41, 7  ;;  %v1586_v55 = vsel %vm1554_vm15, %v1500_v23, %v1570_v19 }
 0x32e   : > { %v5001_v21 = vsel %vm5934_vm14, %v1664_v52, %v1665_v49  ;;  %v5005_v38 = vadd.f32 %v1587_v18, %v4919_v2  ;;  %vm1557_vm9 = vcmp.gt.f32.partialorder %v1515_v26, 0.0  ;;  %v1573_v16 = vmul.f32 0.2, %v1515_v26  ;;  %v5937_v18 = vld [vmem:[#allocation31_spill] sm:$0xff] }
 0x32f   : > { %v5008_v48 = vadd.f32 %v1586_v55, %v4915_v25  ;;  %v1666_v34 = vrot.slane %v4991_v41, 1  ;;  %vm1556_vm0 = vcmp.gt.f32.partialorder %v1510_v43, 0.0  ;;  %v1572_v22 = vmul.f32 0.2, %v1510_v43  ;;  %v3285_v53 = vpop.f32.mrb[42].mxu1 }
 0x330   : > { %vm5935_vm13 = vcmp.lt.s32.totalorder %v4198_v30, 1  ;;  %v1525_v2 = vadd.f32 %v3285_v53, %v4875_v15  ;;  %v1519_v23 = vpop.f32.mrb[43].mxu1  ;;  %v1621_v25 = vrot.slane %v5005_v38, 7  ;;  %v1589_v55 = vsel %vm1557_vm9, %v1515_v26, %v1573_v16 }
 0x331   : > { %v5013_v52 = vsel %vm5935_vm13, %v1617_v59, %v1618_v51  ;;  %vm5936_vm14 = vmmov %vm5935_vm13  ;;  %v1620_v19 = vrot.slane %v5008_v48, 7  ;;  %v1520_v40 = vadd.f32 %v1519_v23, %v4872_v11  ;;  %v1588_v47 = vsel %vm1556_vm0, %v1510_v43, %v1572_v22 }
 0x332   : > { %v5017_v33 = vsel %vm5936_vm14, %v1618_v51, %v1619_v1  ;;  %v5024_v29 = vadd.f32 %v1589_v55, %v5937_v18  ;;  %vm5938_vm15 = vcmp.lt.s32.totalorder %v4198_v30, 7  ;;  %vm1559_vm13 = vcmp.gt.f32.partialorder %v1525_v2, 0.0  ;;  %vm5940_vm12 = vmmov %vm5936_vm14 }
 0x333   : > { %v5028_v59 = vsel %vm5938_vm15, %v1665_v49, %v1666_v34  ;;  %v1575_v51 = vmul.f32 0.2, %v1525_v2  ;;  %v5032_v15 = vsel %vm5936_vm14, %v1619_v1, %v1620_v19  ;;  %v5036_v53 = vsel %vm5940_vm12, %v1620_v19, %v1621_v25  ;;  %v3288_v26 = vpop.f32.mrb[44].mxu1  ;;  %vm5943_vm0 = vmmov %vm5938_vm15 }
 0x334   : > { %5939 = vst [vmem:[#allocation30_spill] sm:$0xff] %v5028_v59  ;;  %vm1558_vm9 = vcmp.gt.f32.partialorder %v1520_v40, 0.0  ;;  %v1574_v11 = vmul.f32 0.2, %v1520_v40  ;;  %v5039_v43 = vadd.f32 %v1588_v47, %v4923_v60  ;;  %v1623_v16 = vrot.slane %v5024_v29, 7  ;;  %v1529_v22 = vpop.f32.mrb[45].mxu1 }
 0x335   : > { %v1535_v49 = vadd.f32 %v3288_v26, %v4881_v10  ;;  %v1591_v23 = vsel %vm1559_vm13, %v1525_v2, %v1575_v51  ;;  %v1667_v55 = vrot.slane %v4979_v5, 1  ;;  %v1668_v1 = vrot.slane %v5008_v48, 1  ;;  %v5942_v47 = vld [vmem:[#allocation33_spill] sm:$0xff]  ;;  %vm5945_vm13 = vmmov %vm5936_vm14 }
 0x336   : > { %v1530_v18 = vadd.f32 %v1529_v22, %v4878_v58  ;;  %v1622_v19 = vrot.slane %v5039_v43, 7  ;;  %v1590_v12 = vsel %vm1558_vm9, %v1520_v40, %v1574_v11  ;;  %v5048_v62 = vadd.f32 %v1591_v23, %v5941_v32  ;;  %vm5946_vm14 = vmmov %vm5945_vm13 }
 0x337   : > { %vm1561_vm12 = vcmp.gt.f32.partialorder %v1535_v49, 0.0  ;;  %v1577_v60 = vmul.f32 0.2, %v1535_v49  ;;  %v5051_v35 = vadd.f32 %v1590_v12, %v5942_v47  ;;  %v5055_v10 = vsel %vm5943_vm0, %v1666_v34, %v1667_v55  ;;  %v3291_v51 = vpop.f32.mrb[46].mxu1  ;;  %v5947_v47 = vld [vmem:[#allocation39_spill] sm:$0xff]  ;;  %vm5948_vm9 = vmmov %vm5943_vm0 }
 0x338   : > { %5944 = vst [vmem:[#allocation32_spill] sm:$0xff] %v5055_v10  ;;  %vm1560_vm15 = vcmp.gt.f32.partialorder %v1530_v18, 0.0  ;;  %v1576_v2 = vmul.f32 0.2, %v1530_v18  ;;  %v5059_v58 = vsel %vm5945_vm13, %v1621_v25, %v1622_v19  ;;  %v5063_v32 = vsel %vm5946_vm14, %v1622_v19, %v1623_v16  ;;  %v1539_v11 = vpop.f32.mrb[47].mxu1  ;;  %vm5950_vm14 = vmmov %vm5945_vm13 }
 0x339   : > { %v1545_v40 = vadd.f32 %v3291_v51, %v4957_v63  ;;  %v1624_v12 = vrot.slane %v5051_v35, 7  ;;  %v1625_v26 = vrot.slane %v5048_v62, 7  ;;  %v1593_v34 = vsel %vm1561_vm12, %v1535_v49, %v1577_v60  ;;  %v5951_v49 = vld [vmem:[#allocation37_spill] sm:$0xff] }
 0x33a   : > { %v1540_v22 = vadd.f32 %v1539_v11, %v4884_v31  ;;  %v1592_v23 = vsel %vm1560_vm15, %v1530_v18, %v1576_v2  ;;  %v5070_v9 = vadd.f32 %v1593_v34, %v5947_v47  ;;  %v5074_v25 = vsel %vm5948_vm9, %v1667_v55, %v1668_v1  ;;  %vm5953_vm15 = vmmov %vm5948_vm9 }
 0x33b   : > { %5949 = vst [vmem:[#allocation34_spill] sm:$0xff] %v5074_v25  ;;  %vm1563_vm0 = vcmp.gt.f32.partialorder %v1545_v40, 0.0  ;;  %v1579_v19 = vmul.f32 0.2, %v1545_v40  ;;  %v5078_v63 = vsel %vm5945_vm13, %v1623_v16, %v1624_v12  ;;  %v5082_v51 = vsel %vm5950_vm14, %v1624_v12, %v1625_v26  ;;  %v1779_v25 = vld [vmem:[#allocation5 + $0x520] sm:$0xff]  ;;  %vm5958_vm14 = vmmov %vm5945_vm13 }
 0x33c   : > { %vm1562_vm12 = vcmp.gt.f32.partialorder %v1540_v22, 0.0  ;;  %v1578_v31 = vmul.f32 0.2, %v1540_v22  ;;  %v5085_v18 = vadd.f32 %v1592_v23, %v5951_v49  ;;  %v1627_v60 = vrot.slane %v5070_v9, 7  ;;  %v1781_v23 = vld [vmem:[#allocation5 + $0x530] sm:$0xff]  ;;  %v5952_v49 = vld [vmem:[#allocation41_spill] sm:$0xff] }
 0x33d   : > { %v1595_v2 = vsel %vm1563_vm0, %v1545_v40, %v1579_v19  ;;  %v1669_v55 = vrot.slane %v5005_v38, 1  ;;  %v1670_v11 = vrot.slane %v5039_v43, 1  ;;  %v1671_v34 = vrot.slane %v5024_v29, 1  ;;  %vm5956_vm0 = vmmov %vm5948_vm9 }
 0x33e   : > { %v5092_v16 = vadd.f32 %v1595_v2, %v4927_v44  ;;  %v1626_v12 = vrot.slane %v5085_v18, 7  ;;  %v1594_v47 = vsel %vm1562_vm12, %v1540_v22, %v1578_v31  ;;  %v1672_v13 = vrot.slane %v5051_v35, 1  ;;  %vm5959_vm12 = vmmov %vm5956_vm0 }
 0x33f   : > { %v5097_v10 = vadd.f32 %v1594_v47, %v5952_v49  ;;  %v5101_v40 = vsel %vm5953_vm15, %v1668_v1, %v1669_v55  ;;  %v5105_v19 = vsel %vm5948_vm9, %v1669_v55, %v1670_v11  ;;  %v5109_v44 = vsel %vm5956_vm0, %v1670_v11, %v1671_v34  ;;  %vm5962_vm15 = vmmov %vm5945_vm13 }
 0x340   : > { %5954 = vst [vmem:[#allocation36_spill] sm:$0xff] %v5101_v40  ;;  %5955 = vst [vmem:[#allocation38_spill] sm:$0xff] %v5105_v19  ;;  %v1629_v22 = vrot.slane %v5092_v16, 7  ;;  %v5114_v31 = vsel %vm5945_vm13, %v1625_v26, %v1626_v12  ;;  %v5118_v2 = vsel %vm5958_vm14, %v1626_v12, %v1627_v60  ;;  %v5122_v1 = vsel %vm5959_vm12, %v1671_v34, %v1672_v13  ;;  %v1784_v12 = vld [vmem:[#allocation5 + $0x548] sm:$0xff]  ;;  %v1786_v40 = vld [vmem:[#allocation5 + $0x558] sm:$0xff] }
 0x341   : > { %5957 = vst [vmem:[#allocation40_spill] sm:$0xff] %v5109_v44  ;;  %5960 = vst [vmem:[#allocation42_spill] sm:$0xff] %v5122_v1  ;;  %v1628_v55 = vrot.slane %v5097_v10, 7  ;;  %v1673_v47 = vrot.slane %v5048_v62, 1  ;;  %v1674_v11 = vrot.slane %v5085_v18, 1  ;;  %v1675_v49 = vrot.slane %v5070_v9, 1 }
 0x342   : > { %v5961_v44 = vrot.slane %v4947_v0, 7  ;;  %v3578_v19 = vpack.c.bf16 %v1781_v23, %v1779_v25  ;;  %v1676_v61 = vrot.slane %v5097_v10, 1  ;;  %v1677_v34 = vrot.slane %v5092_v16, 1  ;;  %vm5963_vm9 = vmmov %vm5945_vm13 }
 0x343   : > { %v5138_v1 = vsel %vm5963_vm9, %v1627_v60, %v1628_v55  ;;  %vm5964_vm0 = vmmov %vm5963_vm9  ;;  %v5158_v60 = vsel %vm5959_vm12, %v1674_v11, %v1675_v49 }
 0x344   : > { %v1645_v26 = vsel %vm5962_vm15, %v1629_v22, %v5961_v44  ;;  %v5142_v59 = vsel %vm5964_vm0, %v1628_v55, %v1629_v22  ;;  %vm5965_vm13 = vmmov %vm5959_vm12  ;;  %v5967_v44 = vpack.c.bf16 %v4893_v3, %v4891_v36  ;;  %v5970_v55 = vpack.c.bf16 %v4907_v4, %v4905_v45  ;;  %v1785_v36 = vld [vmem:[#allocation5 + $0x550] sm:$0xff]  ;;  %v1787_v4 = vld [vmem:[#allocation5 + $0x560] sm:$0xff] }
 0x345   : > { %2923 = vmatmul.mubr.msk.f32.vlgmr.msra.gmra.mrb[48].mxu1 %vm4215_vm1, %v1645_v26  ;;  %v5146_v25 = vsel %vm5965_vm13, %v1672_v13, %v1673_v47  ;;  %vm5966_vm14 = vmmov %vm5959_vm12  ;;  %v5971_v3 = vrot.slane %v4947_v0, 1  ;;  %v1788_v26 = vld [vmem:[#allocation5 + $0x568] sm:$0xff] }
 0x346   : > { %v5150_v23 = vsel %vm5966_vm14, %v1673_v47, %v1674_v11  ;;  %1877 = vmatprep.mubr.f32.mxu1 %v4945_v46  ;;  %3575 = vmatpush1.bf16.msra.mxu1 %v5967_v44  ;;  %vm5968_vm15 = vmmov %vm5959_vm12  ;;  %v3580_v46 = vpack.c.bf16 %v1786_v40, %v1784_v12  ;;  %v1783_v47 = vld [vmem:[#allocation5 + $0x540] sm:$0xff]  ;;  %v1789_v40 = vld [vmem:[#allocation5 + $0x570] sm:$0xff] }
 0x347   : > { %v5162_v22 = vsel %vm5968_vm15, %v1675_v49, %v1676_v61  ;;  %vm5969_vm9 = vmmov %vm5959_vm12  ;;  %3577 = vmatprep.subr.bf16.mxu1 %v5970_v55  ;;  %v1790_v49 = vld [vmem:[#allocation5 + $0x578] sm:$0xff]  ;;  %v1792_v12 = vld [vmem:[#allocation5 + $0x588] sm:$0xff]  ;;  %v3586_v0 = vpack.c.bf16 %v1789_v40, %v1787_v4 }
 0x348   : > { %v5166_v13 = vsel %vm5969_vm9, %v1676_v61, %v1677_v34  ;;  %vm5972_vm0 = vmmov %vm5969_vm9  ;;  %v3582_v61 = vpack.c.bf16 %v1785_v36, %v1783_v47  ;;  %v3584_v45 = vpack.c.bf16 %v1790_v49, %v1788_v26  ;;  %v1794_v44 = vld [vmem:[#allocation5 + $0x598] sm:$0xff]  ;;  %v1795_v36 = vld [vmem:[#allocation5 + $0x5a0] sm:$0xff] }
 0x349   : > { %v5175_v11 = vsel %vm5972_vm0, %v1677_v34, %v5971_v3  ;;  %1878 = vmatmul.mubr.f32.gmra.mrb[50].mxu1 %v4965_v24  ;;  %v3588_v24 = vpack.c.bf16 %v1794_v44, %v1792_v12  ;;  %v1791_v34 = vld [vmem:[#allocation5 + $0x580] sm:$0xff]  ;;  %v1798_v55 = vld [vmem:[#allocation5 + $0x5b8] sm:$0xff]  ;;  %v1800_v3 = vld [vmem:[#allocation5 + $0x5c8] sm:$0xff] }
 0x34a   : > { %1883 = vmatprep.mubr.f32.mxu1 %v4967_v57  ;;  %3579 = vmatpush1.bf16.msra.mxu1 %v3578_v19  ;;  %v1793_v57 = vld [vmem:[#allocation5 + $0x590] sm:$0xff]  ;;  %v1796_v19 = vld [vmem:[#allocation5 + $0x5a8] sm:$0xff]  ;;  %v1799_v49 = vld [vmem:[#allocation5 + $0x5c0] sm:$0xff] }
 0x34b   : > { %3581 = vmatprep.subr.bf16.mxu1 %v3580_v46  ;;  %v3590_v46 = vpack.c.bf16 %v1793_v57, %v1791_v34  ;;  %v3592_v47 = vpack.c.bf16 %v1798_v55, %v1796_v19  ;;  %v1803_v12 = vld [vmem:[#allocation5 + $0x5e0] sm:$0xff]  ;;  %v2336_v34 = vld [vmem:[#allocation7 + $0x230] sm:$0xff]  ;;  %v2337_v57 = vld [vmem:[#allocation7 + $0x238] sm:$0xff] }
 0x34c   : > { %v2318_v44 = vld [vmem:[#allocation7 + $0x1a0] sm:$0xff]  ;;  %v2320_v19 = vld [vmem:[#allocation7 + $0x1b0] sm:$0xff]  ;;  %v3616_v55 = vpack.c.bf16 %v2337_v57, %v2336_v34 }
 0x34d   : > { %2925 = vmatmul.mubr.msk.f32.gmra.mrb[52].mxu1 %vm4236_vm2, %v4984_v20  ;;  %v1797_v20 = vld [vmem:[#allocation5 + $0x5b0] sm:$0xff] }
 0x34e   : > { %1889 = vmatprep.mubr.f32.mxu1 %v4959_v42  ;;  %3583 = vmatpush1.bf16.msra.mxu1 %v3582_v61  ;;  %v1802_v42 = vld [vmem:[#allocation5 + $0x5d8] sm:$0xff]  ;;  %v3594_v26 = vpack.c.bf16 %v1797_v20, %v1795_v36  ;;  %v1804_v61 = vld [vmem:[#allocation5 + $0x5e8] sm:$0xff]  ;;  %v2338_v36 = vld [vmem:[#allocation7 + $0x240] sm:$0xff] }
 0x34f   : > { %3585 = vmatprep.subr.bf16.mxu1 %v3584_v45  ;;  %v1806_v45 = vld [vmem:[#allocation5 + $0x5f8] sm:$0xff]  ;;  %v2339_v20 = vld [vmem:[#allocation7 + $0x248] sm:$0xff] }
 0x350   : > { %v3600_v40 = vpack.c.bf16 %v1806_v45, %v1804_v61  ;;  %v2324_v61 = vld [vmem:[#allocation7 + $0x1d0] sm:$0xff] }
 0x351   : > { %1890 = vmatmul.mubr.f32.gmra.mrb[54].mxu1 %v4988_v8  ;;  %v3596_v8 = vpack.c.bf16 %v1802_v42, %v1800_v3  ;;  %v2322_v3 = vld [vmem:[#allocation7 + $0x1c0] sm:$0xff]  ;;  %v3620_v42 = vpack.c.bf16 %v2339_v20, %v2338_v36 }
 0x352   : > { %1895 = vmatprep.mubr.f32.mxu1 %v4991_v41  ;;  %3587 = vmatpush1.bf16.msra.mxu1 %v3586_v0  ;;  %v1801_v41 = vld [vmem:[#allocation5 + $0x5d0] sm:$0xff]  ;;  %v2319_v0 = vld [vmem:[#allocation7 + $0x1a8] sm:$0xff] }
 0x353   : > { %3589 = vmatprep.subr.bf16.mxu1 %v3588_v24  ;;  %v3598_v4 = vpack.c.bf16 %v1801_v41, %v1799_v49  ;;  %v3614_v24 = vpack.c.bf16 %v2319_v0, %v2318_v44  ;;  %v2340_v49 = vld [vmem:[#allocation7 + $0x250] sm:$0xff]  ;;  %v2341_v41 = vld [vmem:[#allocation7 + $0x258] sm:$0xff] }
 0x354   : > { %v3624_v45 = vpack.c.bf16 %v2341_v41, %v2340_v49 }
 0x355   : > { %2927 = vmatmul.mubr.msk.f32.gmra.mrb[56].mxu1 %vm4257_vm3, %v5013_v52  ;;  %v1805_v52 = vld [vmem:[#allocation5 + $0x5f0] sm:$0xff] }
 0x356   : > { %1901 = vmatprep.mubr.f32.mxu1 %v4979_v5  ;;  %3591 = vmatpush1.bf16.msra.mxu1 %v3590_v46  ;;  %v3602_v5 = vpack.c.bf16 %v1805_v52, %v1803_v12  ;;  %v2321_v46 = vld [vmem:[#allocation7 + $0x1b8] sm:$0xff]  ;;  %v2342_v12 = vld [vmem:[#allocation7 + $0x260] sm:$0xff]  ;;  %v2343_v52 = vld [vmem:[#allocation7 + $0x268] sm:$0xff] }
 0x357   : > { %3593 = vmatprep.subr.bf16.mxu1 %v3592_v47  ;;  %v3618_v47 = vpack.c.bf16 %v2321_v46, %v2320_v19 }
 0x359   : > { %1902 = vmatmul.mubr.f32.gmra.mrb[58].mxu1 %v5017_v33  ;;  %v5984_v33 = vld [vmem:[#allocation40_spill] sm:$0xff] }
 0x35a   : > { %1907 = vmatprep.mubr.f32.mxu1 %v5008_v48  ;;  %3595 = vmatpush1.bf16.msra.mxu1 %v3594_v26  ;;  %v5982_v48 = vld [vmem:[#allocation14_spill] sm:$0xff]  ;;  %v2323_v26 = vld [vmem:[#allocation7 + $0x1c8] sm:$0xff] }
 0x35b   : > { %3597 = vmatprep.subr.bf16.mxu1 %v3596_v8  ;;  %vm5983_vm14 = vnez %v5982_v48  ;;  %v3622_v8 = vpack.c.bf16 %v2323_v26, %v2322_v3  ;;  %v2348_v48 = vld [vmem:[#allocation7 + $0x290] sm:$0xff] }
 0x35d   : > { %2929 = vmatmul.mubr.msk.f32.gmra.mrb[60].mxu1 %vm4278_vm4, %v5032_v15  ;;  %v5986_v15 = vld [vmem:[#allocation15_spill] sm:$0xff] }
 0x35e   : > { %1913 = vmatprep.mubr.f32.mxu1 %v5005_v38  ;;  %3599 = vmatpush1.bf16.msra.mxu1 %v3598_v4  ;;  %v5978_v38 = vld [vmem:[#allocation13_spill] sm:$0xff]  ;;  %vm5987_vm12 = vnez %v5986_v15  ;;  %v2325_v4 = vld [vmem:[#allocation7 + $0x1d8] sm:$0xff] }
 0x35f   : > { %3601 = vmatprep.subr.bf16.mxu1 %v3600_v40  ;;  %vm5979_vm13 = vnez %v5978_v38  ;;  %v3626_v40 = vpack.c.bf16 %v2325_v4, %v2324_v61  ;;  %v2351_v38 = vld [vmem:[#allocation7 + $0x2a8] sm:$0xff] }
 0x361   : > { %1914 = vmatmul.mubr.f32.gmra.mrb[62].mxu1 %v5036_v53  ;;  %v5988_v53 = vld [vmem:[#allocation16_spill] sm:$0xff] }
 0x362   : > { %1919 = vmatprep.mubr.f32.mxu1 %v5039_v43  ;;  %3603 = vmatpush1.bf16.msra.mxu1 %v3602_v5  ;;  %vm5989_vm15 = vnez %v5988_v53  ;;  %v5990_v43 = vld [vmem:[#allocation17_spill] sm:$0xff]  ;;  %v2326_v5 = vld [vmem:[#allocation7 + $0x1e0] sm:$0xff] }
 0x363   : > { %vm5991_vm9 = vnez %v5990_v43 }
 0x365   : > { %2931 = vmatmul.mubr.msk.f32.gmra.mrb[64].mxu1 %vm4298_vm5, %v5059_v58  ;;  %v2330_v58 = vld [vmem:[#allocation7 + $0x200] sm:$0xff] }
 0x366   : > { %1925 = vmatprep.mubr.f32.mxu1 %v5024_v29  ;;  %v5976_v29 = vld [vmem:[#allocation32_spill] sm:$0xff] }
 0x369   : > { %1926 = vmatmul.mubr.f32.gmra.mrb[66].mxu1 %v5063_v32  ;;  %v2331_v32 = vld [vmem:[#allocation7 + $0x208] sm:$0xff] }
 0x36a   : > { %1931 = vmatprep.mubr.f32.mxu1 %v5051_v35  ;;  %v5973_v35 = vmov 0.0  }
 0x36d   : > { %2933 = vmatmul.mubr.msk.f32.gmra.mrb[68].mxu1 %vm4319_vm6, %v5078_v63  ;;  %v2314_v63 = vld [vmem:[#allocation7 + $0x180] sm:$0xff] }
 0x36e   : > { %1937 = vmatprep.mubr.f32.mxu1 %v5048_v62 }
 0x371   : > { %1938 = vmatmul.mubr.f32.gmra.mrb[70].mxu1 %v5082_v51  ;;  %v3604_v51 = vpack.c.bf16 %v2331_v32, %v2330_v58  ;;  %v2346_v32 = vld [vmem:[#allocation7 + $0x280] sm:$0xff] }
 0x372   : > { %1943 = vmatprep.mubr.f32.mxu1 %v5085_v18  ;;  %v2315_v18 = vld [vmem:[#allocation7 + $0x188] sm:$0xff] }
 0x373   : > { %3605 = vmatprep.subr.bf16.mxu0 %v3604_v51 }
 0x375   : > { %2935 = vmatmul.mubr.msk.f32.gmra.mrb[72].mxu1 %vm4340_vm7, %v5114_v31  ;;  %v2332_v31 = vld [vmem:[#allocation7 + $0x210] sm:$0xff] }
 0x376   : > { %1949 = vmatprep.mubr.f32.mxu1 %v5070_v9  ;;  %v5974_v9 = vld [vmem:[#allocation30_spill] sm:$0xff] }
 0x379   : > { %1950 = vmatmul.mubr.f32.gmra.mrb[74].mxu1 %v5118_v2  ;;  %v2333_v2 = vld [vmem:[#allocation7 + $0x218] sm:$0xff] }
 0x37a   : > { %1955 = vmatprep.mubr.f32.mxu1 %v5097_v10  ;;  %v5992_v10 = vld [vmem:[#allocation18_spill] sm:$0xff] }
 0x37b   : > { %vm5993_vm0 = vnez %v5992_v10 }
 0x37d   : > { %2937 = vmatmul.mubr.msk.f32.gmra.mrb[76].mxu1 %vm4358_vm8, %v5138_v1  ;;  %v2316_v1 = vld [vmem:[#allocation7 + $0x190] sm:$0xff] }
 0x37e   : > { %1961 = vmatprep.mubr.f32.mxu1 %v5092_v16  ;;  %v3606_v16 = vpack.c.bf16 %v2315_v18, %v2314_v63  ;;  %v2347_v63 = vld [vmem:[#allocation7 + $0x288] sm:$0xff]  ;;  %v5274_v18 = vld [vmem:[%s5772_s3 + $0x4] sm:$0x7] }
 0x37f   : > { %v5268_v51 = vpack.c.bf16 %v2347_v63, %v2346_v32  ;;  %5994 = vst [vmem:[#allocation19_spill] sm:$0xff] %v5274_v18 }
 0x380   : > { %3607 = vmatpush3.bf16.msra.mxu0 %v3606_v16  ;;  %v5995_v16 = vsub.s32 0, %v4198_v30 }
 0x381   : > { %1962 = vmatmul.mubr.f32.gmra.mrb[78].mxu1 %v5142_v59  ;;  %v5985_v59 = vld [vmem:[#allocation42_spill] sm:$0xff] }
 0x382   : > { %2032 = vmatprep.mubr.f32.mxu1 %v5973_v35 }
 0x385   : > { %2033 = vmatmul.mubr.f32.vlgmr.msra.gmra.mrb[48].mxu1 %v4974_v37  ;;  %v5977_v37 = vld [vmem:[#allocation34_spill] sm:$0xff] }
 0x386   : > { %2038 = vmatprep.mubr.f32.mxu1 %v5973_v35 }
 0x389   : > { %2939 = vmatmul.mubr.msk.f32.gmra.mrb[50].mxu1 %vm4383_vm10, %v4997_v14  ;;  %v5980_v14 = vld [vmem:[#allocation36_spill] sm:$0xff] }
 0x38a   : > { %2044 = vmatprep.mubr.f32.mxu1 %v5973_v35 }
 0x38d   : > { %2045 = vmatmul.mubr.f32.gmra.mrb[52].mxu1 %v5001_v21  ;;  %v5981_v21 = vld [vmem:[#allocation38_spill] sm:$0xff] }
 0x38e   : > { %2050 = vmatprep.mubr.f32.mxu1 %v5973_v35 }
 0x391   : > { %2941 = vmatmul.mubr.msk.f32.gmra.mrb[54].mxu1 %vm4398_vm11, %v5974_v9  ;;  %v2327_v9 = vld [vmem:[#allocation7 + $0x1e8] sm:$0xff] }
 0x392   : > { %2056 = vmatprep.mubr.f32.mxu1 %v5973_v35 }
 0x395   : > { %2057 = vmatmul.mubr.f32.gmra.mrb[56].mxu1 %v5976_v29  ;;  %v3630_v29 = vpack.c.bf16 %v2327_v9, %v2326_v5 }
 0x396   : > { %2062 = vmatprep.mubr.f32.mxu1 %v5973_v35 }
 0x399   : > { %2943 = vmatmul.mubr.msk.f32.gmra.mrb[58].mxu1 %vm5979_vm13, %v5977_v37  ;;  %v2344_v37 = vld [vmem:[#allocation7 + $0x270] sm:$0xff] }
 0x39a   : > { %2068 = vmatprep.mubr.f32.mxu1 %v5973_v35 }
 0x39d   : > { %2069 = vmatmul.mubr.f32.gmra.mrb[60].mxu1 %v5980_v14  ;;  %v2345_v14 = vld [vmem:[#allocation7 + $0x278] sm:$0xff] }
 0x39e   : > { %2074 = vmatprep.mubr.f32.mxu1 %v5973_v35 }
 0x3a1   : > { %2945 = vmatmul.mubr.msk.f32.gmra.mrb[62].mxu1 %vm5983_vm14, %v5981_v21  ;;  %v2328_v21 = vld [vmem:[#allocation7 + $0x1f0] sm:$0xff] }
 0x3a2   : > { %2080 = vmatprep.mubr.f32.mxu1 %v5973_v35 }
 0x3a5   : > { %2081 = vmatmul.mubr.f32.gmra.mrb[64].mxu1 %v5984_v33  ;;  %v3632_v33 = vpack.c.bf16 %v2345_v14, %v2344_v37 }
 0x3a6   : > { %2086 = vmatprep.mubr.f32.mxu1 %v5973_v35 }
 0x3a9   : > { %2947 = vmatmul.mubr.msk.f32.gmra.mrb[66].mxu1 %vm5987_vm12, %v5985_v59  ;;  %v2329_v59 = vld [vmem:[#allocation7 + $0x1f8] sm:$0xff] }
 0x3aa   : > { %2092 = vmatprep.mubr.f32.mxu1 %v5973_v35  ;;  %v3634_v58 = vpack.c.bf16 %v2329_v59, %v2328_v21 }
 0x3ad   : > { %2093 = vmatmul.mubr.f32.gmra.mrb[68].mxu1 %v5146_v25  ;;  %v3608_v25 = vpack.c.bf16 %v2333_v2, %v2332_v31  ;;  %v5279_v31 = vrot.slane %v5274_v18, %v5995_v16 }
 0x3ae   : > { %2098 = vmatprep.mubr.f32.mxu1 %v5973_v35 }
 0x3af   : > { %3609 = vmatprep.subr.bf16.mxu0 %v3608_v25 }
 0x3b1   : > { %2949 = vmatmul.mubr.msk.f32.gmra.mrb[70].mxu1 %vm5989_vm15, %v5150_v23  ;;  %v2317_v23 = vld [vmem:[#allocation7 + $0x198] sm:$0xff]  ;;  %vm5999_vm15 = vcmp.lt.s32.totalorder %v4198_v30, 1 }
 0x3b2   : > { %2104 = vmatprep.mubr.f32.mxu1 %v5973_v35 }
 0x3b5   : > { %2105 = vmatmul.mubr.f32.gmra.mrb[72].mxu1 %v5158_v60  ;;  %v3610_v60 = vpack.c.bf16 %v2317_v23, %v2316_v1 }
 0x3b6   : > { %2110 = vmatprep.mubr.f32.mxu1 %v5973_v35 }
 0x3b7   : > { %3611 = vmatpush3.bf16.msra.mxu0 %v3610_v60 }
 0x3b9   : > { %2951 = vmatmul.mubr.msk.f32.gmra.mrb[74].mxu1 %vm5991_vm9, %v5162_v22  ;;  %v2334_v22 = vld [vmem:[#allocation7 + $0x220] sm:$0xff] }
 0x3ba   : > { %2116 = vmatprep.mubr.f32.mxu1 %v5973_v35 }
 0x3bd   : > { %2117 = vmatmul.mubr.f32.gmra.mrb[76].mxu1 %v5166_v13  ;;  %v2335_v13 = vld [vmem:[#allocation7 + $0x228] sm:$0xff] }
 0x3be   : > { %2122 = vmatprep.mubr.f32.mxu1 %v5973_v35  ;;  %v3628_v35 = vpack.c.bf16 %v2343_v52, %v2342_v12 }
 0x3c1   : > { %2953 = vmatmul.mubr.msk.f32.gmra.mrb[78].mxu1 %vm5993_vm0, %v5175_v11  ;;  %v3612_v11 = vpack.c.bf16 %v2335_v13, %v2334_v22 }
 0x3c3   : > { %3613 = vmatprep.subr.bf16.mxu0 %v3612_v11 }
 0x3c4   : > { %3615 = vmatpush3.bf16.msra.mxu0 %v3614_v24 }
 0x3c5   : > { %3617 = vmatprep.subr.bf16.mxu0 %v3616_v55 }
 0x3c8   : > { %3619 = vmatpush3.bf16.msra.mxu0 %v3618_v47 }
 0x3c9   : > { %3621 = vmatprep.subr.bf16.mxu0 %v3620_v42 }
 0x3cc   : > { %3623 = vmatpush3.bf16.msra.mxu0 %v3622_v8 }
 0x3cd   : > { %3625 = vmatprep.subr.bf16.mxu0 %v3624_v45 }
 0x3d0   : > { %3627 = vmatpush3.bf16.msra.mxu0 %v3626_v40 }
 0x3d1   : > { %3629 = vmatprep.subr.bf16.mxu0 %v3628_v35 }
 0x3d4   : > { %3631 = vmatpush3.bf16.msra.mxu0 %v3630_v29 }
 0x3d5   : > { %3633 = vmatprep.subr.bf16.mxu0 %v3632_v33 }
 0x3d8   : > { %3635 = vmatpush3.bf16.msra.mxu0 %v3634_v58 }
 0x3d9   : > { %3637 = vmatprep.subr.bf16.mxu0 %v5268_v51 }
 0x458   : > { %v2034_v2 = vpop.f32.mrb[48].mxu1 }
 0x459   : > { %v2153_v1 = vadd.f32 %v5279_v31, %v2034_v2  ;;  %v5282_v25 = vpop.f32.mrb[49].mxu1 }
 0x45a   : > { %5996 = vst [vmem:[#allocation20_spill] sm:$0xff] %v5282_v25 }
 0x45b   : > { %v2185_v23 = vmul.f32 0.2, %v2153_v1  ;;  %vm2169_vm0 = vcmp.gt.f32.partialorder %v2153_v1, 0.0 }
 0x45c   : > { %v2040_v60 = vpop.f32.mrb[50].mxu1 }
 0x45d   : > { %v2154_v22 = vadd.f32 %v5279_v31, %v2040_v60  ;;  %v5285_v13 = vpop.f32.mrb[51].mxu1  ;;  %v5287_v44 = vsel %vm2169_vm0, %v2153_v1, %v2185_v23 }
 0x45e   : > { %5997 = vst [vmem:[#allocation29_spill] sm:$0xff] %v5285_v13  ;;  %2430 = vmatprep.mubr.f32.mxu0 %v5287_v44  ;;  %v5818_v19 = vrot.slane %v5287_v44, 7  ;;  %v5817_v55 = vrot.slane %v5287_v44, 1 }
 0x45f   : > { %v2186_v11 = vmul.f32 0.2, %v2154_v22  ;;  %vm2170_vm9 = vcmp.gt.f32.partialorder %v2154_v22, 0.0 }
 0x460   : > { %v2046_v0 = vpop.f32.mrb[52].mxu1 }
 0x461   : > { %v2155_v24 = vadd.f32 %v5279_v31, %v2046_v0  ;;  %v5291_v34 = vpop.f32.mrb[53].mxu1  ;;  %v5293_v57 = vsel %vm2170_vm9, %v2154_v22, %v2186_v11  ;;  %vm6000_vm9 = vcmp.lt.s32.totalorder %v4198_v30, 7 }
 0x462   : > { %5998 = vst [vmem:[#allocation21_spill] sm:$0xff] %v5291_v34  ;;  %v2218_v46 = vrot.slane %v5293_v57, 7  ;;  %v2266_v47 = vrot.slane %v5293_v57, 1 }
 0x463   : > { %v2187_v36 = vmul.f32 0.2, %v2155_v24  ;;  %vm2171_vm0 = vcmp.gt.f32.partialorder %v2155_v24, 0.0 }
 0x464   : > { %v2052_v20 = vpop.f32.mrb[54].mxu1  ;;  %v5303_v3 = vsel %vm5999_vm15, %v5818_v19, %v2218_v46  ;;  %v5309_v42 = vsel %vm6000_vm9, %v5817_v55, %v2266_v47 }
 0x465   : > { %v2156_v26 = vadd.f32 %v5279_v31, %v2052_v20  ;;  %v5312_v8 = vpop.f32.mrb[55].mxu1  ;;  %v5314_v49 = vsel %vm2171_vm0, %v2155_v24, %v2187_v36 }
 0x466   : > { %6001 = vst [vmem:[#allocation22_spill] sm:$0xff] %v5312_v8  ;;  %v2219_v41 = vrot.slane %v5314_v49, 7  ;;  %v2267_v61 = vrot.slane %v5314_v49, 1 }
 0x467   : > { %v2188_v45 = vmul.f32 0.2, %v2156_v26  ;;  %vm2172_vm12 = vcmp.gt.f32.partialorder %v2156_v26, 0.0 }
 0x468   : > { %v2058_v4 = vpop.f32.mrb[56].mxu1  ;;  %v5320_v40 = vsel %vm5999_vm15, %v2218_v46, %v2219_v41  ;;  %v5324_v12 = vsel %vm6000_vm9, %v2266_v47, %v2267_v61 }
 0x469   : > { %v2157_v52 = vadd.f32 %v5279_v31, %v2058_v4  ;;  %v5327_v5 = vpop.f32.mrb[57].mxu1  ;;  %v5329_v35 = vsel %vm2172_vm12, %v2156_v26, %v2188_v45 }
 0x46a   : > { %6002 = vst [vmem:[#allocation23_spill] sm:$0xff] %v5327_v5  ;;  %v2220_v9 = vrot.slane %v5329_v35, 7  ;;  %v2268_v29 = vrot.slane %v5329_v35, 1 }
 0x46b   : > { %v2189_v37 = vmul.f32 0.2, %v2157_v52  ;;  %vm2173_vm0 = vcmp.gt.f32.partialorder %v2157_v52, 0.0 }
 0x46c   : > { %v2064_v14 = vpop.f32.mrb[58].mxu1  ;;  %v5335_v21 = vsel %vm5999_vm15, %v2219_v41, %v2220_v9  ;;  %v5339_v33 = vsel %vm6000_vm9, %v2267_v61, %v2268_v29 }
 0x46d   : > { %v2158_v59 = vadd.f32 %v5279_v31, %v2064_v14  ;;  %v5342_v58 = vpop.f32.mrb[59].mxu1  ;;  %v5344_v32 = vsel %vm2173_vm0, %v2157_v52, %v2189_v37 }
 0x46e   : > { %6003 = vst [vmem:[#allocation24_spill] sm:$0xff] %v5342_v58  ;;  %v2221_v63 = vrot.slane %v5344_v32, 7  ;;  %v2269_v16 = vrot.slane %v5344_v32, 1 }
 0x46f   : > { %v2190_v2 = vmul.f32 0.2, %v2158_v59  ;;  %vm2174_vm12 = vcmp.gt.f32.partialorder %v2158_v59, 0.0 }
 0x470   : > { %v2070_v1 = vpop.f32.mrb[60].mxu1  ;;  %v5350_v23 = vsel %vm5999_vm15, %v2220_v9, %v2221_v63  ;;  %v5354_v60 = vsel %vm6000_vm9, %v2268_v29, %v2269_v16 }
 0x471   : > { %v2159_v22 = vadd.f32 %v5279_v31, %v2070_v1  ;;  %v5357_v11 = vpop.f32.mrb[61].mxu1  ;;  %v5359_v0 = vsel %vm2174_vm12, %v2158_v59, %v2190_v2 }
 0x472   : > { %6004 = vst [vmem:[#allocation25_spill] sm:$0xff] %v5357_v11  ;;  %v2222_v24 = vrot.slane %v5359_v0, 7  ;;  %v2270_v46 = vrot.slane %v5359_v0, 1 }
 0x473   : > { %v2191_v47 = vmul.f32 0.2, %v2159_v22  ;;  %vm2175_vm0 = vcmp.gt.f32.partialorder %v2159_v22, 0.0 }
 0x474   : > { %v2076_v36 = vpop.f32.mrb[62].mxu1  ;;  %v5365_v20 = vsel %vm5999_vm15, %v2221_v63, %v2222_v24  ;;  %v5369_v26 = vsel %vm6000_vm9, %v2269_v16, %v2270_v46 }
 0x475   : > { %v2160_v41 = vadd.f32 %v5279_v31, %v2076_v36  ;;  %v5372_v61 = vpop.f32.mrb[63].mxu1  ;;  %v5374_v45 = vsel %vm2175_vm0, %v2159_v22, %v2191_v47 }
 0x476   : > { %6005 = vst [vmem:[#allocation26_spill] sm:$0xff] %v5372_v61  ;;  %v2223_v4 = vrot.slane %v5374_v45, 7  ;;  %v2271_v52 = vrot.slane %v5374_v45, 1 }
 0x477   : > { %v2192_v9 = vmul.f32 0.2, %v2160_v41  ;;  %vm2176_vm12 = vcmp.gt.f32.partialorder %v2160_v41, 0.0 }
 0x478   : > { %v2082_v29 = vpop.f32.mrb[64].mxu1  ;;  %v5380_v37 = vsel %vm5999_vm15, %v2222_v24, %v2223_v4  ;;  %v5384_v14 = vsel %vm6000_vm9, %v2270_v46, %v2271_v52 }
 0x479   : > { %v2161_v59 = vadd.f32 %v5279_v31, %v2082_v29  ;;  %v5387_v63 = vpop.f32.mrb[65].mxu1  ;;  %v5389_v16 = vsel %vm2176_vm12, %v2160_v41, %v2192_v9 }
 0x47a   : > { %6006 = vst [vmem:[#allocation27_spill] sm:$0xff] %v5387_v63  ;;  %v2224_v2 = vrot.slane %v5389_v16, 7  ;;  %v2272_v1 = vrot.slane %v5389_v16, 1 }
 0x47b   : > { %v2193_v22 = vmul.f32 0.2, %v2161_v59  ;;  %vm2177_vm0 = vcmp.gt.f32.partialorder %v2161_v59, 0.0 }
 0x47c   : > { %v2088_v47 = vpop.f32.mrb[66].mxu1  ;;  %v5395_v24 = vsel %vm5999_vm15, %v2223_v4, %v2224_v2  ;;  %v5399_v46 = vsel %vm6000_vm9, %v2271_v52, %v2272_v1 }
 0x47d   : > { %6007 = vst [vmem:[#allocation28_spill] sm:$0xff] %v5399_v46  ;;  %v2162_v36 = vadd.f32 %v5279_v31, %v2088_v47  ;;  %v5402_v29 = vpop.f32.mrb[67].mxu1  ;;  %v5404_v41 = vsel %vm2177_vm0, %v2161_v59, %v2193_v22  ;;  %v2350_v46 = vld [vmem:[#allocation7 + $0x2a0] sm:$0xff] }
 0x47e   : > { %6008 = vst [vmem:[#allocation43_spill] sm:$0xff] %v5402_v29  ;;  %v2225_v9 = vrot.slane %v5404_v41, 7  ;;  %v2273_v55 = vrot.slane %v5404_v41, 1 }
 0x47f   : > { %v2194_v19 = vmul.f32 0.2, %v2162_v36  ;;  %vm2178_vm12 = vcmp.gt.f32.partialorder %v2162_v36, 0.0 }
 0x480   : > { %v2094_v63 = vpop.f32.mrb[68].mxu1  ;;  %v5410_v4 = vsel %vm5999_vm15, %v2224_v2, %v2225_v9  ;;  %v5414_v52 = vsel %vm6000_vm9, %v2272_v1, %v2273_v55 }
 0x481   : > { %6009 = vst [vmem:[#allocation31_spill] sm:$0xff] %v5414_v52  ;;  %v2163_v47 = vadd.f32 %v5279_v31, %v2094_v63  ;;  %v5417_v29 = vpop.f32.mrb[69].mxu1  ;;  %v5419_v59 = vsel %vm2178_vm12, %v2162_v36, %v2194_v19  ;;  %v2349_v52 = vld [vmem:[#allocation7 + $0x298] sm:$0xff] }
 0x482   : > { %6010 = vst [vmem:[#allocation35_spill] sm:$0xff] %v5417_v29  ;;  %v2226_v22 = vrot.slane %v5419_v59, 7  ;;  %v2274_v11 = vrot.slane %v5419_v59, 1 }
 0x483   : > { %v2195_v61 = vmul.f32 0.2, %v2163_v47  ;;  %vm2179_vm0 = vcmp.gt.f32.partialorder %v2163_v47, 0.0 }
 0x484   : > { %v2100_v5 = vpop.f32.mrb[70].mxu1  ;;  %v5425_v2 = vsel %vm5999_vm15, %v2225_v9, %v2226_v22  ;;  %v5429_v1 = vsel %vm6000_vm9, %v2273_v55, %v2274_v11  ;;  %v6027_v56 = vld [vmem:[#allocation28_spill] sm:$0xff] }
 0x485   : > { %6011 = vst [vmem:[#allocation33_spill] sm:$0xff] %v5429_v1  ;;  %v2164_v63 = vadd.f32 %v5279_v31, %v2100_v5  ;;  %v5432_v29 = vpop.f32.mrb[71].mxu1  ;;  %v5434_v19 = vsel %vm2179_vm0, %v2163_v47, %v2195_v61 }
 0x486   : > { %6012 = vst [vmem:[#allocation39_spill] sm:$0xff] %v5432_v29  ;;  %v2227_v36 = vrot.slane %v5434_v19, 7  ;;  %v2275_v58 = vrot.slane %v5434_v19, 1 }
 0x487   : > { %v2196_v34 = vmul.f32 0.2, %v2164_v63  ;;  %vm2180_vm12 = vcmp.gt.f32.partialorder %v2164_v63, 0.0 }
 0x488   : > { %v2106_v8 = vpop.f32.mrb[72].mxu1  ;;  %v5440_v9 = vsel %vm5999_vm15, %v2226_v22, %v2227_v36  ;;  %v5444_v55 = vsel %vm6000_vm9, %v2274_v11, %v2275_v58  ;;  %v6028_v6 = vld [vmem:[#allocation31_spill] sm:$0xff] }
 0x489   : > { %6013 = vst [vmem:[#allocation37_spill] sm:$0xff] %v5444_v55  ;;  %v2165_v5 = vadd.f32 %v5279_v31, %v2106_v8  ;;  %v5447_v29 = vpop.f32.mrb[73].mxu1  ;;  %v5449_v61 = vsel %vm2180_vm12, %v2164_v63, %v2196_v34 }
 0x48a   : > { %6014 = vst [vmem:[#allocation41_spill] sm:$0xff] %v5447_v29  ;;  %v2228_v47 = vrot.slane %v5449_v61, 7  ;;  %v2276_v25 = vrot.slane %v5449_v61, 1 }
 0x48b   : > { %v2197_v13 = vmul.f32 0.2, %v2165_v5  ;;  %vm2181_vm0 = vcmp.gt.f32.partialorder %v2165_v5, 0.0 }
 0x48c   : > { %v2112_v18 = vpop.f32.mrb[74].mxu1  ;;  %v5455_v22 = vsel %vm5999_vm15, %v2227_v36, %v2228_v47  ;;  %v5459_v11 = vsel %vm6000_vm9, %v2275_v58, %v2276_v25  ;;  %v6030_v27 = vld [vmem:[#allocation33_spill] sm:$0xff] }
 0x48d   : > { %6015 = vst [vmem:[#allocation30_spill] sm:$0xff] %v5459_v11  ;;  %v2166_v8 = vadd.f32 %v5279_v31, %v2112_v18  ;;  %v5462_v29 = vpop.f32.mrb[75].mxu1  ;;  %v5464_v34 = vsel %vm2181_vm0, %v2165_v5, %v2197_v13 }
 0x48e   : > { %6016 = vst [vmem:[#allocation12_spill] sm:$0xff] %v5462_v29  ;;  %v2229_v63 = vrot.slane %v5464_v34, 7  ;;  %v2277_v10 = vrot.slane %v5464_v34, 1 }
 0x48f   : > { %v2198_v43 = vmul.f32 0.2, %v2166_v8  ;;  %vm2182_vm12 = vcmp.gt.f32.partialorder %v2166_v8, 0.0 }
 0x490   : > { %v2118_v53 = vpop.f32.mrb[76].mxu1  ;;  %v5470_v36 = vsel %vm5999_vm15, %v2228_v47, %v2229_v63  ;;  %v5474_v58 = vsel %vm6000_vm9, %v2276_v25, %v2277_v10  ;;  %v6031_v39 = vld [vmem:[#allocation37_spill] sm:$0xff] }
 0x491   : > { %6017 = vst [vmem:[#allocation32_spill] sm:$0xff] %v5474_v58  ;;  %v2167_v18 = vadd.f32 %v5279_v31, %v2118_v53  ;;  %v5477_v29 = vpop.f32.mrb[77].mxu1  ;;  %v5479_v13 = vsel %vm2182_vm12, %v2166_v8, %v2198_v43 }
 0x492   : > { %6018 = vst [vmem:[#allocation34_spill] sm:$0xff] %v5477_v29  ;;  %v2230_v5 = vrot.slane %v5479_v13, 7  ;;  %v2278_v11 = vrot.slane %v5479_v13, 1 }
 0x493   : > { %v2199_v15 = vmul.f32 0.2, %v2167_v18  ;;  %vm2183_vm0 = vcmp.gt.f32.partialorder %v2167_v18, 0.0 }
 0x494   : > { %v2124_v55 = vpop.f32.mrb[78].mxu1  ;;  %v5485_v47 = vsel %vm5999_vm15, %v2229_v63, %v2230_v5  ;;  %v5489_v25 = vsel %vm6000_vm9, %v2277_v10, %v2278_v11  ;;  %v6034_v62 = vld [vmem:[#allocation30_spill] sm:$0xff] }
 0x495   : > { %6019 = vst [vmem:[#allocation36_spill] sm:$0xff] %v5489_v25  ;;  %v2168_v53 = vadd.f32 %v5279_v31, %v2124_v55  ;;  %v5492_v29 = vpop.f32.mrb[79].mxu1  ;;  %v5494_v43 = vsel %vm2183_vm0, %v2167_v18, %v2199_v15  ;;  %v3640_v18 = vpack.c.bf16 %v2349_v52, %v2348_v48  ;;  %vm6022_vm0 = vmmov %vm5999_vm15  ;;  %v2352_v52 = vld [vmem:[#allocation7 + $0x2b0] sm:$0xff] }
 0x496   : > { %6020 = vst [vmem:[#allocation38_spill] sm:$0xff] %v5492_v29  ;;  %v2231_v8 = vrot.slane %v5494_v43, 7  ;;  %v2279_v58 = vrot.slane %v5494_v43, 1  ;;  %v6021_v29 = vrot.slane %v5287_v44, 7 }
 0x497   : > { %vm2184_vm12 = vcmp.gt.f32.partialorder %v2168_v53, 0.0  ;;  %v2200_v1 = vmul.f32 0.2, %v2168_v53 }
 0x498   : > { %v5500_v63 = vsel %vm5999_vm15, %v2230_v5, %v2231_v8  ;;  %v5504_v10 = vsel %vm6000_vm9, %v2278_v11, %v2279_v58  ;;  %vm6023_vm15 = vmmov %vm6022_vm0  ;;  %v6024_v11 = vrot.slane %v5287_v44, 1 }
 0x499   : > { %v5506_v31 = vsel %vm2184_vm12, %v2168_v53, %v2200_v1  ;;  %vm6025_vm12 = vmmov %vm6000_vm9  ;;  %v2353_v53 = vld [vmem:[#allocation7 + $0x2b8] sm:$0xff] }
 0x49a   : > { %v2232_v15 = vrot.slane %v5506_v31, 7  ;;  %v2280_v55 = vrot.slane %v5506_v31, 1  ;;  %v3648_v44 = vpack.c.bf16 %v2353_v53, %v2352_v52 }
 0x49c   : > { %v2248_v25 = vsel %vm6022_vm0, %v2232_v15, %v6021_v29  ;;  %v5516_v5 = vsel %vm6023_vm15, %v2231_v8, %v2232_v15  ;;  %v5520_v1 = vsel %vm6000_vm9, %v2279_v58, %v2280_v55  ;;  %v5526_v48 = vsel %vm6025_vm12, %v2280_v55, %v6024_v11  ;;  %v2354_v58 = vld [vmem:[#allocation7 + $0x2c0] sm:$0xff]  ;;  %v2355_v8 = vld [vmem:[#allocation7 + $0x2c8] sm:$0xff] }
 0x49d   : > { %2955 = vmatmul.mubr.msk.f32.vlgmr.msra.gmra.mrb[32].mxu0 %vm4215_vm1, %v2248_v25  ;;  %v3644_v29 = vpack.c.bf16 %v2351_v38, %v2350_v46  ;;  %v3652_v50 = vpack.c.bf16 %v2355_v8, %v2354_v58  ;;  %v2356_v38 = vld [vmem:[#allocation7 + $0x2d0] sm:$0xff]  ;;  %vm6033_vm1 = vnez %v6032_v54 }
 0x49e   : > { %2435 = vmatprep.mubr.f32.mxu0 %v5293_v57  ;;  %3639 = vmatpush3.bf16.msra.mxu0 %v5268_v51  ;;  %v2357_v51 = vld [vmem:[#allocation7 + $0x2d8] sm:$0xff] }
 0x49f   : > { %3641 = vmatprep.subr.bf16.mxu0 %v3640_v18  ;;  %v3656_v57 = vpack.c.bf16 %v2357_v51, %v2356_v38 }
 0x4a1   : > { %2436 = vmatmul.mubr.f32.gmra.mrb[34].mxu0 %v5303_v3  ;;  %v2358_v3 = vld [vmem:[#allocation7 + $0x2e0] sm:$0xff] }
 0x4a2   : > { %2440 = vmatprep.mubr.f32.mxu0 %v5314_v49  ;;  %3643 = vmatpush3.bf16.msra.mxu0 %v3640_v18  ;;  %v2359_v49 = vld [vmem:[#allocation7 + $0x2e8] sm:$0xff] }
 0x4a3   : > { %3645 = vmatprep.subr.bf16.mxu0 %v3644_v29  ;;  %v3660_v7 = vpack.c.bf16 %v2359_v49, %v2358_v3 }
 0x4a5   : > { %2957 = vmatmul.mubr.msk.f32.gmra.mrb[36].mxu0 %vm4236_vm2, %v5320_v40  ;;  %v2360_v40 = vld [vmem:[#allocation7 + $0x2f0] sm:$0xff] }
 0x4a6   : > { %2445 = vmatprep.mubr.f32.mxu0 %v5329_v35  ;;  %3647 = vmatpush3.bf16.msra.mxu0 %v3644_v29  ;;  %v2361_v35 = vld [vmem:[#allocation7 + $0x2f8] sm:$0xff] }
 0x4a7   : > { %3649 = vmatprep.subr.bf16.mxu0 %v3648_v44 }
 0x4a9   : > { %2446 = vmatmul.mubr.f32.gmra.mrb[38].mxu0 %v5335_v21  ;;  %v3664_v21 = vpack.c.bf16 %v2361_v35, %v2360_v40  ;;  %v6044_v40 = vld [vmem:[#allocation19_spill] sm:$0xff] }
 0x4aa   : > { %2450 = vmatprep.mubr.f32.mxu0 %v5344_v32  ;;  %3651 = vmatpush3.bf16.msra.mxu0 %v3648_v44  ;;  %v6039_v32 = vld [vmem:[#allocation17_spill] sm:$0xff] }
 0x4ab   : > { %3653 = vmatprep.subr.bf16.mxu0 %v3652_v50 }
 0x4ad   : > { %2959 = vmatmul.mubr.msk.f32.gmra.mrb[40].mxu0 %vm4257_vm3, %v5350_v23  ;;  %vm6040_vm3 = vnez %v6039_v32  ;;  %v6041_v23 = vld [vmem:[#allocation18_spill] sm:$0xff]  ;;  %v6046_v32 = vld [vmem:[#allocation29_spill] sm:$0xff] }
 0x4ae   : > { %2455 = vmatprep.mubr.f32.mxu0 %v5359_v0  ;;  %3655 = vmatpush3.bf16.msra.mxu0 %v3652_v50 }
 0x4af   : > { %3657 = vmatprep.subr.bf16.mxu0 %v3656_v57 }
 0x4b1   : > { %2456 = vmatmul.mubr.f32.gmra.mrb[42].mxu0 %v5365_v20 }
 0x4b2   : > { %2460 = vmatprep.mubr.f32.mxu0 %v5374_v45  ;;  %3659 = vmatpush3.bf16.msra.mxu0 %v3656_v57 }
 0x4b3   : > { %3661 = vmatprep.subr.bf16.mxu0 %v3660_v7 }
 0x4b5   : > { %2961 = vmatmul.mubr.msk.f32.gmra.mrb[44].mxu0 %vm4278_vm4, %v5380_v37  ;;  %vm6042_vm4 = vnez %v6041_v23 }
 0x4b6   : > { %2465 = vmatprep.mubr.f32.mxu0 %v5389_v16  ;;  %3663 = vmatpush3.bf16.msra.mxu0 %v3660_v7  ;;  %v6043_v7 = vsub.s32 1, %v4198_v30 }
 0x4b7   : > { %3665 = vmatprep.subr.bf16.mxu0 %v3664_v21 }
 0x4b8   : > { %v5630_v35 = vrot.slane %v6044_v40, %v6043_v7 }
 0x4b9   : > { %2466 = vmatmul.mubr.f32.gmra.mrb[46].mxu0 %v5395_v24 }
 0x4ba   : > { %2470 = vmatprep.mubr.f32.mxu0 %v5404_v41  ;;  %3667 = vmatpush3.bf16.msra.mxu0 %v3664_v21 }
 0x4bd   : > { %2963 = vmatmul.mubr.msk.f32.gmra.mrb[48].mxu0 %vm4298_vm5, %v5410_v4 }
 0x4be   : > { %2475 = vmatprep.mubr.f32.mxu0 %v5419_v59 }
 0x4c1   : > { %2476 = vmatmul.mubr.f32.gmra.mrb[50].mxu0 %v5425_v2 }
 0x4c2   : > { %2480 = vmatprep.mubr.f32.mxu0 %v5434_v19 }
 0x4c5   : > { %2965 = vmatmul.mubr.msk.f32.gmra.mrb[52].mxu0 %vm4319_vm6, %v5440_v9 }
 0x4c6   : > { %2485 = vmatprep.mubr.f32.mxu0 %v5449_v61 }
 0x4c9   : > { %2486 = vmatmul.mubr.f32.gmra.mrb[54].mxu0 %v5455_v22 }
 0x4ca   : > { %2490 = vmatprep.mubr.f32.mxu0 %v5464_v34 }
 0x4cd   : > { %2967 = vmatmul.mubr.msk.f32.gmra.mrb[56].mxu0 %vm4340_vm7, %v5470_v36 }
 0x4ce   : > { %2495 = vmatprep.mubr.f32.mxu0 %v5479_v13 }
 0x4d1   : > { %2496 = vmatmul.mubr.f32.gmra.mrb[58].mxu0 %v5485_v47 }
 0x4d2   : > { %2500 = vmatprep.mubr.f32.mxu0 %v5494_v43 }
 0x4d5   : > { %2969 = vmatmul.mubr.msk.f32.gmra.mrb[60].mxu0 %vm4358_vm8, %v5500_v63 }
 0x4d6   : > { %2505 = vmatprep.mubr.f32.mxu0 %v5506_v31 }
 0x4d9   : > { %2506 = vmatmul.mubr.f32.gmra.mrb[62].mxu0 %v5516_v5 }
 0x4da   : > { %3324 = vmatprep.mubr.f32.mxu0 %v5309_v42  ;;  %v6035_v42 = vld [vmem:[#allocation32_spill] sm:$0xff] }
 0x4dd   : > { %3325 = vmatmul.mubr.msk.f32.vlgmr.msra.gmra.mrb[64].mxu0 %vm4383_vm10, %v5324_v12  ;;  %v6036_v12 = vld [vmem:[#allocation16_spill] sm:$0xff] }
 0x4de   : > { %3327 = vmatprep.mubr.f32.mxu0 %v5339_v33  ;;  %vm6037_vm2 = vnez %v6036_v12  ;;  %v6038_v33 = vld [vmem:[#allocation36_spill] sm:$0xff] }
 0x4e1   : > { %3328 = vmatmul.mubr.msk.f32.gmra.mrb[66].mxu0 %vm4398_vm11, %v5354_v60 }
 0x4e2   : > { %3330 = vmatprep.mubr.f32.mxu0 %v5369_v26 }
 0x4e5   : > { %3331 = vmatmul.mubr.msk.f32.gmra.mrb[68].mxu0 %vm5979_vm13, %v5384_v14 }
 0x4e6   : > { %3333 = vmatprep.mubr.f32.mxu0 %v6027_v56 }
 0x4e9   : > { %3334 = vmatmul.mubr.msk.f32.gmra.mrb[70].mxu0 %vm5983_vm14, %v6028_v6 }
 0x4ea   : > { %3336 = vmatprep.mubr.f32.mxu0 %v6030_v27  ;;  %v6045_v27 = vsub.s32 2, %v4198_v30  ;;  %v6047_v30 = vld [vmem:[#allocation20_spill] sm:$0xff] }
 0x4ed   : > { %3337 = vmatmul.mubr.msk.f32.gmra.mrb[72].mxu0 %vm6033_vm1, %v6031_v39  ;;  %v5639_v39 = vrot.slane %v6044_v40, %v6045_v27 }
 0x4ee   : > { %3339 = vmatprep.mubr.f32.mxu0 %v6034_v62 }
 0x4ef   : > { %v2134_v23 = vadd.f32 %v5639_v39, %v6046_v32 }
 0x4f1   : > { %3340 = vmatmul.mubr.msk.f32.gmra.mrb[74].mxu0 %vm6037_vm2, %v6035_v42 }
 0x4f2   : > { %3342 = vmatprep.mubr.f32.mxu0 %v6038_v33 }
 0x4f5   : > { %3343 = vmatmul.mubr.msk.f32.gmra.mrb[76].mxu0 %vm6040_vm3, %v5504_v10 }
 0x4f6   : > { %3345 = vmatprep.mubr.f32.mxu0 %v5520_v1 }
 0x4f9   : > { %3346 = vmatmul.mubr.msk.f32.gmra.mrb[78].mxu0 %vm6042_vm4, %v5526_v48 }
 0x570   : > { %v3156_v60 = vpop.f32.mrb[32].mxu0 }
 0x571   : > { %v3157_v0 = vpop.f32.mrb[33].mxu0 }
 0x572   : > { %v3158_v20 = vadd.f32 %v3157_v0, %v3156_v60 }
 0x574   : > { %v3159_v26 = vpop.f32.mrb[34].mxu0  ;;  %v2433_v17 = vadd.f32 %v3158_v20, %v5630_v35 }
 0x575   : > { %v3160_v45 = vpop.f32.mrb[35].mxu0 }
 0x576   : > { %v3161_v37 = vadd.f32 %v3160_v45, %v3159_v26  ;;  %v2133_v26 = vadd.f32 %v5639_v39, %v6047_v30 }
 0x578   : > { %v3162_v14 = vpop.f32.mrb[36].mxu0  ;;  %v2438_v56 = vadd.f32 %v3161_v37, %v5630_v35 }
 0x579   : > { %v3163_v16 = vpop.f32.mrb[37].mxu0 }
 0x57a   : > { %v3164_v24 = vadd.f32 %v3163_v16, %v3162_v14 }
 0x57c   : > { %v3165_v46 = vpop.f32.mrb[38].mxu0  ;;  %v2443_v20 = vadd.f32 %v3164_v24, %v5630_v35 }
 0x57d   : > { %v3166_v41 = vpop.f32.mrb[39].mxu0 }
 0x57e   : > { %v3167_v4 = vadd.f32 %v3166_v41, %v3165_v46 }
 0x580   : > { %v3168_v59 = vpop.f32.mrb[40].mxu0  ;;  %v2448_v33 = vadd.f32 %v3167_v4, %v5630_v35 }
 0x581   : > { %v3169_v2 = vpop.f32.mrb[41].mxu0 }
 0x582   : > { %v5607_v19 = vadd.f32 %v3169_v2, %v3168_v59 }
 0x584   : > { %v3171_v9 = vpop.f32.mrb[42].mxu0 }
 0x585   : > { %v3172_v61 = vpop.f32.mrb[43].mxu0 }
 0x586   : > { %v3173_v22 = vadd.f32 %v3172_v61, %v3171_v9  ;;  %v6048_v9 = vld [vmem:[#allocation22_spill] sm:$0xff] }
 0x587   : > { %v2136_v61 = vadd.f32 %v5639_v39, %v6048_v9 }
 0x588   : > { %v3174_v34 = vpop.f32.mrb[44].mxu0  ;;  %v2458_v2 = vadd.f32 %v3173_v22, %v5630_v35 }
 0x589   : > { %v3175_v36 = vpop.f32.mrb[45].mxu0 }
 0x58a   : > { %v5609_v13 = vadd.f32 %v3175_v36, %v3174_v34  ;;  %v2453_v36 = vadd.f32 %v5607_v19, %v5630_v35 }
 0x58c   : > { %v3177_v47 = vpop.f32.mrb[46].mxu0 }
 0x58d   : > { %v3178_v25 = vpop.f32.mrb[47].mxu0 }
 0x58e   : > { %v5611_v43 = vadd.f32 %v3178_v25, %v3177_v47  ;;  %v6049_v47 = vld [vmem:[#allocation21_spill] sm:$0xff] }
 0x58f   : > { %v2135_v25 = vadd.f32 %v5639_v39, %v6049_v47 }
 0x590   : > { %v3180_v63 = vpop.f32.mrb[48].mxu0 }
 0x591   : > { %v3181_v10 = vpop.f32.mrb[49].mxu0 }
 0x592   : > { %v5613_v31 = vadd.f32 %v3181_v10, %v3180_v63 }
 0x594   : > { %v3183_v15 = vpop.f32.mrb[50].mxu0 }
 0x595   : > { %v3184_v55 = vpop.f32.mrb[51].mxu0 }
 0x596   : > { %v5615_v18 = vadd.f32 %v3184_v55, %v3183_v15 }
 0x598   : > { %v3186_v5 = vpop.f32.mrb[52].mxu0  ;;  %v2478_v27 = vadd.f32 %v5615_v18, %v5630_v35 }
 0x599   : > { %v3187_v1 = vpop.f32.mrb[53].mxu0 }
 0x59a   : > { %v5617_v11 = vadd.f32 %v3187_v1, %v3186_v5 }
 0x59c   : > { %v3189_v48 = vpop.f32.mrb[54].mxu0 }
 0x59d   : > { %v3190_v29 = vpop.f32.mrb[55].mxu0 }
 0x59e   : > { %v5619_v52 = vadd.f32 %v3190_v29, %v3189_v48  ;;  %v2468_v29 = vadd.f32 %v5611_v43, %v5630_v35 }
 0x5a0   : > { %v3192_v53 = vpop.f32.mrb[56].mxu0 }
 0x5a1   : > { %v3193_v44 = vpop.f32.mrb[57].mxu0 }
 0x5a2   : > { %v5621_v58 = vadd.f32 %v3193_v44, %v3192_v53  ;;  %v6050_v53 = vld [vmem:[#allocation24_spill] sm:$0xff] }
 0x5a3   : > { %v2138_v19 = vadd.f32 %v5639_v39, %v6050_v53 }
 0x5a4   : > { %v3195_v8 = vpop.f32.mrb[58].mxu0 }
 0x5a5   : > { %v3196_v50 = vpop.f32.mrb[59].mxu0 }
 0x5a6   : > { %v5623_v38 = vadd.f32 %v3196_v50, %v3195_v8  ;;  %v2463_v50 = vadd.f32 %v5609_v13, %v5630_v35 }
 0x5a8   : > { %v3198_v51 = vpop.f32.mrb[60].mxu0 }
 0x5a9   : > { %v3199_v57 = vpop.f32.mrb[61].mxu0 }
 0x5aa   : > { %v5625_v3 = vadd.f32 %v3199_v57, %v3198_v51  ;;  %v6051_v51 = vld [vmem:[#allocation23_spill] sm:$0xff] }
 0x5ab   : > { %v2137_v57 = vadd.f32 %v5639_v39, %v6051_v51  ;;  %v6058_v51 = vld [vmem:[#allocation12_spill] sm:$0xff] }
 0x5ac   : > { %v3201_v49 = vpop.f32.mrb[62].mxu0 }
 0x5ad   : > { %v3202_v21 = vpop.f32.mrb[63].mxu0 }
 0x5ae   : > { %v5632_v28 = vadd.f32 %v3202_v21, %v3201_v49 }
 0x5b0   : > { %v3326_v6 = vpop.f32.mrb[64].mxu0 }
 0x5b1   : > { %v2583_v54 = vadd.f32 %v3326_v6, %v2438_v56  ;;  %v2577_v62 = vpop.f32.mrb[65].mxu0 }
 0x5b2   : > { %v2578_v42 = vadd.f32 %v2577_v62, %v2433_v17 }
 0x5b3   : > { %vm2657_vm5 = vcmp.gt.f32.partialorder %v2583_v54, 0.0  ;;  %v2673_v12 = vmul.f32 0.2, %v2583_v54 }
 0x5b4   : > { %vm2656_vm6 = vcmp.gt.f32.partialorder %v2578_v42, 0.0  ;;  %v2672_v60 = vmul.f32 0.2, %v2578_v42  ;;  %v3329_v0 = vpop.f32.mrb[66].mxu0 }
 0x5b5   : > { %v2689_v45 = vsel %vm2657_vm5, %v2583_v54, %v2673_v12  ;;  %v2593_v37 = vadd.f32 %v3329_v0, %v2448_v33  ;;  %v2587_v14 = vpop.f32.mrb[67].mxu0  ;;  %v6052_v54 = vld [vmem:[#allocation26_spill] sm:$0xff]  ;;  %v2473_v12 = vadd.f32 %v5613_v31, %v5630_v35  ;;  %v6053_v33 = vld [vmem:[#allocation25_spill] sm:$0xff] }
 0x5b6   : > { %v2705_v16 = vadd.f32 %v2689_v45, %v2134_v23  ;;  %v2688_v46 = vsel %vm2656_vm6, %v2578_v42, %v2672_v60  ;;  %v2588_v41 = vadd.f32 %v2587_v14, %v2443_v20  ;;  %v2140_v13 = vadd.f32 %v5639_v39, %v6052_v54  ;;  %v6054_v14 = vld [vmem:[#allocation43_spill] sm:$0xff] }
 0x5b7   : > { %v2704_v59 = vadd.f32 %v2688_v46, %v2133_v26  ;;  %vm2659_vm7 = vcmp.gt.f32.partialorder %v2593_v37, 0.0  ;;  %v2675_v4 = vmul.f32 0.2, %v2593_v37  ;;  %v2139_v32 = vadd.f32 %v5639_v39, %v6053_v33 }
 0x5b8   : > { %2721 = vst [vmem:[%s5652_s30 + $0x8] sm:$0xff] %v2705_v16  ;;  %vm2658_vm8 = vcmp.gt.f32.partialorder %v2588_v41, 0.0  ;;  %v2674_v24 = vmul.f32 0.2, %v2588_v41  ;;  %v3332_v34 = vpop.f32.mrb[68].mxu0  ;;  %v2142_v31 = vadd.f32 %v5639_v39, %v6054_v14 }
 0x5b9   : > { %2720 = vst [vmem:[%s5652_s30] sm:$0xff] %v2704_v59  ;;  %v2691_v22 = vsel %vm2659_vm7, %v2593_v37, %v2675_v4  ;;  %v2603_v63 = vadd.f32 %v3332_v34, %v2458_v2  ;;  %v2597_v10 = vpop.f32.mrb[69].mxu0  ;;  %v2488_v37 = vadd.f32 %v5619_v52, %v5630_v35  ;;  %v6055_v59 = vld [vmem:[#allocation27_spill] sm:$0xff] }
 0x5ba   : > { %v2707_v15 = vadd.f32 %v2691_v22, %v2136_v61  ;;  %v2690_v55 = vsel %vm2658_vm8, %v2588_v41, %v2674_v24  ;;  %v2598_v5 = vadd.f32 %v2597_v10, %v2453_v36  ;;  %v2483_v41 = vadd.f32 %v5617_v11, %v5630_v35  ;;  %v6056_v22 = vld [vmem:[#allocation39_spill] sm:$0xff] }
 0x5bb   : > { %v2706_v1 = vadd.f32 %v2690_v55, %v2135_v25  ;;  %vm2661_vm10 = vcmp.gt.f32.partialorder %v2603_v63, 0.0  ;;  %v2677_v48 = vmul.f32 0.2, %v2603_v63  ;;  %v2141_v4 = vadd.f32 %v5639_v39, %v6055_v59  ;;  %v6057_v55 = vld [vmem:[#allocation35_spill] sm:$0xff] }
 0x5bc   : > { %2723 = vst [vmem:[%s5652_s30 + $0x18] sm:$0xff] %v2707_v15  ;;  %vm2660_vm11 = vcmp.gt.f32.partialorder %v2598_v5, 0.0  ;;  %v2676_v44 = vmul.f32 0.2, %v2598_v5  ;;  %v3335_v8 = vpop.f32.mrb[70].mxu0  ;;  %v2498_v25 = vadd.f32 %v5623_v38, %v5630_v35  ;;  %v2144_v11 = vadd.f32 %v5639_v39, %v6056_v22 }
 0x5bd   : > { %2722 = vst [vmem:[%s5652_s30 + $0x10] sm:$0xff] %v2706_v1  ;;  %v2693_v49 = vsel %vm2661_vm10, %v2603_v63, %v2677_v48  ;;  %v2613_v7 = vadd.f32 %v3335_v8, %v2468_v29  ;;  %v2607_v40 = vpop.f32.mrb[71].mxu0  ;;  %v2493_v15 = vadd.f32 %v5621_v58, %v5630_v35  ;;  %v2146_v58 = vadd.f32 %v5639_v39, %v6058_v51 }
 0x5be   : > { %v2709_v43 = vadd.f32 %v2693_v49, %v2138_v19  ;;  %v2692_v21 = vsel %vm2660_vm11, %v2598_v5, %v2676_v44  ;;  %v2608_v56 = vadd.f32 %v2607_v40, %v2463_v50  ;;  %v2143_v5 = vadd.f32 %v5639_v39, %v6057_v55  ;;  %v6059_v40 = vld [vmem:[#allocation41_spill] sm:$0xff] }
 0x5bf   : > { %v2708_v6 = vadd.f32 %v2692_v21, %v2137_v57  ;;  %vm2663_vm13 = vcmp.gt.f32.partialorder %v2613_v7, 0.0  ;;  %v2679_v17 = vmul.f32 0.2, %v2613_v7  ;;  %v2508_v50 = vadd.f32 %v5632_v28, %v5630_v35 }
 0x5c0   : > { %2725 = vst [vmem:[%s5652_s30 + $0x28] sm:$0xff] %v2709_v43  ;;  %vm2662_vm14 = vcmp.gt.f32.partialorder %v2608_v56, 0.0  ;;  %v2678_v62 = vmul.f32 0.2, %v2608_v56  ;;  %v3338_v42 = vpop.f32.mrb[72].mxu0  ;;  %v2145_v43 = vadd.f32 %v5639_v39, %v6059_v40 }
 0x5c1   : > { %2724 = vst [vmem:[%s5652_s30 + $0x20] sm:$0xff] %v2708_v6  ;;  %v2695_v23 = vsel %vm2663_vm13, %v2613_v7, %v2679_v17  ;;  %v2623_v60 = vadd.f32 %v3338_v42, %v2478_v27  ;;  %v2617_v0 = vpop.f32.mrb[73].mxu0  ;;  %v2503_v7 = vadd.f32 %v5625_v3, %v5630_v35  ;;  %v6060_v3 = vld [vmem:[#allocation38_spill] sm:$0xff] }
 0x5c2   : > { %v2711_v18 = vadd.f32 %v2695_v23, %v2140_v13  ;;  %v2694_v20 = vsel %vm2662_vm14, %v2608_v56, %v2678_v62  ;;  %v2618_v30 = vadd.f32 %v2617_v0, %v2473_v12  ;;  %v2148_v35 = vadd.f32 %v5639_v39, %v6060_v3  ;;  %v6061_v42 = vld [vmem:[#allocation34_spill] sm:$0xff] }
 0x5c3   : > { %v2710_v26 = vadd.f32 %v2694_v20, %v2139_v32  ;;  %vm2665_vm0 = vcmp.gt.f32.partialorder %v2623_v60, 0.0  ;;  %v2681_v45 = vmul.f32 0.2, %v2623_v60  ;;  %v2147_v12 = vadd.f32 %v5639_v39, %v6061_v42 }
 0x5c4   : > { %2727 = vst [vmem:[%s5652_s30 + $0x38] sm:$0xff] %v2711_v18  ;;  %vm2664_vm15 = vcmp.gt.f32.partialorder %v2618_v30, 0.0  ;;  %v2680_v16 = vmul.f32 0.2, %v2618_v30  ;;  %v3341_v46 = vpop.f32.mrb[74].mxu0 }
 0x5c5   : > { %2726 = vst [vmem:[%s5652_s30 + $0x30] sm:$0xff] %v2710_v26  ;;  %v2697_v2 = vsel %vm2665_vm0, %v2623_v60, %v2681_v45  ;;  %v2633_v9 = vadd.f32 %v3341_v46, %v2488_v37  ;;  %v2627_v61 = vpop.f32.mrb[75].mxu0 }
 0x5c6   : > { %v2713_v52 = vadd.f32 %v2697_v2, %v2142_v31  ;;  %v2696_v24 = vsel %vm2664_vm15, %v2618_v30, %v2680_v16  ;;  %v2628_v34 = vadd.f32 %v2627_v61, %v2483_v41 }
 0x5c7   : > { %v2712_v36 = vadd.f32 %v2696_v24, %v2141_v4  ;;  %vm2667_vm9 = vcmp.gt.f32.partialorder %v2633_v9, 0.0  ;;  %v2683_v47 = vmul.f32 0.2, %v2633_v9 }
 0x5c8   : > { %2729 = vst [vmem:[%s5652_s30 + $0x48] sm:$0xff] %v2713_v52  ;;  %vm2666_vm12 = vcmp.gt.f32.partialorder %v2628_v34, 0.0  ;;  %v2682_v63 = vmul.f32 0.2, %v2628_v34  ;;  %v3344_v10 = vpop.f32.mrb[76].mxu0 }
 0x5c9   : > { %2728 = vst [vmem:[%s5652_s30 + $0x40] sm:$0xff] %v2712_v36  ;;  %v2699_v1 = vsel %vm2667_vm9, %v2633_v9, %v2683_v47  ;;  %v2643_v48 = vadd.f32 %v3344_v10, %v2498_v25  ;;  %v2637_v29 = vpop.f32.mrb[77].mxu0 }
 0x5ca   : > { %v2715_v38 = vadd.f32 %v2699_v1, %v2144_v11  ;;  %v2698_v53 = vsel %vm2666_vm12, %v2628_v34, %v2682_v63  ;;  %v2638_v19 = vadd.f32 %v2637_v29, %v2493_v15 }
 0x5cb   : > { %v2714_v44 = vadd.f32 %v2698_v53, %v2143_v5  ;;  %vm2669_vm1 = vcmp.gt.f32.partialorder %v2643_v48, 0.0  ;;  %v2685_v8 = vmul.f32 0.2, %v2643_v48 }
 0x5cc   : > { %2731 = vst [vmem:[%s5652_s30 + $0x58] sm:$0xff] %v2715_v38  ;;  %vm2668_vm2 = vcmp.gt.f32.partialorder %v2638_v19, 0.0  ;;  %v2684_v57 = vmul.f32 0.2, %v2638_v19  ;;  %v3347_v49 = vpop.f32.mrb[78].mxu0 }
 0x5cd   : > { %2730 = vst [vmem:[%s5652_s30 + $0x50] sm:$0xff] %v2714_v44  ;;  %v2701_v21 = vsel %vm2669_vm1, %v2643_v48, %v2685_v8  ;;  %v2653_v28 = vadd.f32 %v3347_v49, %v2508_v50  ;;  %v2647_v56 = vpop.f32.mrb[79].mxu0 }
 0x5ce   : > { %v2717_v6 = vadd.f32 %v2701_v21, %v2146_v58  ;;  %v2700_v17 = vsel %vm2668_vm2, %v2638_v19, %v2684_v57  ;;  %v2648_v27 = vadd.f32 %v2647_v56, %v2503_v7 }
 0x5cf   : > { %v2716_v54 = vadd.f32 %v2700_v17, %v2145_v43  ;;  %vm2671_vm3 = vcmp.gt.f32.partialorder %v2653_v28, 0.0  ;;  %v2687_v13 = vmul.f32 0.2, %v2653_v28 }
 0x5d0   : > { %2733 = vst [vmem:[%s5652_s30 + $0x68] sm:$0xff] %v2717_v6  ;;  %vm2670_vm4 = vcmp.gt.f32.partialorder %v2648_v27, 0.0  ;;  %v2686_v62 = vmul.f32 0.2, %v2648_v27 }
 0x5d1   : > { %2732 = vst [vmem:[%s5652_s30 + $0x60] sm:$0xff] %v2716_v54  ;;  %v2703_v33 = vsel %vm2671_vm3, %v2653_v28, %v2687_v13 }
 0x5d2   : > { %v2719_v32 = vadd.f32 %v2703_v33, %v2148_v35  ;;  %v2702_v23 = vsel %vm2670_vm4, %v2648_v27, %v2686_v62 }
 0x5d3   : > { %v2718_v60 = vadd.f32 %v2702_v23, %v2147_v12 }
 0x5d4   : > { %2735 = vst [vmem:[%s5652_s30 + $0x78] sm:$0xff] %v2719_v32 }
 0x5d5   : > { %2734 = vst [vmem:[%s5652_s30 + $0x70] sm:$0xff] %v2718_v60 }
 0x5d6   : > { %3905 = shalt.err (!%p3902_p2)
}
 0x5d7   : > { %s3906_s24 = scalar_lea.hbm %s5721_s19, 2048  ;;  %s3910_s23 = scalar_lea.hbm %s5773_s4, 4096 }
 0x5d8   : > { %p3907_p13 = scmp.ne.s32.totalorder %s5721_s19, %s3906_s24  ;;  %p3911_p4 = scmp.lt.u32.totalorder %s5721_s19, %s5773_s4 }
 0x5d9   : > { %p3912_p7 = scmp.lt.u32.totalorder %s3910_s23, %s3906_s24  ;;  %p3914_p11 = scmp.lt.u32.totalorder %s3906_s24, %s5721_s19 }
 0x5da   : > { %p3908_p6 = pnand %p3907_p13, %p6062_p0 }
 0x5db   : > { %p3913_p8 = por %p3912_p7, %p3911_p4 }
 0x5dc   : > { %p3909_p10 = pneg %p3908_p6 }
 0x5dd   : > { %p3915_p1 = por %p3914_p11, %p3913_p8 }
 0x5df   : > { %p3916_p3 = pnand %p3915_p1, %p3909_p10 }
 0x5e1   : > { %3919 = shalt.err (!%p3916_p3)
}
 0x5e2   : > { %s3973_s30 = smov 128   ;;  %s3974_s6 = smov 8  }
 0x5e3   : > { %3742 = dma.vmem_to_hbm [thread:$0]  (%p6062_p0), %s5723_s9, 2048, %s5721_s19, %s2737_s20, %s3973_s30, %s3973_s30, %s3974_s6  }
 0x5e4 PF: > { %s2766_s28 = sand.u32 1, %s3950_s15   ;;  %p6063_p5 = scmp.ne.s32.totalorder %s5822_s22, 0 }
 0x5e5   : > { %p6064_p9 = scmp.ge.s32.totalorder %s3962_s18, 2  ;;  %s2767_s27 = scalar_lea.sflag [#allocation4], %s2766_s28 }
 0x5e7   : > { %p3756_p12 = pnand %p6064_p9, %p6063_p5 }
 0x5e9   : > { %3945 = dma.done.wait (!%p3756_p12), %s2767_s27, 2048  }
 0x5ea   : > { %3947 = vsyncadd (!%p3756_p12), %s2767_s27, 4294965248  ;;  %p18_p2 = scmp.ge.s32.totalorder %s4113_s11, 4   ;;  %s6065_s15 = smov %s3954_s16 }
 0x5eb   : > { %s6066_s16 = smov %s3958_s17  ;;  %s6067_s17 = smov %s4122_s14 }
 0x5ec   : > { %s6068_s18 = smov %s4113_s11  ;;  %20 = sbr.rel (!%p18_p2) target bundleno = 6 (0x6), region = 92 }
 0x5f3   :  { %2772 = vsyncpa [#allocation3], 1 }
 0x5f4   :  { %2774 = vsyncpa [#allocation3 + $0x1], 1 }
 0x5f5   :  { %2775 = vsyncpa [#allocation6], 1 }
 0x5f6   :  { %2776 = vsyncpa [#allocation4], 1 }
 0x5f7   :  { %2778 = vsyncpa [#allocation4 + $0x1], 1 }

</bundles_post_ra>
